<compile_context>
chip_gen: v7x
topology: tpu7x:2x2x1
jax: 0.10.0
libtpu: 0.0.40
codegen_flags: <defaults>
</compile_context>

<pallas_src>
import jax
import jax.numpy as jnp
from jax.experimental import pallas as pl
from jax.experimental.pallas import tpu as pltpu


D_IN = 784          # 28 * 28 flattened image
N_CLS = 10          # number of labels / embedding rows
K_PAD = 896         # 794 (= 784 image + 10 one-hot) padded up to 7 * 128
H1, H2, H3 = 1024, 512, 256
N_PAD = 128         # final layer N=1 padded to a full 128-lane tile


def _round_up(x, m):
    return (x + m - 1) // m * m


def _pick_batch_tile(B):
    # bf16 sublane packing is (16, 128) -> 16-row floor.
    if B <= 32:
        return max(16, _round_up(B, 16))            # single small tile
    if B <= 1024:
        # >= 2 grid steps so the "parallel" batch axis shards across both
        # v7x TensorCores; VMEM footprint is tiny so the smaller tile is free.
        return _round_up((B + 1) // 2, 16)
    return 512                                      # large-batch steady state


def _disc_mlp_kernel(x_ref,
                     w1_ref, b1_ref, w2_ref, b2_ref,
                     w3_ref, b3_ref, w4_ref, b4_ref,
                     out_ref):
    """Fused 4-layer MLP: bf16 MXU matmuls, fp32 accumulation, LeakyReLU, Sigmoid."""

    def leaky(h):
        return jnp.where(h >= 0.0, h, 0.2 * h)

    # Layer 1: the label-embedding contribution is folded into the matmul --
    # x lanes 784..793 carry one_hot(label) and W1 rows 784..793 carry
    # emb @ W1_emb, so no per-row bias stream is needed.
    h = jnp.dot(x_ref[...], w1_ref[...], preferred_element_type=jnp.float32)
    h = leaky(h + b1_ref[...]).astype(jnp.bfloat16)                  # (TB, 1024)
    # Dropout(0.3): identity in eval mode.

    h = jnp.dot(h, w2_ref[...], preferred_element_type=jnp.float32) + b2_ref[...]
    h = leaky(h).astype(jnp.bfloat16)                                # (TB, 512)

    h = jnp.dot(h, w3_ref[...], preferred_element_type=jnp.float32) + b3_ref[...]
    h = leaky(h).astype(jnp.bfloat16)                                # (TB, 256)

    logit = jnp.dot(h, w4_ref[...], preferred_element_type=jnp.float32) + b4_ref[...]
    out_ref[...] = jax.nn.sigmoid(logit).astype(jnp.bfloat16)        # (TB, 128); col 0 real


def init_params(key):
    """Deterministic fp32 parameter init (PyTorch-default-style uniform bounds)."""
    ks = jax.random.split(key, 9)

    def linear(kw, kb, fan_in, fan_out):
        bound = 1.0 / float(fan_in) ** 0.5
        w = jax.random.uniform(kw, (fan_in, fan_out), jnp.float32, -bound, bound)
        b = jax.random.uniform(kb, (1, fan_out), jnp.float32, -bound, bound)
        return w, b

    emb = jax.random.normal(ks[0], (10, 10), jnp.float32)   # nn.Embedding(10, 10)
    w1, b1 = linear(ks[1], ks[2], 794, 1024)                # torch cat order: [image, emb]
    w2, b2 = linear(ks[3], ks[4], 1024, 512)
    w3, b3 = linear(ks[5], ks[6], 512, 256)
    w4, b4 = linear(ks[7], ks[8], 256, 1)
    return dict(emb=emb, w1=w1, b1=b1, w2=w2, b2=b2,
                w3=w3, b3=b3, w4=w4, b4=b4)


def prepare_params(params):
    """One-time cast / pad / fold of the fp32 params into kernel-ready (bf16) form."""
    w1 = params["w1"]                                        # (794, 1024) fp32

    # Fold the label path: padded-W1 rows 784..793 become
    # Embedding(10,10) @ W1[784:794]; the wrapper feeds a one-hot there.
    emb_fold = params["emb"] @ w1[D_IN:]                     # (10, 1024) fp32

    w1p = jnp.zeros((K_PAD, H1), jnp.bfloat16)
    w1p = w1p.at[:D_IN].set(w1[:D_IN].astype(jnp.bfloat16))
    w1p = w1p.at[D_IN:D_IN + N_CLS].set(emb_fold.astype(jnp.bfloat16))

    w4p = jnp.zeros((H3, N_PAD), jnp.bfloat16).at[:, :1].set(
        params["w4"].astype(jnp.bfloat16))                   # (256, 128)
    b4p = jnp.zeros((1, N_PAD), jnp.float32).at[:, :1].set(params["b4"])

    return dict(
        w1=w1p, b1=params["b1"],
        w2=params["w2"].astype(jnp.bfloat16), b2=params["b2"],
        w3=params["w3"].astype(jnp.bfloat16), b3=params["b3"],
        w4=w4p, b4=b4p,
    )


def discriminator_forward(x, labels, kparams):
    """x: (B, 1, 28, 28) float NCHW; labels: (B,) int32 in [0, 10). Returns (B,) probs."""
    B = x.shape[0]
    TB = _pick_batch_tile(B)
    Bp = _round_up(B, TB)

    x_flat = x.reshape(B, D_IN).astype(jnp.bfloat16)         # == x.view(B, 784)
    one_hot = jax.nn.one_hot(labels, N_CLS, dtype=jnp.bfloat16)

    x_pad = jnp.zeros((Bp, K_PAD), jnp.bfloat16)
    x_pad = x_pad.at[:B, :D_IN].set(x_flat)
    x_pad = x_pad.at[:B, D_IN:D_IN + N_CLS].set(one_hot)     # folded label path

    row = lambda i: (i, 0)        # batch-blocked activations / output
    const2 = lambda i: (0, 0)     # weights: same block every step -> VMEM-resident

    flops = 2 * Bp * (K_PAD * H1 + H1 * H2 + H2 * H3 + H3 * N_PAD)
    bytes_accessed = (
        2 * (K_PAD * H1 + H1 * H2 + H2 * H3 + H3 * N_PAD)    # bf16 weights
        + 4 * (H1 + H2 + H3 + N_PAD)                         # fp32 biases
        + Bp * 2 * (K_PAD + N_PAD))                          # bf16 activations in/out

    out = pl.pallas_call(
        _disc_mlp_kernel,
        out_shape=jax.ShapeDtypeStruct((Bp, N_PAD), jnp.bfloat16),
        grid_spec=pltpu.PrefetchScalarGridSpec(
            num_scalar_prefetch=0,
            grid=(Bp // TB,),
            in_specs=[
                pl.BlockSpec((TB, K_PAD), row),       # x tile (image + one-hot label)
                pl.BlockSpec((K_PAD, H1), const2),    # W1 (image part + folded emb rows)
                pl.BlockSpec((1, H1), const2),        # b1
                pl.BlockSpec((H1, H2), const2),       # W2
                pl.BlockSpec((1, H2), const2),        # b2
                pl.BlockSpec((H2, H3), const2),       # W3
                pl.BlockSpec((1, H3), const2),        # b3
                pl.BlockSpec((H3, N_PAD), const2),    # W4 (padded to 128 lanes)
                pl.BlockSpec((1, N_PAD), const2),     # b4
            ],
            out_specs=pl.BlockSpec((TB, N_PAD), row),
        ),
        compiler_params=pltpu.CompilerParams(
            dimension_semantics=("parallel",),        # batch tiles shard across TCs
            vmem_limit_bytes=32 << 20,                # valid on v5e/v6e/v7x; ~8 MiB used
        ),
        cost_estimate=pl.CostEstimate(
            flops=flops,
            transcendentals=Bp * N_PAD,
            bytes_accessed=bytes_accessed),
    )(x_pad,
      kparams["w1"], kparams["b1"], kparams["w2"], kparams["b2"],
      kparams["w3"], kparams["b3"], kparams["w4"], kparams["b4"])

    # Column 0 holds the real probability; padded rows/lanes are discarded here.
    return out[:B, 0].astype(jnp.float32)             # matches torch .squeeze()


if __name__ == "__main__":
    key = jax.random.PRNGKey(0)
    k_param, k_x, k_lbl = jax.random.split(key, 3)

    params = init_params(k_param)
    kparams = prepare_params(params)

    B = 8
    x = jax.random.normal(k_x, (B, 1, 28, 28), jnp.float32)         # MNIST-shaped input (NCHW)
    labels = jax.random.randint(k_lbl, (B,), 0, 10, jnp.int32)      # class labels

    fwd = jax.jit(discriminator_forward)
    out = jax.block_until_ready(fwd(x, labels, kparams))

    assert out.shape == (B,), out.shape
    assert bool(jnp.all((out >= 0.0) & (out <= 1.0)))
    print("KERNEL_OK")
</pallas_src>

<mosaic_0001>
module attributes {stable_mosaic.version = 11 : i64} {
  func.func @_disc_mlp_kernel(%arg0: i32, %arg1: memref<16x896xbf16, #tpu.memory_space<vmem>>, %arg2: memref<896x1024xbf16, #tpu.memory_space<vmem>>, %arg3: memref<1x1024xf32, #tpu.memory_space<vmem>>, %arg4: memref<1024x512xbf16, #tpu.memory_space<vmem>>, %arg5: memref<1x512xf32, #tpu.memory_space<vmem>>, %arg6: memref<512x256xbf16, #tpu.memory_space<vmem>>, %arg7: memref<1x256xf32, #tpu.memory_space<vmem>>, %arg8: memref<256x128xbf16, #tpu.memory_space<vmem>>, %arg9: memref<1x128xf32, #tpu.memory_space<vmem>>, %arg10: memref<16x128xbf16, #tpu.memory_space<vmem>>) attributes {dimension_semantics = [#tpu.dimension_semantics<parallel>], iteration_bounds = array<i64: 1>, scalar_prefetch = 0 : i64, scratch_operands = 0 : i64, tpu.core_type = #tpu.core_type<tc>, window_params = [{transform_indices = @transform_0, window_bounds = array<i64: 16, 896>}, {pipeline_mode = #tpu.pipeline_mode<synchronous>, transform_indices = @transform_1, window_bounds = array<i64: 896, 1024>}, {pipeline_mode = #tpu.pipeline_mode<synchronous>, transform_indices = @transform_2, window_bounds = array<i64: 1, 1024>}, {pipeline_mode = #tpu.pipeline_mode<synchronous>, transform_indices = @transform_3, window_bounds = array<i64: 1024, 512>}, {pipeline_mode = #tpu.pipeline_mode<synchronous>, transform_indices = @transform_4, window_bounds = array<i64: 1, 512>}, {pipeline_mode = #tpu.pipeline_mode<synchronous>, transform_indices = @transform_5, window_bounds = array<i64: 512, 256>}, {pipeline_mode = #tpu.pipeline_mode<synchronous>, transform_indices = @transform_6, window_bounds = array<i64: 1, 256>}, {pipeline_mode = #tpu.pipeline_mode<synchronous>, transform_indices = @transform_7, window_bounds = array<i64: 256, 128>}, {pipeline_mode = #tpu.pipeline_mode<synchronous>, transform_indices = @transform_8, window_bounds = array<i64: 1, 128>}, {transform_indices = @transform_9, window_bounds = array<i64: 16, 128>}]} {
    %c0 = arith.constant 0 : index
    %c0_0 = arith.constant 0 : index
    %0 = vector.load %arg1[%c0, %c0_0] : memref<16x896xbf16, #tpu.memory_space<vmem>>, vector<16x896xbf16>
    %c0_1 = arith.constant 0 : index
    %c0_2 = arith.constant 0 : index
    %1 = vector.load %arg2[%c0_1, %c0_2] : memref<896x1024xbf16, #tpu.memory_space<vmem>>, vector<896x1024xbf16>
    %cst = arith.constant dense<0.000000e+00> : vector<16x1024xf32>
    %2 = tpu.matmul %0, %1, %cst {dimension_numbers = #tpu.dot_dimension_numbers<[1], [0], [0], [1], [0, 0, 1, 1], [], []>} : vector<16x896xbf16>, vector<896x1024xbf16>, vector<16x1024xf32> -> vector<16x1024xf32>
    %c0_3 = arith.constant 0 : index
    %c0_4 = arith.constant 0 : index
    %3 = vector.load %arg3[%c0_3, %c0_4] : memref<1x1024xf32, #tpu.memory_space<vmem>>, vector<1x1024xf32>
    %4 = vector.broadcast %3 : vector<1x1024xf32> to vector<16x1024xf32>
    %5 = arith.addf %2, %4 : vector<16x1024xf32>
    %cst_5 = arith.constant 0.000000e+00 : f32
    %6 = vector.broadcast %cst_5 : f32 to vector<16x1024xf32>
    %7 = arith.cmpf oge, %5, %6 : vector<16x1024xf32>
    %cst_6 = arith.constant 2.000000e-01 : f32
    %8 = vector.broadcast %cst_6 : f32 to vector<16x1024xf32>
    %9 = arith.mulf %8, %5 : vector<16x1024xf32>
    %10 = arith.select %7, %5, %9 : vector<16x1024xi1>, vector<16x1024xf32>
    %11 = arith.truncf %10 : vector<16x1024xf32> to vector<16x1024xbf16>
    %c0_7 = arith.constant 0 : index
    %c0_8 = arith.constant 0 : index
    %12 = vector.load %arg4[%c0_7, %c0_8] : memref<1024x512xbf16, #tpu.memory_space<vmem>>, vector<1024x512xbf16>
    %cst_9 = arith.constant dense<0.000000e+00> : vector<16x512xf32>
    %13 = tpu.matmul %11, %12, %cst_9 {dimension_numbers = #tpu.dot_dimension_numbers<[1], [0], [0], [1], [0, 0, 1, 1], [], []>} : vector<16x1024xbf16>, vector<1024x512xbf16>, vector<16x512xf32> -> vector<16x512xf32>
    %c0_10 = arith.constant 0 : index
    %c0_11 = arith.constant 0 : index
    %14 = vector.load %arg5[%c0_10, %c0_11] : memref<1x512xf32, #tpu.memory_space<vmem>>, vector<1x512xf32>
    %15 = vector.broadcast %14 : vector<1x512xf32> to vector<16x512xf32>
    %16 = arith.addf %13, %15 : vector<16x512xf32>
    %cst_12 = arith.constant 0.000000e+00 : f32
    %17 = vector.broadcast %cst_12 : f32 to vector<16x512xf32>
    %18 = arith.cmpf oge, %16, %17 : vector<16x512xf32>
    %cst_13 = arith.constant 2.000000e-01 : f32
    %19 = vector.broadcast %cst_13 : f32 to vector<16x512xf32>
    %20 = arith.mulf %19, %16 : vector<16x512xf32>
    %21 = arith.select %18, %16, %20 : vector<16x512xi1>, vector<16x512xf32>
    %22 = arith.truncf %21 : vector<16x512xf32> to vector<16x512xbf16>
    %c0_14 = arith.constant 0 : index
    %c0_15 = arith.constant 0 : index
    %23 = vector.load %arg6[%c0_14, %c0_15] : memref<512x256xbf16, #tpu.memory_space<vmem>>, vector<512x256xbf16>
    %cst_16 = arith.constant dense<0.000000e+00> : vector<16x256xf32>
    %24 = tpu.matmul %22, %23, %cst_16 {dimension_numbers = #tpu.dot_dimension_numbers<[1], [0], [0], [1], [0, 0, 1, 1], [], []>} : vector<16x512xbf16>, vector<512x256xbf16>, vector<16x256xf32> -> vector<16x256xf32>
    %c0_17 = arith.constant 0 : index
    %c0_18 = arith.constant 0 : index
    %25 = vector.load %arg7[%c0_17, %c0_18] : memref<1x256xf32, #tpu.memory_space<vmem>>, vector<1x256xf32>
    %26 = vector.broadcast %25 : vector<1x256xf32> to vector<16x256xf32>
    %27 = arith.addf %24, %26 : vector<16x256xf32>
    %cst_19 = arith.constant 0.000000e+00 : f32
    %28 = vector.broadcast %cst_19 : f32 to vector<16x256xf32>
    %29 = arith.cmpf oge, %27, %28 : vector<16x256xf32>
    %cst_20 = arith.constant 2.000000e-01 : f32
    %30 = vector.broadcast %cst_20 : f32 to vector<16x256xf32>
    %31 = arith.mulf %30, %27 : vector<16x256xf32>
    %32 = arith.select %29, %27, %31 : vector<16x256xi1>, vector<16x256xf32>
    %33 = arith.truncf %32 : vector<16x256xf32> to vector<16x256xbf16>
    %c0_21 = arith.constant 0 : index
    %c0_22 = arith.constant 0 : index
    %34 = vector.load %arg8[%c0_21, %c0_22] : memref<256x128xbf16, #tpu.memory_space<vmem>>, vector<256x128xbf16>
    %cst_23 = arith.constant dense<0.000000e+00> : vector<16x128xf32>
    %35 = tpu.matmul %33, %34, %cst_23 {dimension_numbers = #tpu.dot_dimension_numbers<[1], [0], [0], [1], [0, 0, 1, 1], [], []>} : vector<16x256xbf16>, vector<256x128xbf16>, vector<16x128xf32> -> vector<16x128xf32>
    %c0_24 = arith.constant 0 : index
    %c0_25 = arith.constant 0 : index
    %36 = vector.load %arg9[%c0_24, %c0_25] : memref<1x128xf32, #tpu.memory_space<vmem>>, vector<1x128xf32>
    %37 = vector.broadcast %36 : vector<1x128xf32> to vector<16x128xf32>
    %38 = arith.addf %35, %37 : vector<16x128xf32>
    %39 = arith.negf %38 : vector<16x128xf32>
    %40 = math.exp %39 : vector<16x128xf32>
    %cst_26 = arith.constant 1.000000e+00 : f32
    %41 = vector.broadcast %cst_26 : f32 to vector<16x128xf32>
    %42 = arith.addf %41, %40 : vector<16x128xf32>
    %43 = arith.divf %41, %42 : vector<16x128xf32>
    %44 = arith.truncf %43 : vector<16x128xf32> to vector<16x128xbf16>
    %c0_27 = arith.constant 0 : index
    %c0_28 = arith.constant 0 : index
    %45 = vector.load %arg10[%c0_27, %c0_28] : memref<16x128xbf16, #tpu.memory_space<vmem>>, vector<16x128xbf16>
    tpu.vector_store %arg10[%c0_27, %c0_28], %44 {strides = array<i32>} : memref<16x128xbf16, #tpu.memory_space<vmem>>, vector<16x128xbf16>,
    return
  }
  func.func @transform_0(%arg0: i32) -> (i32, i32) {
    %c0_i32 = arith.constant 0 : i32
    %c0_i32_0 = arith.constant 0 : i32
    return %arg0, %c0_i32 : i32, i32
  }
  func.func @transform_1(%arg0: i32) -> (i32, i32) {
    %c0_i32 = arith.constant 0 : i32
    %c0_i32_0 = arith.constant 0 : i32
    %c0_i32_1 = arith.constant 0 : i32
    return %c0_i32, %c0_i32_0 : i32, i32
  }
  func.func @transform_2(%arg0: i32) -> (i32, i32) {
    %c0_i32 = arith.constant 0 : i32
    %c0_i32_0 = arith.constant 0 : i32
    %c0_i32_1 = arith.constant 0 : i32
    return %c0_i32, %c0_i32_0 : i32, i32
  }
  func.func @transform_3(%arg0: i32) -> (i32, i32) {
    %c0_i32 = arith.constant 0 : i32
    %c0_i32_0 = arith.constant 0 : i32
    %c0_i32_1 = arith.constant 0 : i32
    return %c0_i32, %c0_i32_0 : i32, i32
  }
  func.func @transform_4(%arg0: i32) -> (i32, i32) {
    %c0_i32 = arith.constant 0 : i32
    %c0_i32_0 = arith.constant 0 : i32
    %c0_i32_1 = arith.constant 0 : i32
    return %c0_i32, %c0_i32_0 : i32, i32
  }
  func.func @transform_5(%arg0: i32) -> (i32, i32) {
    %c0_i32 = arith.constant 0 : i32
    %c0_i32_0 = arith.constant 0 : i32
    %c0_i32_1 = arith.constant 0 : i32
    return %c0_i32, %c0_i32_0 : i32, i32
  }
  func.func @transform_6(%arg0: i32) -> (i32, i32) {
    %c0_i32 = arith.constant 0 : i32
    %c0_i32_0 = arith.constant 0 : i32
    %c0_i32_1 = arith.constant 0 : i32
    return %c0_i32, %c0_i32_0 : i32, i32
  }
  func.func @transform_7(%arg0: i32) -> (i32, i32) {
    %c0_i32 = arith.constant 0 : i32
    %c0_i32_0 = arith.constant 0 : i32
    %c0_i32_1 = arith.constant 0 : i32
    return %c0_i32, %c0_i32_0 : i32, i32
  }
  func.func @transform_8(%arg0: i32) -> (i32, i32) {
    %c0_i32 = arith.constant 0 : i32
    %c0_i32_0 = arith.constant 0 : i32
    %c0_i32_1 = arith.constant 0 : i32
    return %c0_i32, %c0_i32_0 : i32, i32
  }
  func.func @transform_9(%arg0: i32) -> (i32, i32) {
    %c0_i32 = arith.constant 0 : i32
    %c0_i32_0 = arith.constant 0 : i32
    return %arg0, %c0_i32 : i32, i32
  }
}

</mosaic_0001>

<bundles_post_ra>
// kernel: discriminator_forward.1
= control target key start
LH: loop header
LB: loop body
LE: loop exit
PB: predicated region body
PF: predicated region fallthrough
CT: control target
= control target key end

     0   :  { %14 = vsyncpa [#allocation3], 0  ;;  %s8295_s0 = inlined_call_operand.vmem [shape: bf16[16,896], index: 0, kind: input, shape index: {}]   ;;  %s8296_s1 = inlined_call_operand.hbm [shape: bf16[896,1024], index: 1, kind: input, shape index: {}]   ;;  %s8297_s2 = inlined_call_operand.hbm [shape: f32[1,1024], index: 2, kind: input, shape index: {}]   ;;  %s8298_s3 = inlined_call_operand.hbm [shape: bf16[1024,512], index: 3, kind: input, shape index: {}]   ;;  %s8299_s4 = inlined_call_operand.hbm [shape: f32[1,512], index: 4, kind: input, shape index: {}]   ;;  %s8300_s5 = inlined_call_operand.hbm [shape: bf16[512,256], index: 5, kind: input, shape index: {}]   ;;  %s8301_s6 = inlined_call_operand.hbm [shape: f32[1,256], index: 6, kind: input, shape index: {}]   ;;  %s8302_s7 = inlined_call_operand.hbm [shape: bf16[256,128], index: 7, kind: input, shape index: {}]   ;;  %s8303_s8 = inlined_call_operand.hbm [shape: f32[1,128], index: 8, kind: input, shape index: {}]   ;;  %s8304_s9 = inlined_call_operand.vmem [shape: bf16[16,128], index: 9, kind: output, shape index: {}]  }
   0x1   :  { %15 = vsyncpa [#allocation5], 0 }
   0x2   :  { %16 = vsyncpa [#allocation8], 0 }
   0x3   :  { %17 = vsyncpa [#allocation11], 0 }
   0x4   :  { %18 = vsyncpa [#allocation14], 0  ;;  %s7944_s30 = smov [#allocation4]   ;;  %s7945_s11 = smov [#allocation7]  }
   0x5   :  { %s39_s10 = sshll.u32 %s7944_s30, 4  ;;  %s61_s12 = sshll.u32 %s7945_s11, 4  ;;  %s40_s10 = int_to_ptr.vmem [resolvable:$true] %s39_s10  ;;  %s62_s12 = int_to_ptr.vmem [resolvable:$true] %s61_s12 }
   0x6   :  { %s7758_s15 = scalar_lea.hbm %s8297_s2, 128 }
   0x7   :  { %p7759_p0 = scmp.ne.s32.totalorder %s8297_s2, %s7758_s15  ;;  %p7762_p1 = scmp.lt.u32.totalorder %s7758_s15, %s8297_s2 }
   0x9   :  { %p7764_p2 = pnand %p7762_p1, %p7759_p0 }
   0xb   :  { %7767 = shalt.err (!%p7764_p2)
}
   0xc   :  { %s7768_s20 = scalar_lea.vmem %s40_s10, 128  ;;  %p7773_p4 = scmp.lt.s32.totalorder %s40_s10, %s40_s10 }
   0xd   :  { %p7769_p3 = scmp.ne.s32.totalorder %s40_s10, %s7768_s20  ;;  %p7774_p5 = scmp.lt.s32.totalorder %s7768_s20, %s7768_s20 }
   0xf   :  { %p7775_p6 = por %p7774_p5, %p7773_p4 }
  0x11   :  { %p7776_p7 = pnand %p7775_p6, %p7769_p3 }
  0x13   :  { %7779 = shalt.err (!%p7776_p7)
}
  0x14   :  { %42 = dma.hbm_to_vmem [thread:$0]  %s8297_s2, 128, %s40_s10, [#allocation5]  }
  0x15   :  { %s7780_s25 = scalar_lea.hbm %s8299_s4, 64 }
  0x16   :  { %p7781_p8 = scmp.ne.s32.totalorder %s8299_s4, %s7780_s25  ;;  %p7784_p9 = scmp.lt.u32.totalorder %s7780_s25, %s8299_s4 }
  0x18   :  { %p7786_p10 = pnand %p7784_p9, %p7781_p8 }
  0x1a   :  { %7789 = shalt.err (!%p7786_p10)
}
  0x1b   :  { %s7790_s30 = scalar_lea.vmem %s62_s12, 64  ;;  %p7795_p12 = scmp.lt.s32.totalorder %s62_s12, %s62_s12 }
  0x1c   :  { %p7791_p11 = scmp.ne.s32.totalorder %s62_s12, %s7790_s30  ;;  %p7796_p13 = scmp.lt.s32.totalorder %s7790_s30, %s7790_s30 }
  0x1e   :  { %p7797_p0 = por %p7796_p13, %p7795_p12 }
  0x20   :  { %p7798_p1 = pnand %p7797_p0, %p7791_p11 }
  0x22   :  { %7801 = shalt.err (!%p7798_p1)
}
  0x23   :  { %64 = dma.hbm_to_vmem [thread:$0]  %s8299_s4, 64, %s62_s12, [#allocation8]  }
  0x24   :  { %s7946_s11 = smov [#allocation10]   ;;  %s7947_s14 = smov [#allocation2]  }
  0x25   :  { %s83_s13 = sshll.u32 %s7946_s11, 4  ;;  %s26_s15 = sshll.u32 %s7947_s14, 4  ;;  %s84_s13 = int_to_ptr.vmem [resolvable:$true] %s83_s13  ;;  %s8035_s15 = int_to_ptr.vmem [resolvable:$true] %s26_s15 }
  0x26   :  { %s7802_s18 = scalar_lea.hbm %s8301_s6, 32 }
  0x27   :  { %p7803_p2 = scmp.ne.s32.totalorder %s8301_s6, %s7802_s18  ;;  %p7806_p3 = scmp.lt.u32.totalorder %s7802_s18, %s8301_s6 }
  0x29   :  { %p7808_p4 = pnand %p7806_p3, %p7803_p2 }
  0x2b   :  { %7811 = shalt.err (!%p7808_p4)
}
  0x2c   :  { %s7812_s4 = scalar_lea.vmem %s84_s13, 32  ;;  %p7817_p6 = scmp.lt.s32.totalorder %s84_s13, %s84_s13 }
  0x2d   :  { %p7813_p5 = scmp.ne.s32.totalorder %s84_s13, %s7812_s4  ;;  %p7818_p7 = scmp.lt.s32.totalorder %s7812_s4, %s7812_s4 }
  0x2f   :  { %p7819_p8 = por %p7818_p7, %p7817_p6 }
  0x31   :  { %p7820_p9 = pnand %p7819_p8, %p7813_p5 }
  0x33   :  { %7823 = shalt.err (!%p7820_p9)
}
  0x34   :  { %86 = dma.hbm_to_vmem [thread:$0]  %s8301_s6, 32, %s84_s13, [#allocation11]  }
  0x35   :  { %s7824_s26 = scalar_lea.hbm %s8296_s1, 57344 }
  0x36   :  { %p7825_p10 = scmp.ne.s32.totalorder %s8296_s1, %s7824_s26  ;;  %p7828_p11 = scmp.lt.u32.totalorder %s7824_s26, %s8296_s1 }
  0x38   :  { %p7830_p12 = pnand %p7828_p11, %p7825_p10 }
  0x3a   :  { %7833 = shalt.err (!%p7830_p12)
}
  0x3b   :  { %s7834_s2 = scalar_lea.vmem %s8035_s15, 57344  ;;  %p7839_p0 = scmp.lt.s32.totalorder %s8035_s15, %s8035_s15 }
  0x3c   :  { %p7835_p13 = scmp.ne.s32.totalorder %s8035_s15, %s7834_s2  ;;  %p7840_p1 = scmp.lt.s32.totalorder %s7834_s2, %s7834_s2 }
  0x3e   :  { %p7841_p2 = por %p7840_p1, %p7839_p0 }
  0x40   :  { %p7842_p3 = pnand %p7841_p2, %p7835_p13 }
  0x42   :  { %7845 = shalt.err (!%p7842_p3)
}
  0x43   :  { %s7948_s6 = smov 512   ;;  %s7949_s10 = smov 32  }
  0x44   :  { %32 = dma.hbm_to_vmem [thread:$0]  %s8296_s1, 57344, %s8035_s15, [#allocation3], %s7948_s6, %s7948_s6, %s7949_s10  }
  0x45   :  { %s7950_s14 = smov [#allocation6]   ;;  %s7846_s19 = scalar_lea.hbm %s8298_s3, 32768 }
  0x46   :  { %s48_s16 = sshll.u32 %s7950_s14, 4  ;;  %p7847_p4 = scmp.ne.s32.totalorder %s8298_s3, %s7846_s19  ;;  %s49_s16 = int_to_ptr.vmem [resolvable:$true] %s48_s16 }
  0x47   :  { %p7850_p5 = scmp.lt.u32.totalorder %s7846_s19, %s8298_s3 }
  0x49   :  { %p7852_p6 = pnand %p7850_p5, %p7847_p4 }
  0x4b   :  { %7855 = shalt.err (!%p7852_p6)
}
  0x4c   :  { %s7856_s12 = scalar_lea.vmem %s49_s16, 32768  ;;  %p7861_p8 = scmp.lt.s32.totalorder %s49_s16, %s49_s16 }
  0x4d   :  { %p7857_p7 = scmp.ne.s32.totalorder %s49_s16, %s7856_s12  ;;  %p7862_p9 = scmp.lt.s32.totalorder %s7856_s12, %s7856_s12 }
  0x4f   :  { %p7863_p10 = por %p7862_p9, %p7861_p8 }
  0x51   :  { %p7864_p11 = pnand %p7863_p10, %p7857_p7 }
  0x53   :  { %7867 = shalt.err (!%p7864_p11)
}
  0x54   :  { %s7951_s1 = smov 256   ;;  %s7952_s15 = smov 16  }
  0x55   :  { %54 = dma.hbm_to_vmem [thread:$0]  %s8298_s3, 32768, %s49_s16, [#allocation5], %s7951_s1, %s7951_s1, %s7952_s15  }
  0x56   :  { %s7953_s25 = smov [#allocation9]   ;;  %s7868_s29 = scalar_lea.hbm %s8300_s5, 8192 }
  0x57   :  { %s70_s26 = sshll.u32 %s7953_s25, 4  ;;  %p7869_p12 = scmp.ne.s32.totalorder %s8300_s5, %s7868_s29  ;;  %s71_s26 = int_to_ptr.vmem [resolvable:$true] %s70_s26 }
  0x58   :  { %p7872_p13 = scmp.lt.u32.totalorder %s7868_s29, %s8300_s5 }
  0x5a   :  { %p7874_p0 = pnand %p7872_p13, %p7869_p12 }
  0x5c   :  { %7877 = shalt.err (!%p7874_p0)
}
  0x5d   :  { %s7878_s11 = scalar_lea.vmem %s71_s26, 8192  ;;  %p7883_p2 = scmp.lt.s32.totalorder %s71_s26, %s71_s26 }
  0x5e   :  { %p7879_p1 = scmp.ne.s32.totalorder %s71_s26, %s7878_s11  ;;  %p7884_p3 = scmp.lt.s32.totalorder %s7878_s11, %s7878_s11 }
  0x60   :  { %p7885_p4 = por %p7884_p3, %p7883_p2 }
  0x62   :  { %p7886_p5 = pnand %p7885_p4, %p7879_p1 }
  0x64   :  { %7889 = shalt.err (!%p7886_p5)
}
  0x65   :  { %s7954_s3 = smov 128   ;;  %s7955_s13 = smov 8  }
  0x66   :  { %76 = dma.hbm_to_vmem [thread:$0]  %s8300_s5, 8192, %s71_s26, [#allocation8], %s7954_s3, %s7954_s3, %s7955_s13  }
  0x67   :  { %s7956_s17 = smov [#allocation12]   ;;  %s7890_s21 = scalar_lea.hbm %s8302_s7, 2048 }
  0x68   :  { %s92_s18 = sshll.u32 %s7956_s17, 4  ;;  %p7891_p6 = scmp.ne.s32.totalorder %s8302_s7, %s7890_s21  ;;  %s93_s18 = int_to_ptr.vmem [resolvable:$true] %s92_s18 }
  0x69   :  { %p7894_p7 = scmp.lt.u32.totalorder %s7890_s21, %s8302_s7 }
  0x6b   :  { %p7896_p8 = pnand %p7894_p7, %p7891_p6 }
  0x6d   :  { %7899 = shalt.err (!%p7896_p8)
}
  0x6e   :  { %s7900_s15 = scalar_lea.vmem %s93_s18, 2048  ;;  %p7905_p10 = scmp.lt.s32.totalorder %s93_s18, %s93_s18 }
  0x6f   :  { %p7901_p9 = scmp.ne.s32.totalorder %s93_s18, %s7900_s15  ;;  %p7906_p11 = scmp.lt.s32.totalorder %s7900_s15, %s7900_s15 }
  0x71   :  { %p7907_p12 = por %p7906_p11, %p7905_p10 }
  0x73   :  { %p7908_p13 = pnand %p7907_p12, %p7901_p9 }
  0x75   :  { %7911 = shalt.err (!%p7908_p13)
}
  0x76   :  { %s7957_s5 = smov 64   ;;  %s7958_s23 = smov 4  }
  0x77   :  { %98 = dma.hbm_to_vmem [thread:$0]  %s8302_s7, 2048, %s93_s18, [#allocation11], %s7957_s5, %s7957_s5, %s7958_s23  }
  0x78   :  { %s7959_s26 = smov [#allocation13]   ;;  %s7912_s30 = scalar_lea.hbm %s8303_s8, 16 }
  0x79   :  { %s105_s27 = sshll.u32 %s7959_s26, 4  ;;  %p7913_p0 = scmp.ne.s32.totalorder %s8303_s8, %s7912_s30  ;;  %s106_s27 = int_to_ptr.vmem [resolvable:$true] %s105_s27 }
  0x7a   :  { %p7916_p1 = scmp.lt.u32.totalorder %s7912_s30, %s8303_s8 }
  0x7c   :  { %p7918_p2 = pnand %p7916_p1, %p7913_p0 }
  0x7e   :  { %7921 = shalt.err (!%p7918_p2)
}
  0x7f   :  { %s7922_s3 = scalar_lea.vmem %s106_s27, 16  ;;  %s7926_s7 = scalar_lea.vmem %s106_s27, 32 }
  0x80   :  { %p7923_p3 = scmp.ne.s32.totalorder %s106_s27, %s7922_s3  ;;  %p7927_p4 = scmp.lt.s32.totalorder %s106_s27, %s106_s27 }
  0x81   :  { %p7928_p5 = scmp.lt.s32.totalorder %s7926_s7, %s7922_s3 }
  0x83   :  { %p7929_p6 = por %p7928_p5, %p7927_p4 }
  0x85   :  { %p7930_p7 = pnand %p7929_p6, %p7923_p3 }
  0x87   :  { %7933 = shalt.err (!%p7930_p7)
}
  0x88   :  { %108 = dma.hbm_to_vmem [thread:$0]  %s8303_s8, 16, %s106_s27, [#allocation14]  }
  0x89   :  { %7934 = dma.done.wait [#allocation3], 57344  }
  0x8a   :  { %7935 = vsyncadd [#allocation3], 4294909952 }
  0x8b   :  { %7936 = dma.done.wait [#allocation5], 32896  }
  0x8c   :  { %7937 = vsyncadd [#allocation5], 4294934400 }
  0x8d   :  { %7938 = dma.done.wait [#allocation8], 8256  }
  0x8e   :  { %7939 = vsyncadd [#allocation8], 4294959040 }
  0x8f   :  { %7940 = dma.done.wait [#allocation11], 2080  }
  0x90   :  { %7941 = vsyncadd [#allocation11], 4294965216 }
  0x91   :  { %7942 = dma.done.wait [#allocation14], 16  }
  0x92   :  { %7943 = vsyncadd [#allocation14], 4294967280  ;;  %v142_v0 = vld [vmem:[#allocation2] sm:$0xff]  ;;  %v8122_v59 = vld [vmem:[%s8295_s0 + $0xc] ss:$28 sps:$4 sm:$0xff]  }
  0x93   :  { %v146_v1 = vld [vmem:[#allocation2 + $0x20] sm:$0xff]  ;;  %2983 = vmatprep.mubr.bf16.mxu0 %v8122_v59 }
  0x94   :  { %v270_v2 = vld [vmem:[#allocation2 + $0x400] sm:$0xff]  ;;  %v6293_v3 = vcombine.high %v142_v0, %v146_v1  ;;  %v6292_v5 = vcombine.low %v142_v0, %v146_v1 }
  0x95   :  { %v274_v4 = vld [vmem:[#allocation2 + $0x420] sm:$0xff] }
  0x96   :  { %v150_v6 = vld [vmem:[#allocation2 + $0x40] sm:$0xff]  ;;  %v6421_v8 = vcombine.high %v270_v2, %v274_v4  ;;  %v6420_v9 = vcombine.low %v270_v2, %v274_v4  ;;  %2908 = vmatprep.subr.bf16.mxu1 %v6293_v3 }
  0x97   :  { %v154_v7 = vld [vmem:[#allocation2 + $0x60] sm:$0xff]  ;;  %2909 = vmatpush1.bf16.msra.mxu1 %v6292_v5 }
  0x98   :  { %v6301_v10 = vcombine.high %v150_v6, %v154_v7  ;;  %v278_v11 = vld [vmem:[#allocation2 + $0x440] sm:$0xff]  ;;  %2951 = vmatprep.subr.bf16.mxu0 %v6421_v8  ;;  %v6300_v18 = vcombine.low %v150_v6, %v154_v7 }
  0x99   :  { %v282_v12 = vld [vmem:[#allocation2 + $0x460] sm:$0xff]  ;;  %2952 = vmatpush1.bf16.msra.mxu0 %v6420_v9 }
  0x9a   :  { %v158_v13 = vld [vmem:[#allocation2 + $0x80] sm:$0xff]  ;;  %v6429_v14 = vcombine.high %v278_v11, %v282_v12  ;;  %2910 = vmatprep.subr.bf16.mxu1 %v6301_v10  ;;  %v6428_v19 = vcombine.low %v278_v11, %v282_v12 }
  0x9b   :  { %v162_v15 = vld [vmem:[#allocation2 + $0xa0] sm:$0xff]  ;;  %2911 = vmatpush1.bf16.msra.mxu1 %v6300_v18 }
  0x9c   :  { %v286_v16 = vld [vmem:[#allocation2 + $0x480] sm:$0xff]  ;;  %v6309_v20 = vcombine.high %v158_v13, %v162_v15  ;;  %2953 = vmatprep.subr.bf16.mxu0 %v6429_v14  ;;  %v6308_v26 = vcombine.low %v158_v13, %v162_v15 }
  0x9d   :  { %v290_v17 = vld [vmem:[#allocation2 + $0x4a0] sm:$0xff]  ;;  %2954 = vmatpush1.bf16.msra.mxu0 %v6428_v19 }
  0x9e   :  { %v6437_v21 = vcombine.high %v286_v16, %v290_v17  ;;  %v166_v22 = vld [vmem:[#allocation2 + $0xc0] sm:$0xff]  ;;  %2912 = vmatprep.subr.bf16.mxu1 %v6309_v20  ;;  %v6436_v27 = vcombine.low %v286_v16, %v290_v17 }
  0x9f   :  { %v170_v23 = vld [vmem:[#allocation2 + $0xe0] sm:$0xff]  ;;  %2913 = vmatpush1.bf16.msra.mxu1 %v6308_v26 }
  0xa0   :  { %v294_v24 = vld [vmem:[#allocation2 + $0x4c0] sm:$0xff]  ;;  %v6317_v28 = vcombine.high %v166_v22, %v170_v23  ;;  %2955 = vmatprep.subr.bf16.mxu0 %v6437_v21  ;;  %v6316_v34 = vcombine.low %v166_v22, %v170_v23 }
  0xa1   :  { %v298_v25 = vld [vmem:[#allocation2 + $0x4e0] sm:$0xff]  ;;  %2956 = vmatpush1.bf16.msra.mxu0 %v6436_v27 }
  0xa2   :  { %v6445_v29 = vcombine.high %v294_v24, %v298_v25  ;;  %v174_v30 = vld [vmem:[#allocation2 + $0x100] sm:$0xff]  ;;  %2914 = vmatprep.subr.bf16.mxu1 %v6317_v28  ;;  %v6444_v35 = vcombine.low %v294_v24, %v298_v25 }
  0xa3   :  { %v178_v31 = vld [vmem:[#allocation2 + $0x120] sm:$0xff]  ;;  %2915 = vmatpush1.bf16.msra.mxu1 %v6316_v34 }
  0xa4   :  { %v302_v32 = vld [vmem:[#allocation2 + $0x500] sm:$0xff]  ;;  %v6325_v36 = vcombine.high %v174_v30, %v178_v31  ;;  %2957 = vmatprep.subr.bf16.mxu0 %v6445_v29  ;;  %v6324_v42 = vcombine.low %v174_v30, %v178_v31 }
  0xa5   :  { %v306_v33 = vld [vmem:[#allocation2 + $0x520] sm:$0xff]  ;;  %2958 = vmatpush1.bf16.msra.mxu0 %v6444_v35 }
  0xa6   :  { %v6453_v37 = vcombine.high %v302_v32, %v306_v33  ;;  %v182_v38 = vld [vmem:[#allocation2 + $0x140] sm:$0xff]  ;;  %2916 = vmatprep.subr.bf16.mxu1 %v6325_v36  ;;  %v6452_v43 = vcombine.low %v302_v32, %v306_v33 }
  0xa7   :  { %v186_v39 = vld [vmem:[#allocation2 + $0x160] sm:$0xff]  ;;  %2917 = vmatpush1.bf16.msra.mxu1 %v6324_v42 }
  0xa8   :  { %v310_v40 = vld [vmem:[#allocation2 + $0x540] sm:$0xff]  ;;  %v6333_v44 = vcombine.high %v182_v38, %v186_v39  ;;  %2959 = vmatprep.subr.bf16.mxu0 %v6453_v37  ;;  %v6332_v50 = vcombine.low %v182_v38, %v186_v39 }
  0xa9   :  { %v314_v41 = vld [vmem:[#allocation2 + $0x560] sm:$0xff]  ;;  %2960 = vmatpush1.bf16.msra.mxu0 %v6452_v43 }
  0xaa   :  { %v6461_v45 = vcombine.high %v310_v40, %v314_v41  ;;  %v190_v46 = vld [vmem:[#allocation2 + $0x180] sm:$0xff]  ;;  %2918 = vmatprep.subr.bf16.mxu1 %v6333_v44  ;;  %v6460_v52 = vcombine.low %v310_v40, %v314_v41 }
  0xab   :  { %v194_v47 = vld [vmem:[#allocation2 + $0x1a0] sm:$0xff]  ;;  %2919 = vmatpush1.bf16.msra.mxu1 %v6332_v50 }
  0xac   :  { %v318_v48 = vld [vmem:[#allocation2 + $0x580] sm:$0xff]  ;;  %v6341_v53 = vcombine.high %v190_v46, %v194_v47  ;;  %2961 = vmatprep.subr.bf16.mxu0 %v6461_v45  ;;  %v6340_v60 = vcombine.low %v190_v46, %v194_v47 }
  0xad   :  { %v322_v49 = vld [vmem:[#allocation2 + $0x5a0] sm:$0xff]  ;;  %2962 = vmatpush1.bf16.msra.mxu0 %v6460_v52 }
  0xae   :  { %v198_v51 = vld [vmem:[#allocation2 + $0x1c0] sm:$0xff]  ;;  %v6469_v55 = vcombine.high %v318_v48, %v322_v49  ;;  %2920 = vmatprep.subr.bf16.mxu1 %v6341_v53  ;;  %v6468_v61 = vcombine.low %v318_v48, %v322_v49 }
  0xaf   :  { %v202_v54 = vld [vmem:[#allocation2 + $0x1e0] sm:$0xff]  ;;  %2921 = vmatpush1.bf16.msra.mxu1 %v6340_v60 }
  0xb0   :  { %v326_v56 = vld [vmem:[#allocation2 + $0x5c0] sm:$0xff]  ;;  %v6349_v62 = vcombine.high %v198_v51, %v202_v54  ;;  %2963 = vmatprep.subr.bf16.mxu0 %v6469_v55  ;;  %v6348_v4 = vcombine.low %v198_v51, %v202_v54 }
  0xb1   :  { %v8117_v57 = vld [vmem:[%s8295_s0 + $0x4] ss:$28 sps:$4 sm:$0xff]   ;;  %2964 = vmatpush1.bf16.msra.mxu0 %v6468_v61 }
  0xb2   :  { %v330_v58 = vld [vmem:[#allocation2 + $0x5e0] sm:$0xff]  ;;  %2940 = vmatprep.mubr.bf16.mxu1 %v8117_v57  ;;  %2922 = vmatprep.subr.bf16.mxu1 %v6349_v62 }
  0xb3   :  { %v6477_v63 = vcombine.high %v326_v56, %v330_v58  ;;  %v206_v0 = vld [vmem:[#allocation2 + $0x200] sm:$0xff]  ;;  %v6476_v5 = vcombine.low %v326_v56, %v330_v58  ;;  %2923 = vmatpush1.bf16.msra.mxu1 %v6348_v4 }
  0xb4   :  { %v210_v1 = vld [vmem:[#allocation2 + $0x220] sm:$0xff] }
  0xb5   :  { %v334_v2 = vld [vmem:[#allocation2 + $0x600] sm:$0xff]  ;;  %v6357_v6 = vcombine.high %v206_v0, %v210_v1  ;;  %2965 = vmatprep.subr.bf16.mxu0 %v6477_v63  ;;  %v6356_v12 = vcombine.low %v206_v0, %v210_v1 }
  0xb6   :  { %v338_v3 = vld [vmem:[#allocation2 + $0x620] sm:$0xff]  ;;  %2966 = vmatpush1.bf16.msra.mxu0 %v6476_v5 }
  0xb7   :  { %v6485_v7 = vcombine.high %v334_v2, %v338_v3  ;;  %v214_v8 = vld [vmem:[#allocation2 + $0x240] sm:$0xff]  ;;  %2924 = vmatprep.subr.bf16.mxu1 %v6357_v6  ;;  %v6484_v13 = vcombine.low %v334_v2, %v338_v3  ;;  %v143_v2 = vld [vmem:[#allocation2 + $0x8] sm:$0xff] }
  0xb8   :  { %v218_v9 = vld [vmem:[#allocation2 + $0x260] sm:$0xff]  ;;  %2925 = vmatpush1.bf16.msra.mxu1 %v6356_v12  ;;  %v147_v3 = vld [vmem:[#allocation2 + $0x28] sm:$0xff] }
  0xb9   :  { %v342_v10 = vld [vmem:[#allocation2 + $0x640] sm:$0xff]  ;;  %v6365_v14 = vcombine.high %v214_v8, %v218_v9  ;;  %2967 = vmatprep.subr.bf16.mxu0 %v6485_v7  ;;  %v6364_v20 = vcombine.low %v214_v8, %v218_v9  ;;  %v6295_v8 = vcombine.high %v143_v2, %v147_v3 }
  0xba   :  { %v346_v11 = vld [vmem:[#allocation2 + $0x660] sm:$0xff]  ;;  %2968 = vmatpush1.bf16.msra.mxu0 %v6484_v13 }
  0xbb   :  { %v6493_v15 = vcombine.high %v342_v10, %v346_v11  ;;  %v222_v16 = vld [vmem:[#allocation2 + $0x280] sm:$0xff]  ;;  %2926 = vmatprep.subr.bf16.mxu1 %v6365_v14  ;;  %v6492_v21 = vcombine.low %v342_v10, %v346_v11  ;;  %v151_v10 = vld [vmem:[#allocation2 + $0x48] sm:$0xff] }
  0xbc   :  { %v226_v17 = vld [vmem:[#allocation2 + $0x2a0] sm:$0xff]  ;;  %2927 = vmatpush1.bf16.msra.mxu1 %v6364_v20  ;;  %v155_v11 = vld [vmem:[#allocation2 + $0x68] sm:$0xff] }
  0xbd   :  { %v350_v18 = vld [vmem:[#allocation2 + $0x680] sm:$0xff]  ;;  %v6373_v22 = vcombine.high %v222_v16, %v226_v17  ;;  %2969 = vmatprep.subr.bf16.mxu0 %v6493_v15  ;;  %v6372_v28 = vcombine.low %v222_v16, %v226_v17  ;;  %v6294_v15 = vcombine.low %v143_v2, %v147_v3  ;;  %v159_v20 = vld [vmem:[#allocation2 + $0x88] sm:$0xff] }
  0xbe   :  { %v354_v19 = vld [vmem:[#allocation2 + $0x6a0] sm:$0xff]  ;;  %2970 = vmatpush1.bf16.msra.mxu0 %v6492_v21  ;;  %v163_v21 = vld [vmem:[#allocation2 + $0xa8] sm:$0xff] }
  0xbf   :  { %v6501_v23 = vcombine.high %v350_v18, %v354_v19  ;;  %v230_v24 = vld [vmem:[#allocation2 + $0x2c0] sm:$0xff]  ;;  %2928 = vmatprep.subr.bf16.mxu1 %v6373_v22  ;;  %v6500_v29 = vcombine.low %v350_v18, %v354_v19  ;;  %v6303_v18 = vcombine.high %v151_v10, %v155_v11  ;;  %v7237_v22 = vld [vmem:[%s8295_s0 + $0x14] ss:$28 sps:$4 sm:$0xff]  }
  0xc0   :  { %v234_v25 = vld [vmem:[#allocation2 + $0x2e0] sm:$0xff]  ;;  %2929 = vmatpush1.bf16.msra.mxu1 %v6372_v28 }
  0xc1   :  { %v358_v26 = vld [vmem:[#allocation2 + $0x6c0] sm:$0xff]  ;;  %v6381_v30 = vcombine.high %v230_v24, %v234_v25  ;;  %2971 = vmatprep.subr.bf16.mxu0 %v6501_v23  ;;  %v6380_v36 = vcombine.low %v230_v24, %v234_v25  ;;  %v6302_v25 = vcombine.low %v151_v10, %v155_v11 }
  0xc2   :  { %v362_v27 = vld [vmem:[#allocation2 + $0x6e0] sm:$0xff]  ;;  %2972 = vmatpush1.bf16.msra.mxu0 %v6500_v29  ;;  %v167_v29 = vld [vmem:[#allocation2 + $0xc8] sm:$0xff] }
  0xc3   :  { %v6509_v31 = vcombine.high %v358_v26, %v362_v27  ;;  %v238_v32 = vld [vmem:[#allocation2 + $0x300] sm:$0xff]  ;;  %2930 = vmatprep.subr.bf16.mxu1 %v6381_v30  ;;  %v6508_v37 = vcombine.low %v358_v26, %v362_v27  ;;  %v6311_v27 = vcombine.high %v159_v20, %v163_v21  ;;  %v171_v30 = vld [vmem:[#allocation2 + $0xe8] sm:$0xff] }
  0xc4   :  { %v242_v33 = vld [vmem:[#allocation2 + $0x320] sm:$0xff]  ;;  %2931 = vmatpush1.bf16.msra.mxu1 %v6380_v36 }
  0xc5   :  { %v366_v34 = vld [vmem:[#allocation2 + $0x700] sm:$0xff]  ;;  %v6389_v38 = vcombine.high %v238_v32, %v242_v33  ;;  %2973 = vmatprep.subr.bf16.mxu0 %v6509_v31  ;;  %v6388_v44 = vcombine.low %v238_v32, %v242_v33  ;;  %v6310_v33 = vcombine.low %v159_v20, %v163_v21 }
  0xc6   :  { %v370_v35 = vld [vmem:[#allocation2 + $0x720] sm:$0xff]  ;;  %2974 = vmatpush1.bf16.msra.mxu0 %v6508_v37 }
  0xc7   :  { %v6517_v39 = vcombine.high %v366_v34, %v370_v35  ;;  %v246_v40 = vld [vmem:[#allocation2 + $0x340] sm:$0xff]  ;;  %2932 = vmatprep.subr.bf16.mxu1 %v6389_v38  ;;  %v6516_v45 = vcombine.low %v366_v34, %v370_v35  ;;  %v6319_v35 = vcombine.high %v167_v29, %v171_v30  ;;  %v175_v38 = vld [vmem:[#allocation2 + $0x108] sm:$0xff] }
  0xc8   :  { %v250_v41 = vld [vmem:[#allocation2 + $0x360] sm:$0xff]  ;;  %2933 = vmatpush1.bf16.msra.mxu1 %v6388_v44 }
  0xc9   :  { %v374_v42 = vld [vmem:[#allocation2 + $0x740] sm:$0xff]  ;;  %v6397_v46 = vcombine.high %v246_v40, %v250_v41  ;;  %2975 = vmatprep.subr.bf16.mxu0 %v6517_v39  ;;  %v6396_v52 = vcombine.low %v246_v40, %v250_v41  ;;  %v179_v40 = vld [vmem:[#allocation2 + $0x128] sm:$0xff]  ;;  %v6318_v41 = vcombine.low %v167_v29, %v171_v30 }
  0xca   :  { %v378_v43 = vld [vmem:[#allocation2 + $0x760] sm:$0xff]  ;;  %2976 = vmatpush1.bf16.msra.mxu0 %v6516_v45  ;;  %v183_v45 = vld [vmem:[#allocation2 + $0x148] sm:$0xff] }
  0xcb   :  { %v6525_v47 = vcombine.high %v374_v42, %v378_v43  ;;  %v254_v48 = vld [vmem:[#allocation2 + $0x380] sm:$0xff]  ;;  %2934 = vmatprep.subr.bf16.mxu1 %v6397_v46  ;;  %v6524_v53 = vcombine.low %v374_v42, %v378_v43  ;;  %v6327_v43 = vcombine.high %v175_v38, %v179_v40 }
  0xcc   :  { %v258_v49 = vld [vmem:[#allocation2 + $0x3a0] sm:$0xff]  ;;  %2935 = vmatpush1.bf16.msra.mxu1 %v6396_v52 }
  0xcd   :  { %v382_v50 = vld [vmem:[#allocation2 + $0x780] sm:$0xff]  ;;  %v6405_v54 = vcombine.high %v254_v48, %v258_v49  ;;  %2977 = vmatprep.subr.bf16.mxu0 %v6525_v47  ;;  %v6404_v62 = vcombine.low %v254_v48, %v258_v49  ;;  %v187_v47 = vld [vmem:[#allocation2 + $0x168] sm:$0xff]  ;;  %v6326_v48 = vcombine.low %v175_v38, %v179_v40 }
  0xce   :  { %v386_v51 = vld [vmem:[#allocation2 + $0x7a0] sm:$0xff]  ;;  %2978 = vmatpush1.bf16.msra.mxu0 %v6524_v53  ;;  %v191_v53 = vld [vmem:[#allocation2 + $0x188] sm:$0xff] }
  0xcf   :  { %v6533_v55 = vcombine.high %v382_v50, %v386_v51  ;;  %v262_v56 = vld [vmem:[#allocation2 + $0x3c0] sm:$0xff]  ;;  %2936 = vmatprep.subr.bf16.mxu1 %v6405_v54  ;;  %v6532_v63 = vcombine.low %v382_v50, %v386_v51  ;;  %v6335_v50 = vcombine.high %v183_v45, %v187_v47  ;;  %v239_v40 = vld [vmem:[#allocation2 + $0x308] sm:$0xff] }
  0xd0   :  { %v266_v58 = vld [vmem:[#allocation2 + $0x3e0] sm:$0xff]  ;;  %2937 = vmatpush1.bf16.msra.mxu1 %v6404_v62 }
  0xd1   :  { %v390_v60 = vld [vmem:[#allocation2 + $0x7c0] sm:$0xff]  ;;  %v6413_v0 = vcombine.high %v262_v56, %v266_v58  ;;  %2979 = vmatprep.subr.bf16.mxu0 %v6533_v55  ;;  %v6412_v6 = vcombine.low %v262_v56, %v266_v58  ;;  %v195_v55 = vld [vmem:[#allocation2 + $0x1a8] sm:$0xff]  ;;  %v6334_v56 = vcombine.low %v183_v45, %v187_v47 }
  0xd2   :  { %v394_v61 = vld [vmem:[#allocation2 + $0x7e0] sm:$0xff]  ;;  %2980 = vmatpush1.bf16.msra.mxu0 %v6532_v63  ;;  %v199_v63 = vld [vmem:[#allocation2 + $0x1c8] sm:$0xff]  ;;  %v6342_v2 = vcombine.low %v191_v53, %v195_v55 }
  0xd3   :  { %v6541_v1 = vcombine.high %v390_v60, %v394_v61  ;;  %v398_v4 = vld [vmem:[#allocation2 + $0x800] sm:$0xff]  ;;  %2938 = vmatprep.subr.bf16.mxu1 %v6413_v0  ;;  %v6540_v7 = vcombine.low %v390_v60, %v394_v61  ;;  %v6343_v60 = vcombine.high %v191_v53, %v195_v55  ;;  %v247_v47 = vld [vmem:[#allocation2 + $0x348] sm:$0xff] }
  0xd4   :  { %v402_v5 = vld [vmem:[#allocation2 + $0x820] sm:$0xff]  ;;  %2939 = vmatpush1.bf16.msra.mxu1 %v6412_v6  ;;  %v255_v55 = vld [vmem:[#allocation2 + $0x388] sm:$0xff] }
  0xd5   :  { %2981 = vmatprep.subr.bf16.mxu0 %v6541_v1  ;;  %v6549_v9 = vcombine.high %v398_v4, %v402_v5  ;;  %v8129_v12 = vld [vmem:[%s8295_s0] ss:$28 sps:$4 sm:$0xff]   ;;  %v7236_v16 = vld [vmem:[%s8295_s0 + $0x8] ss:$28 sps:$4 sm:$0xff]   ;;  %v6548_v17 = vcombine.low %v398_v4, %v402_v5  ;;  %3080 = vmatprep.subr.bf16.mxu1 %v6295_v8 }
  0xd6   :  { %v406_v13 = vld [vmem:[#allocation2 + $0x840] sm:$0xff]  ;;  %2982 = vmatpush1.bf16.msra.mxu0 %v6540_v7  ;;  %v203_v1 = vld [vmem:[#allocation2 + $0x1e8] sm:$0xff] }
  0xd7   :  { %v410_v14 = vld [vmem:[#allocation2 + $0x860] sm:$0xff]  ;;  %2994 = vmatprep.subr.bf16.mxu0 %v6549_v9  ;;  %2941 = vmatmul.mubr.bf16.vlgmr.msra.gmra.mrb[0].mxu1 %v8129_v12  ;;  %v6351_v4 = vcombine.high %v199_v63, %v203_v1  ;;  %v207_v7 = vld [vmem:[#allocation2 + $0x208] sm:$0xff]  ;;  %v6350_v10 = vcombine.low %v199_v63, %v203_v1 }
  0xd8   :  { %v6557_v19 = vcombine.high %v406_v13, %v410_v14  ;;  %v414_v23 = vld [vmem:[#allocation2 + $0x880] sm:$0xff]  ;;  %3081 = vmatpush1.bf16.msra.mxu1 %v6294_v15  ;;  %v6556_v26 = vcombine.low %v406_v13, %v410_v14  ;;  %3112 = vmatprep.mubr.bf16.mxu1 %v8117_v57  ;;  %v211_v9 = vld [vmem:[#allocation2 + $0x228] sm:$0xff] }
  0xd9   :  { %v418_v24 = vld [vmem:[#allocation2 + $0x8a0] sm:$0xff]  ;;  %2984 = vmatmul.mubr.bf16.vlgmr.msra.gmra.mrb[0].mxu0 %v7236_v16  ;;  %3082 = vmatprep.subr.bf16.mxu1 %v6303_v18  ;;  %v6359_v13 = vcombine.high %v207_v7, %v211_v9  ;;  %v215_v16 = vld [vmem:[#allocation2 + $0x248] sm:$0xff] }
  0xda   :  { %2995 = vmatpush1.bf16.msra.mxu0 %v6548_v17  ;;  %v6565_v28 = vcombine.high %v414_v23, %v418_v24  ;;  %3026 = vmatprep.mubr.bf16.mxu0 %v7237_v22  ;;  %v422_v31 = vld [vmem:[#allocation2 + $0x8c0] sm:$0xff]  ;;  %v6564_v34 = vcombine.low %v414_v23, %v418_v24  ;;  %v219_v18 = vld [vmem:[#allocation2 + $0x268] sm:$0xff] }
  0xdb   :  { %2996 = vmatprep.subr.bf16.mxu0 %v6557_v19  ;;  %v426_v32 = vld [vmem:[#allocation2 + $0x8e0] sm:$0xff]  ;;  %v6358_v19 = vcombine.low %v207_v7, %v211_v9  ;;  %v6367_v21 = vcombine.high %v215_v16, %v219_v18  ;;  %v223_v24 = vld [vmem:[#allocation2 + $0x288] sm:$0xff] }
  0xdc   :  { %3083 = vmatpush1.bf16.msra.mxu1 %v6302_v25  ;;  %v430_v36 = vld [vmem:[#allocation2 + $0x900] sm:$0xff]  ;;  %v6573_v39 = vcombine.high %v422_v31, %v426_v32  ;;  %v6572_v42 = vcombine.low %v422_v31, %v426_v32  ;;  %v231_v32 = vld [vmem:[#allocation2 + $0x2c8] sm:$0xff] }
  0xdd   :  { %3084 = vmatprep.subr.bf16.mxu1 %v6311_v27  ;;  %v434_v37 = vld [vmem:[#allocation2 + $0x920] sm:$0xff]  ;;  %v6366_v27 = vcombine.low %v215_v16, %v219_v18  ;;  %v263_v1 = vld [vmem:[#allocation2 + $0x3c8] sm:$0xff] }
  0xde   :  { %2997 = vmatpush1.bf16.msra.mxu0 %v6556_v26  ;;  %v438_v44 = vld [vmem:[#allocation2 + $0x940] sm:$0xff]  ;;  %v6581_v46 = vcombine.high %v430_v36, %v434_v37  ;;  %v6580_v49 = vcombine.low %v430_v36, %v434_v37  ;;  %v227_v26 = vld [vmem:[#allocation2 + $0x2a8] sm:$0xff] }
  0xdf   :  { %2998 = vmatprep.subr.bf16.mxu0 %v6565_v28  ;;  %v442_v57 = vld [vmem:[#allocation2 + $0x960] sm:$0xff]  ;;  %v6375_v29 = vcombine.high %v223_v24, %v227_v26  ;;  %v271_v9 = vld [vmem:[#allocation2 + $0x408] sm:$0xff] }
  0xe0   :  { %3085 = vmatpush1.bf16.msra.mxu1 %v6310_v33  ;;  %v446_v51 = vld [vmem:[#allocation2 + $0x980] sm:$0xff]  ;;  %v6589_v54 = vcombine.high %v438_v44, %v442_v57  ;;  %v6588_v58 = vcombine.low %v438_v44, %v442_v57  ;;  %v279_v18 = vld [vmem:[#allocation2 + $0x448] sm:$0xff] }
  0xe1   :  { %3086 = vmatprep.subr.bf16.mxu1 %v6319_v35  ;;  %v450_v52 = vld [vmem:[#allocation2 + $0x9a0] sm:$0xff]  ;;  %v6374_v35 = vcombine.low %v223_v24, %v227_v26 }
  0xe2   :  { %2999 = vmatpush1.bf16.msra.mxu0 %v6564_v34  ;;  %v454_v61 = vld [vmem:[#allocation2 + $0x9c0] sm:$0xff]  ;;  %v6597_v0 = vcombine.high %v446_v51, %v450_v52  ;;  %v6596_v3 = vcombine.low %v446_v51, %v450_v52  ;;  %v235_v34 = vld [vmem:[#allocation2 + $0x2e8] sm:$0xff] }
  0xe3   :  { %3000 = vmatprep.subr.bf16.mxu0 %v6573_v39  ;;  %v458_v62 = vld [vmem:[#allocation2 + $0x9e0] sm:$0xff]  ;;  %v6383_v37 = vcombine.high %v231_v32, %v235_v34 }
  0xe4   :  { %3087 = vmatpush1.bf16.msra.mxu1 %v6318_v41  ;;  %v462_v5 = vld [vmem:[#allocation2 + $0xa00] sm:$0xff]  ;;  %v6605_v8 = vcombine.high %v454_v61, %v458_v62  ;;  %v6604_v11 = vcombine.low %v454_v61, %v458_v62 }
  0xe5   :  { %3088 = vmatprep.subr.bf16.mxu1 %v6327_v43  ;;  %v466_v6 = vld [vmem:[#allocation2 + $0xa20] sm:$0xff]  ;;  %v6382_v43 = vcombine.low %v231_v32, %v235_v34 }
  0xe6   :  { %3001 = vmatpush1.bf16.msra.mxu0 %v6572_v42  ;;  %v470_v14 = vld [vmem:[#allocation2 + $0xa40] sm:$0xff]  ;;  %v6613_v17 = vcombine.high %v462_v5, %v466_v6  ;;  %v6612_v20 = vcombine.low %v462_v5, %v466_v6  ;;  %v243_v42 = vld [vmem:[#allocation2 + $0x328] sm:$0xff] }
  0xe7   :  { %3002 = vmatprep.subr.bf16.mxu0 %v6581_v46  ;;  %v474_v15 = vld [vmem:[#allocation2 + $0xa60] sm:$0xff]  ;;  %v6391_v57 = vcombine.high %v239_v40, %v243_v42 }
  0xe8   :  { %3089 = vmatpush1.bf16.msra.mxu1 %v6326_v48  ;;  %v478_v22 = vld [vmem:[#allocation2 + $0xa80] sm:$0xff]  ;;  %v6621_v25 = vcombine.high %v470_v14, %v474_v15  ;;  %v6620_v28 = vcombine.low %v470_v14, %v474_v15 }
  0xe9   :  { %3090 = vmatprep.subr.bf16.mxu1 %v6335_v50  ;;  %v482_v23 = vld [vmem:[#allocation2 + $0xaa0] sm:$0xff]  ;;  %v6390_v50 = vcombine.low %v239_v40, %v243_v42 }
  0xea   :  { %3003 = vmatpush1.bf16.msra.mxu0 %v6580_v49  ;;  %v486_v30 = vld [vmem:[#allocation2 + $0xac0] sm:$0xff]  ;;  %v6629_v33 = vcombine.high %v478_v22, %v482_v23  ;;  %v6628_v36 = vcombine.low %v478_v22, %v482_v23  ;;  %v251_v49 = vld [vmem:[#allocation2 + $0x368] sm:$0xff] }
  0xeb   :  { %3004 = vmatprep.subr.bf16.mxu0 %v6589_v54  ;;  %v490_v31 = vld [vmem:[#allocation2 + $0xae0] sm:$0xff]  ;;  %v6399_v52 = vcombine.high %v247_v47, %v251_v49 }
  0xec   :  { %3091 = vmatpush1.bf16.msra.mxu1 %v6334_v56  ;;  %v494_v38 = vld [vmem:[#allocation2 + $0xb00] sm:$0xff]  ;;  %v6637_v41 = vcombine.high %v486_v30, %v490_v31  ;;  %v6636_v44 = vcombine.low %v486_v30, %v490_v31 }
  0xed   :  { %3092 = vmatprep.subr.bf16.mxu1 %v6343_v60  ;;  %v498_v39 = vld [vmem:[#allocation2 + $0xb20] sm:$0xff]  ;;  %v6398_v60 = vcombine.low %v247_v47, %v251_v49  ;;  %v311_v49 = vld [vmem:[#allocation2 + $0x548] sm:$0xff] }
  0xee   :  { %3005 = vmatpush1.bf16.msra.mxu0 %v6588_v58  ;;  %v502_v45 = vld [vmem:[#allocation2 + $0xb40] sm:$0xff]  ;;  %v6645_v48 = vcombine.high %v494_v38, %v498_v39  ;;  %v6644_v51 = vcombine.low %v494_v38, %v498_v39  ;;  %v259_v58 = vld [vmem:[#allocation2 + $0x3a8] sm:$0xff]  ;;  %v7960_v38 = vmov 0  }
  0xef   :  { %3006 = vmatprep.subr.bf16.mxu0 %v6597_v0  ;;  %v506_v46 = vld [vmem:[#allocation2 + $0xb60] sm:$0xff]  ;;  %v6407_v62 = vcombine.high %v255_v55, %v259_v58 }
  0xf0   :  { %3093 = vmatpush1.bf16.msra.mxu1 %v6342_v2  ;;  %v510_v53 = vld [vmem:[#allocation2 + $0xb80] sm:$0xff]  ;;  %v6653_v56 = vcombine.high %v502_v45, %v506_v46  ;;  %v6652_v61 = vcombine.low %v502_v45, %v506_v46 }
  0xf1   :  { %3094 = vmatprep.subr.bf16.mxu1 %v6351_v4  ;;  %v514_v54 = vld [vmem:[#allocation2 + $0xba0] sm:$0xff]  ;;  %v6406_v4 = vcombine.low %v255_v55, %v259_v58  ;;  %v319_v58 = vld [vmem:[#allocation2 + $0x588] sm:$0xff] }
  0xf2   :  { %3007 = vmatpush1.bf16.msra.mxu0 %v6596_v3  ;;  %v518_v63 = vld [vmem:[#allocation2 + $0xbc0] sm:$0xff]  ;;  %v6661_v2 = vcombine.high %v510_v53, %v514_v54  ;;  %v267_v3 = vld [vmem:[#allocation2 + $0x3e8] sm:$0xff]  ;;  %v6660_v5 = vcombine.low %v510_v53, %v514_v54 }
  0xf3   :  { %3008 = vmatprep.subr.bf16.mxu0 %v6605_v8  ;;  %v522_v0 = vld [vmem:[#allocation2 + $0xbe0] sm:$0xff]  ;;  %v6415_v6 = vcombine.high %v263_v1, %v267_v3 }
  0xf4   :  { %3095 = vmatpush1.bf16.msra.mxu1 %v6350_v10  ;;  %v526_v7 = vld [vmem:[#allocation2 + $0xc00] sm:$0xff]  ;;  %v6669_v10 = vcombine.high %v518_v63, %v522_v0  ;;  %v6668_v14 = vcombine.low %v518_v63, %v522_v0 }
  0xf5   :  { %3096 = vmatprep.subr.bf16.mxu1 %v6359_v13  ;;  %v530_v8 = vld [vmem:[#allocation2 + $0xc20] sm:$0xff]  ;;  %v6414_v13 = vcombine.low %v263_v1, %v267_v3 }
  0xf6   :  { %3009 = vmatpush1.bf16.msra.mxu0 %v6604_v11  ;;  %v275_v11 = vld [vmem:[#allocation2 + $0x428] sm:$0xff]  ;;  %v534_v16 = vld [vmem:[#allocation2 + $0xc40] sm:$0xff]  ;;  %v6676_v23 = vcombine.low %v526_v7, %v530_v8 }
  0xf7   :  { %3010 = vmatprep.subr.bf16.mxu0 %v6613_v17  ;;  %v6423_v15 = vcombine.high %v271_v9, %v275_v11  ;;  %v538_v17 = vld [vmem:[#allocation2 + $0xc60] sm:$0xff]  ;;  %v6422_v22 = vcombine.low %v271_v9, %v275_v11  ;;  %v335_v9 = vld [vmem:[#allocation2 + $0x608] sm:$0xff]  ;;  %v144_v11 = vld [vmem:[#allocation2 + $0x10] sm:$0xff] }
  0xf8   :  { %3097 = vmatpush1.bf16.msra.mxu1 %v6358_v19  ;;  %v6677_v19 = vcombine.high %v526_v7, %v530_v8  ;;  %v546_v26 = vld [vmem:[#allocation2 + $0xca0] sm:$0xff]  ;;  %v6684_v31 = vcombine.low %v534_v16, %v538_v17 }
  0xf9   :  { %3098 = vmatprep.subr.bf16.mxu1 %v6367_v21  ;;  %v283_v21 = vld [vmem:[#allocation2 + $0x468] sm:$0xff]  ;;  %v554_v34 = vld [vmem:[#allocation2 + $0xce0] sm:$0xff] }
  0xfa   :  { %3011 = vmatpush1.bf16.msra.mxu0 %v6612_v20  ;;  %v7239_v20 = vld [vmem:[%s8295_s0 + $0x10] ss:$28 sps:$4 sm:$0xff]   ;;  %v6431_v24 = vcombine.high %v279_v18, %v283_v21  ;;  %v6430_v30 = vcombine.low %v279_v18, %v283_v21  ;;  %v562_v42 = vld [vmem:[#allocation2 + $0xd20] sm:$0xff]  ;;  %v7240_v21 = vld [vmem:[%s8295_s0 + $0x18] ss:$28 sps:$4 sm:$0xff]  }
  0xfb   :  { %3012 = vmatprep.subr.bf16.mxu0 %v6621_v25  ;;  %v542_v25 = vld [vmem:[#allocation2 + $0xc80] sm:$0xff]  ;;  %v343_v18 = vld [vmem:[#allocation2 + $0x648] sm:$0xff] }
  0xfc   :  { %3099 = vmatpush1.bf16.msra.mxu1 %v6366_v27  ;;  %v287_v27 = vld [vmem:[#allocation2 + $0x488] sm:$0xff]  ;;  %v6692_v39 = vcombine.low %v542_v25, %v546_v26  ;;  %v574_v55 = vld [vmem:[#allocation2 + $0xd80] sm:$0xff] }
  0xfd   :  { %3100 = vmatprep.subr.bf16.mxu1 %v6375_v29  ;;  %v291_v29 = vld [vmem:[#allocation2 + $0x4a8] sm:$0xff]  ;;  %v582_v1 = vld [vmem:[#allocation2 + $0xdc0] sm:$0xff] }
  0xfe   :  { %3013 = vmatpush1.bf16.msra.mxu0 %v6620_v28  ;;  %v6685_v28 = vcombine.high %v534_v16, %v538_v17  ;;  %v6439_v32 = vcombine.high %v287_v27, %v291_v29 }
  0xff   :  { %3014 = vmatprep.subr.bf16.mxu0 %v6629_v33  ;;  %v550_v33 = vld [vmem:[#allocation2 + $0xcc0] sm:$0xff] }
 0x100   :  { %3101 = vmatpush1.bf16.msra.mxu1 %v6374_v35  ;;  %v295_v35 = vld [vmem:[#allocation2 + $0x4c8] sm:$0xff]  ;;  %v6700_v46 = vcombine.low %v550_v33, %v554_v34 }
 0x101   :  { %3102 = vmatprep.subr.bf16.mxu1 %v6383_v37  ;;  %v299_v37 = vld [vmem:[#allocation2 + $0x4e8] sm:$0xff] }
 0x102   :  { %3015 = vmatpush1.bf16.msra.mxu0 %v6628_v36  ;;  %v6693_v36 = vcombine.high %v542_v25, %v546_v26  ;;  %v6447_v40 = vcombine.high %v295_v35, %v299_v37  ;;  %v6446_v45 = vcombine.low %v295_v35, %v299_v37  ;;  %v359_v35 = vld [vmem:[#allocation2 + $0x6c8] sm:$0xff]  ;;  %v168_v37 = vld [vmem:[#allocation2 + $0xd0] sm:$0xff] }
 0x103   :  { %3016 = vmatprep.subr.bf16.mxu0 %v6637_v41  ;;  %v558_v41 = vld [vmem:[#allocation2 + $0xd00] sm:$0xff] }
 0x104   :  { %3103 = vmatpush1.bf16.msra.mxu1 %v6382_v43  ;;  %v303_v43 = vld [vmem:[#allocation2 + $0x508] sm:$0xff]  ;;  %v6708_v53 = vcombine.low %v558_v41, %v562_v42 }
 0x105   :  { %3104 = vmatprep.subr.bf16.mxu1 %v6391_v57  ;;  %v307_v57 = vld [vmem:[#allocation2 + $0x528] sm:$0xff] }
 0x106   :  { %3017 = vmatpush1.bf16.msra.mxu0 %v6636_v44  ;;  %v6701_v44 = vcombine.high %v550_v33, %v554_v34  ;;  %v6455_v47 = vcombine.high %v303_v43, %v307_v57 }
 0x107   :  { %3018 = vmatprep.subr.bf16.mxu0 %v6645_v48  ;;  %v566_v48 = vld [vmem:[#allocation2 + $0xd40] sm:$0xff] }
 0x108   :  { %3105 = vmatpush1.bf16.msra.mxu1 %v6390_v50  ;;  %v6709_v50 = vcombine.high %v558_v41, %v562_v42 }
 0x109   :  { %3106 = vmatprep.subr.bf16.mxu1 %v6399_v52  ;;  %v6454_v52 = vcombine.low %v303_v43, %v307_v57  ;;  %v371_v57 = vld [vmem:[#allocation2 + $0x728] sm:$0xff] }
 0x10a   :  { %3019 = vmatpush1.bf16.msra.mxu0 %v6644_v51  ;;  %v315_v51 = vld [vmem:[#allocation2 + $0x568] sm:$0xff] }
 0x10b   :  { %3020 = vmatprep.subr.bf16.mxu0 %v6653_v56  ;;  %v6463_v54 = vcombine.high %v311_v49, %v315_v51  ;;  %v578_v56 = vld [vmem:[#allocation2 + $0xda0] sm:$0xff] }
 0x10c   :  { %3107 = vmatpush1.bf16.msra.mxu1 %v6398_v60  ;;  %v6725_v3 = vcombine.high %v574_v55, %v578_v56  ;;  %v6724_v7 = vcombine.low %v574_v55, %v578_v56 }
 0x10d   :  { %3108 = vmatprep.subr.bf16.mxu1 %v6407_v62  ;;  %v6462_v62 = vcombine.low %v311_v49, %v315_v51  ;;  %v379_v51 = vld [vmem:[#allocation2 + $0x768] sm:$0xff] }
 0x10e   :  { %3021 = vmatpush1.bf16.msra.mxu0 %v6652_v61  ;;  %v323_v61 = vld [vmem:[#allocation2 + $0x5a8] sm:$0xff] }
 0x10f   :  { %3022 = vmatprep.subr.bf16.mxu0 %v6661_v2  ;;  %v6471_v0 = vcombine.high %v319_v58, %v323_v61  ;;  %v586_v2 = vld [vmem:[#allocation2 + $0xde0] sm:$0xff] }
 0x110   :  { %3109 = vmatpush1.bf16.msra.mxu1 %v6406_v4  ;;  %v327_v4 = vld [vmem:[#allocation2 + $0x5c8] sm:$0xff]  ;;  %v6732_v16 = vcombine.low %v582_v1, %v586_v2 }
 0x111   :  { %3110 = vmatprep.subr.bf16.mxu1 %v6415_v6  ;;  %v6470_v6 = vcombine.low %v319_v58, %v323_v61  ;;  %v387_v61 = vld [vmem:[#allocation2 + $0x7a8] sm:$0xff] }
 0x112   :  { %3023 = vmatpush1.bf16.msra.mxu0 %v6660_v5  ;;  %v331_v5 = vld [vmem:[#allocation2 + $0x5e8] sm:$0xff] }
 0x113   :  { %3024 = vmatprep.subr.bf16.mxu0 %v6669_v10  ;;  %v6479_v8 = vcombine.high %v327_v4, %v331_v5  ;;  %v339_v10 = vld [vmem:[#allocation2 + $0x628] sm:$0xff] }
 0x114   :  { %3111 = vmatpush1.bf16.msra.mxu1 %v6414_v13  ;;  %v6733_v13 = vcombine.high %v582_v1, %v586_v2  ;;  %v6487_v17 = vcombine.high %v335_v9, %v339_v10 }
 0x115   :  { %3123 = vmatprep.subr.bf16.mxu1 %v6423_v15  ;;  %v6478_v15 = vcombine.low %v327_v4, %v331_v5  ;;  %v391_v4 = vld [vmem:[#allocation2 + $0x7c8] sm:$0xff] }
 0x116   :  { %3025 = vmatpush1.bf16.msra.mxu0 %v6668_v14  ;;  %v148_v14 = vld [vmem:[#allocation2 + $0x30] sm:$0xff]  ;;  %v395_v5 = vld [vmem:[#allocation2 + $0x7e8] sm:$0xff] }
 0x117   :  { %3037 = vmatprep.subr.bf16.mxu0 %v6677_v19  ;;  %3113 = vmatmul.mubr.bf16.vlgmr.msra.gmra.mrb[4].mxu1 %v8129_v12  ;;  %v6438_v12 = vcombine.low %v287_v27, %v291_v29  ;;  %v347_v19 = vld [vmem:[#allocation2 + $0x668] sm:$0xff]  ;;  %v6296_v25 = vcombine.low %v144_v11, %v148_v14  ;;  %v160_v29 = vld [vmem:[#allocation2 + $0x90] sm:$0xff] }
 0x118   :  { %3124 = vmatpush1.bf16.msra.mxu1 %v6422_v22  ;;  %3155 = vmatprep.mubr.bf16.mxu1 %v8122_v59  ;;  %v570_v59 = vld [vmem:[#allocation2 + $0xd60] sm:$0xff]  ;;  %v6297_v22 = vcombine.high %v144_v11, %v148_v14  ;;  %v6495_v26 = vcombine.high %v343_v18, %v347_v19  ;;  %v351_v27 = vld [vmem:[#allocation2 + $0x688] sm:$0xff]  ;;  %v6543_v11 = vcombine.high %v391_v4, %v395_v5 }
 0x119   :  { %3027 = vmatmul.mubr.bf16.vlgmr.msra.gmra.mrb[0].mxu0 %v7239_v20  ;;  %3125 = vmatprep.subr.bf16.mxu1 %v6431_v24  ;;  %v6717_v60 = vcombine.high %v566_v48, %v570_v59  ;;  %v6716_v63 = vcombine.low %v566_v48, %v570_v59  ;;  %v152_v20 = vld [vmem:[#allocation2 + $0x50] sm:$0xff]  ;;  %v6486_v24 = vcombine.low %v335_v9, %v339_v10  ;;  %v403_v14 = vld [vmem:[#allocation2 + $0x828] sm:$0xff] }
 0x11a   :  { %3038 = vmatpush1.bf16.msra.mxu0 %v6676_v23  ;;  %3069 = vmatprep.mubr.bf16.mxu0 %v7960_v38  ;;  %v156_v23 = vld [vmem:[#allocation2 + $0x70] sm:$0xff] }
 0x11b   :  { %3039 = vmatprep.subr.bf16.mxu0 %v6685_v28  ;;  %v355_v28 = vld [vmem:[#allocation2 + $0x6a8] sm:$0xff]  ;;  %v6304_v33 = vcombine.low %v152_v20, %v156_v23 }
 0x11c   :  { %3126 = vmatpush1.bf16.msra.mxu1 %v6430_v30  ;;  %v6305_v30 = vcombine.high %v152_v20, %v156_v23  ;;  %v6503_v34 = vcombine.high %v351_v27, %v355_v28  ;;  %v6502_v41 = vcombine.low %v351_v27, %v355_v28  ;;  %v216_v23 = vld [vmem:[#allocation2 + $0x250] sm:$0xff] }
 0x11d   :  { %3127 = vmatprep.subr.bf16.mxu1 %v6439_v32  ;;  %v6494_v32 = vcombine.low %v343_v18, %v347_v19  ;;  %v6542_v18 = vcombine.low %v391_v4, %v395_v5 }
 0x11e   :  { %3040 = vmatpush1.bf16.msra.mxu0 %v6684_v31  ;;  %v164_v31 = vld [vmem:[#allocation2 + $0xb0] sm:$0xff] }
 0x11f   :  { %3041 = vmatprep.subr.bf16.mxu0 %v6693_v36  ;;  %v363_v36 = vld [vmem:[#allocation2 + $0x6e8] sm:$0xff]  ;;  %v6312_v42 = vcombine.low %v160_v29, %v164_v31 }
 0x120   :  { %3128 = vmatpush1.bf16.msra.mxu1 %v6438_v12  ;;  %v6313_v12 = vcombine.high %v160_v29, %v164_v31  ;;  %v6511_v43 = vcombine.high %v359_v35, %v363_v36  ;;  %v6510_v48 = vcombine.low %v359_v35, %v363_v36  ;;  %v415_v29 = vld [vmem:[#allocation2 + $0x888] sm:$0xff]  ;;  %v224_v31 = vld [vmem:[#allocation2 + $0x290] sm:$0xff] }
 0x121   :  { %3129 = vmatprep.subr.bf16.mxu1 %v6447_v40  ;;  %v7745_v40 = vld [vmem:[%s8295_s0 + $0x4] ss:$28 sps:$4 sm:$0xff]   ;;  %v8160_v36 = vld [vmem:[%s8295_s0 + $0x14] ss:$28 sps:$4 sm:$0xff]  }
 0x122   :  { %3042 = vmatpush1.bf16.msra.mxu0 %v6692_v39  ;;  %v172_v39 = vld [vmem:[#allocation2 + $0xf0] sm:$0xff] }
 0x123   :  { %3043 = vmatprep.subr.bf16.mxu0 %v6701_v44  ;;  %v367_v44 = vld [vmem:[#allocation2 + $0x708] sm:$0xff]  ;;  %v6320_v59 = vcombine.low %v168_v37, %v172_v39 }
 0x124   :  { %3130 = vmatpush1.bf16.msra.mxu1 %v6446_v45  ;;  %v176_v45 = vld [vmem:[#allocation2 + $0x110] sm:$0xff]  ;;  %v6519_v49 = vcombine.high %v367_v44, %v371_v57  ;;  %v6518_v55 = vcombine.low %v367_v44, %v371_v57 }
 0x125   :  { %3131 = vmatprep.subr.bf16.mxu1 %v6455_v47  ;;  %v180_v47 = vld [vmem:[#allocation2 + $0x130] sm:$0xff] }
 0x126   :  { %3044 = vmatpush1.bf16.msra.mxu0 %v6700_v46  ;;  %v6321_v46 = vcombine.high %v168_v37, %v172_v39  ;;  %v6328_v56 = vcombine.low %v176_v45, %v180_v47  ;;  %v423_v39 = vld [vmem:[#allocation2 + $0x8c8] sm:$0xff] }
 0x127   :  { %3045 = vmatprep.subr.bf16.mxu0 %v6709_v50  ;;  %v375_v50 = vld [vmem:[#allocation2 + $0x748] sm:$0xff] }
 0x128   :  { %3132 = vmatpush1.bf16.msra.mxu1 %v6454_v52  ;;  %v184_v52 = vld [vmem:[#allocation2 + $0x150] sm:$0xff]  ;;  %v6527_v58 = vcombine.high %v375_v50, %v379_v51  ;;  %v6526_v1 = vcombine.low %v375_v50, %v379_v51 }
 0x129   :  { %3133 = vmatprep.subr.bf16.mxu1 %v6463_v54  ;;  %v188_v54 = vld [vmem:[#allocation2 + $0x170] sm:$0xff] }
 0x12a   :  { %3046 = vmatpush1.bf16.msra.mxu0 %v6708_v53  ;;  %v6329_v53 = vcombine.high %v176_v45, %v180_v47  ;;  %v6336_v2 = vcombine.low %v184_v52, %v188_v54  ;;  %v435_v47 = vld [vmem:[#allocation2 + $0x928] sm:$0xff] }
 0x12b   :  { %3047 = vmatprep.subr.bf16.mxu0 %v6717_v60  ;;  %v383_v60 = vld [vmem:[#allocation2 + $0x788] sm:$0xff] }
 0x12c   :  { %3134 = vmatpush1.bf16.msra.mxu1 %v6462_v62  ;;  %v192_v62 = vld [vmem:[#allocation2 + $0x190] sm:$0xff]  ;;  %v6534_v9 = vcombine.low %v383_v60, %v387_v61 }
 0x12d   :  { %3135 = vmatprep.subr.bf16.mxu1 %v6471_v0  ;;  %v196_v0 = vld [vmem:[#allocation2 + $0x1b0] sm:$0xff] }
 0x12e   :  { %3048 = vmatpush1.bf16.msra.mxu0 %v6716_v63  ;;  %v6337_v63 = vcombine.high %v184_v52, %v188_v54  ;;  %v6344_v10 = vcombine.low %v192_v62, %v196_v0  ;;  %v443_v54 = vld [vmem:[#allocation2 + $0x968] sm:$0xff] }
 0x12f   :  { %3049 = vmatprep.subr.bf16.mxu0 %v6725_v3  ;;  %v6535_v3 = vcombine.high %v383_v60, %v387_v61 }
 0x130   :  { %3136 = vmatpush1.bf16.msra.mxu1 %v6470_v6  ;;  %v200_v6 = vld [vmem:[#allocation2 + $0x1d0] sm:$0xff] }
 0x131   :  { %3137 = vmatprep.subr.bf16.mxu1 %v6479_v8  ;;  %v204_v8 = vld [vmem:[#allocation2 + $0x1f0] sm:$0xff] }
 0x132   :  { %3050 = vmatpush1.bf16.msra.mxu0 %v6724_v7  ;;  %v6345_v7 = vcombine.high %v192_v62, %v196_v0  ;;  %v6352_v19 = vcombine.low %v200_v6, %v204_v8  ;;  %v451_v0 = vld [vmem:[#allocation2 + $0x9a8] sm:$0xff] }
 0x133   :  { %3051 = vmatprep.subr.bf16.mxu0 %v6733_v13  ;;  %v399_v13 = vld [vmem:[#allocation2 + $0x808] sm:$0xff] }
 0x134   :  { %3138 = vmatpush1.bf16.msra.mxu1 %v6478_v15  ;;  %v208_v15 = vld [vmem:[#allocation2 + $0x210] sm:$0xff]  ;;  %v6551_v20 = vcombine.high %v399_v13, %v403_v14 }
 0x135   :  { %3139 = vmatprep.subr.bf16.mxu1 %v6487_v17  ;;  %v212_v17 = vld [vmem:[#allocation2 + $0x230] sm:$0xff] }
 0x136   :  { %3052 = vmatpush1.bf16.msra.mxu0 %v6732_v16  ;;  %v6353_v16 = vcombine.high %v200_v6, %v204_v8  ;;  %v6360_v27 = vcombine.low %v208_v15, %v212_v17  ;;  %v459_v8 = vld [vmem:[#allocation2 + $0x9e8] sm:$0xff] }
 0x137   :  { %3252 = vmatprep.subr.bf16.mxu0 %v6297_v22  ;;  %v411_v22 = vld [vmem:[#allocation2 + $0x868] sm:$0xff] }
 0x138   :  { %3140 = vmatpush1.bf16.msra.mxu1 %v6486_v24  ;;  %v6361_v24 = vcombine.high %v208_v15, %v212_v17  ;;  %v467_v17 = vld [vmem:[#allocation2 + $0xa28] sm:$0xff] }
 0x139   :  { %3070 = vmatmul.mubr.bf16.vlgmr.msra.gmra.mrb[0].mxu0 %v7240_v21  ;;  %3141 = vmatprep.subr.bf16.mxu1 %v6495_v26  ;;  %v407_v21 = vld [vmem:[#allocation2 + $0x848] sm:$0xff]  ;;  %v6550_v26 = vcombine.low %v399_v13, %v403_v14 }
 0x13a   :  { %3253 = vmatpush1.bf16.msra.mxu0 %v6296_v25  ;;  %3284 = vmatprep.mubr.bf16.mxu0 %v7745_v40  ;;  %v220_v25 = vld [vmem:[#allocation2 + $0x270] sm:$0xff]  ;;  %v6559_v28 = vcombine.high %v407_v21, %v411_v22  ;;  %v6558_v35 = vcombine.low %v407_v21, %v411_v22  ;;  %v427_v40 = vld [vmem:[#allocation2 + $0x8e8] sm:$0xff] }
 0x13b   :  { %3254 = vmatprep.subr.bf16.mxu0 %v6305_v30  ;;  %v419_v30 = vld [vmem:[#allocation2 + $0x8a8] sm:$0xff]  ;;  %v6368_v37 = vcombine.low %v216_v23, %v220_v25  ;;  %v6575_v45 = vcombine.high %v423_v39, %v427_v40  ;;  %v6574_v50 = vcombine.low %v423_v39, %v427_v40  ;;  %v8166_v39 = vld [vmem:[%s8295_s0] ss:$28 sps:$4 sm:$0xff]  }
 0x13c   :  { %3142 = vmatpush1.bf16.msra.mxu1 %v6494_v32  ;;  %v6369_v32 = vcombine.high %v216_v23, %v220_v25  ;;  %v6566_v44 = vcombine.low %v415_v29, %v419_v30  ;;  %v475_v25 = vld [vmem:[#allocation2 + $0xa68] sm:$0xff] }
 0x13d   :  { %3143 = vmatprep.subr.bf16.mxu1 %v6503_v34  ;;  %v8154_v34 = vld [vmem:[%s8295_s0 + $0x8] ss:$28 sps:$4 sm:$0xff]  }
 0x13e   :  { %3255 = vmatpush1.bf16.msra.mxu0 %v6304_v33  ;;  %v228_v33 = vld [vmem:[#allocation2 + $0x2b0] sm:$0xff] }
 0x13f   :  { %3256 = vmatprep.subr.bf16.mxu0 %v6313_v12  ;;  %v6567_v12 = vcombine.high %v415_v29, %v419_v30  ;;  %v6376_v57 = vcombine.low %v224_v31, %v228_v33 }
 0x140   :  { %3144 = vmatpush1.bf16.msra.mxu1 %v6502_v41  ;;  %v232_v41 = vld [vmem:[#allocation2 + $0x2d0] sm:$0xff] }
 0x141   :  { %3145 = vmatprep.subr.bf16.mxu1 %v6511_v43  ;;  %v236_v43 = vld [vmem:[#allocation2 + $0x2f0] sm:$0xff] }
 0x142   :  { %3257 = vmatpush1.bf16.msra.mxu0 %v6312_v42  ;;  %v6377_v42 = vcombine.high %v224_v31, %v228_v33  ;;  %v6384_v51 = vcombine.low %v232_v41, %v236_v43  ;;  %v483_v33 = vld [vmem:[#allocation2 + $0xaa8] sm:$0xff] }
 0x143   :  { %3258 = vmatprep.subr.bf16.mxu0 %v6321_v46  ;;  %v431_v46 = vld [vmem:[#allocation2 + $0x908] sm:$0xff] }
 0x144   :  { %3146 = vmatpush1.bf16.msra.mxu1 %v6510_v48  ;;  %v240_v48 = vld [vmem:[#allocation2 + $0x310] sm:$0xff]  ;;  %v6583_v52 = vcombine.high %v431_v46, %v435_v47  ;;  %v6582_v60 = vcombine.low %v431_v46, %v435_v47  ;;  %v8172_v47 = vld [vmem:[%s8295_s0 + $0xc] ss:$28 sps:$4 sm:$0xff]  }
 0x145   :  { %3147 = vmatprep.subr.bf16.mxu1 %v6519_v49  ;;  %v244_v49 = vld [vmem:[#allocation2 + $0x330] sm:$0xff] }
 0x146   :  { %3259 = vmatpush1.bf16.msra.mxu0 %v6320_v59  ;;  %v6385_v59 = vcombine.high %v232_v41, %v236_v43  ;;  %v6392_v61 = vcombine.low %v240_v48, %v244_v49  ;;  %v487_v43 = vld [vmem:[#allocation2 + $0xac8] sm:$0xff]  ;;  %v300_v46 = vld [vmem:[#allocation2 + $0x4f0] sm:$0xff] }
 0x147   :  { %3260 = vmatprep.subr.bf16.mxu0 %v6329_v53  ;;  %v439_v53 = vld [vmem:[#allocation2 + $0x948] sm:$0xff] }
 0x148   :  { %3148 = vmatpush1.bf16.msra.mxu1 %v6518_v55  ;;  %v248_v55 = vld [vmem:[#allocation2 + $0x350] sm:$0xff]  ;;  %v6591_v62 = vcombine.high %v439_v53, %v443_v54  ;;  %v6590_v4 = vcombine.low %v439_v53, %v443_v54 }
 0x149   :  { %3149 = vmatprep.subr.bf16.mxu1 %v6527_v58  ;;  %v252_v58 = vld [vmem:[#allocation2 + $0x370] sm:$0xff] }
 0x14a   :  { %3261 = vmatpush1.bf16.msra.mxu0 %v6328_v56  ;;  %v6393_v56 = vcombine.high %v240_v48, %v244_v49  ;;  %v6400_v5 = vcombine.low %v248_v55, %v252_v58  ;;  %v308_v54 = vld [vmem:[#allocation2 + $0x530] sm:$0xff] }
 0x14b   :  { %3262 = vmatprep.subr.bf16.mxu0 %v6337_v63  ;;  %v447_v63 = vld [vmem:[#allocation2 + $0x988] sm:$0xff] }
 0x14c   :  { %3150 = vmatpush1.bf16.msra.mxu1 %v6526_v1  ;;  %v256_v1 = vld [vmem:[#allocation2 + $0x390] sm:$0xff]  ;;  %v6599_v6 = vcombine.high %v447_v63, %v451_v0  ;;  %v6598_v13 = vcombine.low %v447_v63, %v451_v0 }
 0x14d   :  { %3151 = vmatprep.subr.bf16.mxu1 %v6535_v3  ;;  %v260_v3 = vld [vmem:[#allocation2 + $0x3b0] sm:$0xff] }
 0x14e   :  { %3263 = vmatpush1.bf16.msra.mxu0 %v6336_v2  ;;  %v6401_v2 = vcombine.high %v248_v55, %v252_v58  ;;  %v6408_v14 = vcombine.low %v256_v1, %v260_v3  ;;  %v316_v0 = vld [vmem:[#allocation2 + $0x570] sm:$0xff] }
 0x14f   :  { %3264 = vmatprep.subr.bf16.mxu0 %v6345_v7  ;;  %v455_v7 = vld [vmem:[#allocation2 + $0x9c8] sm:$0xff] }
 0x150   :  { %3152 = vmatpush1.bf16.msra.mxu1 %v6534_v9  ;;  %v264_v9 = vld [vmem:[#allocation2 + $0x3d0] sm:$0xff]  ;;  %v6607_v15 = vcombine.high %v455_v7, %v459_v8  ;;  %v6606_v21 = vcombine.low %v455_v7, %v459_v8 }
 0x151   :  { %3153 = vmatprep.subr.bf16.mxu1 %v6543_v11  ;;  %v268_v11 = vld [vmem:[#allocation2 + $0x3f0] sm:$0xff] }
 0x152   :  { %3265 = vmatpush1.bf16.msra.mxu0 %v6344_v10  ;;  %v6409_v10 = vcombine.high %v256_v1, %v260_v3  ;;  %v6416_v22 = vcombine.low %v264_v9, %v268_v11  ;;  %v324_v8 = vld [vmem:[#allocation2 + $0x5b0] sm:$0xff] }
 0x153   :  { %3266 = vmatprep.subr.bf16.mxu0 %v6353_v16  ;;  %v463_v16 = vld [vmem:[#allocation2 + $0xa08] sm:$0xff] }
 0x154   :  { %3154 = vmatpush1.bf16.msra.mxu1 %v6542_v18  ;;  %v272_v18 = vld [vmem:[#allocation2 + $0x410] sm:$0xff]  ;;  %v6615_v23 = vcombine.high %v463_v16, %v467_v17  ;;  %v6614_v29 = vcombine.low %v463_v16, %v467_v17 }
 0x155   :  { %3166 = vmatprep.subr.bf16.mxu1 %v6551_v20  ;;  %v276_v20 = vld [vmem:[#allocation2 + $0x430] sm:$0xff] }
 0x156   :  { %3267 = vmatpush1.bf16.msra.mxu0 %v6352_v19  ;;  %v6417_v19 = vcombine.high %v264_v9, %v268_v11  ;;  %v6424_v30 = vcombine.low %v272_v18, %v276_v20  ;;  %v332_v17 = vld [vmem:[#allocation2 + $0x5f0] sm:$0xff] }
 0x157   :  { %3268 = vmatprep.subr.bf16.mxu0 %v6361_v24  ;;  %3156 = vmatmul.mubr.bf16.vlgmr.msra.gmra.mrb[4].mxu1 %v8154_v34  ;;  %v471_v24 = vld [vmem:[#allocation2 + $0xa48] sm:$0xff] }
 0x158   :  { %3167 = vmatpush1.bf16.msra.mxu1 %v6550_v26  ;;  %3198 = vmatprep.mubr.bf16.mxu1 %v8160_v36  ;;  %v280_v26 = vld [vmem:[#allocation2 + $0x450] sm:$0xff]  ;;  %v6623_v31 = vcombine.high %v471_v24, %v475_v25  ;;  %v6622_v40 = vcombine.low %v471_v24, %v475_v25 }
 0x159   :  { %3168 = vmatprep.subr.bf16.mxu1 %v6559_v28  ;;  %v284_v28 = vld [vmem:[#allocation2 + $0x470] sm:$0xff] }
 0x15a   :  { %3269 = vmatpush1.bf16.msra.mxu0 %v6360_v27  ;;  %v6425_v27 = vcombine.high %v272_v18, %v276_v20  ;;  %v6432_v41 = vcombine.low %v280_v26, %v284_v28  ;;  %v336_v24 = vld [vmem:[#allocation2 + $0x610] sm:$0xff] }
 0x15b   :  { %3270 = vmatprep.subr.bf16.mxu0 %v6369_v32  ;;  %v479_v32 = vld [vmem:[#allocation2 + $0xa88] sm:$0xff]  ;;  %v340_v25 = vld [vmem:[#allocation2 + $0x630] sm:$0xff] }
 0x15c   :  { %3169 = vmatpush1.bf16.msra.mxu1 %v6558_v35  ;;  %v288_v35 = vld [vmem:[#allocation2 + $0x490] sm:$0xff]  ;;  %v6630_v48 = vcombine.low %v479_v32, %v483_v33 }
 0x15d   :  { %3170 = vmatprep.subr.bf16.mxu1 %v6567_v12  ;;  %v292_v12 = vld [vmem:[#allocation2 + $0x4b0] sm:$0xff] }
 0x15e   :  { %3271 = vmatpush1.bf16.msra.mxu0 %v6368_v37  ;;  %v6433_v37 = vcombine.high %v280_v26, %v284_v28 }
 0x15f   :  { %3272 = vmatprep.subr.bf16.mxu0 %v6377_v42  ;;  %v6631_v42 = vcombine.high %v479_v32, %v483_v33  ;;  %v344_v32 = vld [vmem:[#allocation2 + $0x650] sm:$0xff] }
 0x160   :  { %3171 = vmatpush1.bf16.msra.mxu1 %v6566_v44  ;;  %v491_v44 = vld [vmem:[#allocation2 + $0xae8] sm:$0xff]  ;;  %v348_v33 = vld [vmem:[#allocation2 + $0x670] sm:$0xff] }
 0x161   :  { %3172 = vmatprep.subr.bf16.mxu1 %v6575_v45  ;;  %v6441_v45 = vcombine.high %v288_v35, %v292_v12  ;;  %v6639_v49 = vcombine.high %v487_v43, %v491_v44  ;;  %v6638_v55 = vcombine.low %v487_v43, %v491_v44  ;;  %v8178_v43 = vld [vmem:[%s8295_s0 + $0x10] ss:$28 sps:$4 sm:$0xff]  }
 0x162   :  { %3273 = vmatpush1.bf16.msra.mxu0 %v6376_v57  ;;  %v296_v57 = vld [vmem:[#allocation2 + $0x4d0] sm:$0xff] }
 0x163   :  { %3274 = vmatprep.subr.bf16.mxu0 %v6385_v59  ;;  %v6440_v59 = vcombine.low %v288_v35, %v292_v12  ;;  %v6449_v53 = vcombine.high %v296_v57, %v300_v46  ;;  %v352_v44 = vld [vmem:[#allocation2 + $0x690] sm:$0xff] }
 0x164   :  { %3173 = vmatpush1.bf16.msra.mxu1 %v6574_v50  ;;  %v495_v50 = vld [vmem:[#allocation2 + $0xb08] sm:$0xff] }
 0x165   :  { %3174 = vmatprep.subr.bf16.mxu1 %v6583_v52  ;;  %v304_v52 = vld [vmem:[#allocation2 + $0x510] sm:$0xff] }
 0x166   :  { %3275 = vmatpush1.bf16.msra.mxu0 %v6384_v51  ;;  %v499_v51 = vld [vmem:[#allocation2 + $0xb28] sm:$0xff]  ;;  %v6457_v63 = vcombine.high %v304_v52, %v308_v54 }
 0x167   :  { %3276 = vmatprep.subr.bf16.mxu0 %v6393_v56  ;;  %v6448_v56 = vcombine.low %v296_v57, %v300_v46  ;;  %v6647_v58 = vcombine.high %v495_v50, %v499_v51  ;;  %v6646_v1 = vcombine.low %v495_v50, %v499_v51  ;;  %v356_v57 = vld [vmem:[#allocation2 + $0x6b0] sm:$0xff]  ;;  %v6496_v46 = vcombine.low %v344_v32, %v348_v33  ;;  %v555_v50 = vld [vmem:[#allocation2 + $0xce8] sm:$0xff] }
 0x168   :  { %3175 = vmatpush1.bf16.msra.mxu1 %v6582_v60  ;;  %v503_v60 = vld [vmem:[#allocation2 + $0xb48] sm:$0xff]  ;;  %v360_v51 = vld [vmem:[#allocation2 + $0x6d0] sm:$0xff] }
 0x169   :  { %3176 = vmatprep.subr.bf16.mxu1 %v6591_v62  ;;  %v312_v62 = vld [vmem:[#allocation2 + $0x550] sm:$0xff] }
 0x16a   :  { %3277 = vmatpush1.bf16.msra.mxu0 %v6392_v61  ;;  %v507_v61 = vld [vmem:[#allocation2 + $0xb68] sm:$0xff]  ;;  %v6465_v7 = vcombine.high %v312_v62, %v316_v0 }
 0x16b   :  { %3278 = vmatprep.subr.bf16.mxu0 %v6401_v2  ;;  %v6456_v2 = vcombine.low %v304_v52, %v308_v54  ;;  %v6655_v3 = vcombine.high %v503_v60, %v507_v61  ;;  %v6654_v9 = vcombine.low %v503_v60, %v507_v61  ;;  %v364_v52 = vld [vmem:[#allocation2 + $0x6f0] sm:$0xff]  ;;  %v6504_v54 = vcombine.low %v352_v44, %v356_v57  ;;  %v563_v60 = vld [vmem:[#allocation2 + $0xd28] sm:$0xff] }
 0x16c   :  { %3177 = vmatpush1.bf16.msra.mxu1 %v6590_v4  ;;  %v511_v4 = vld [vmem:[#allocation2 + $0xb88] sm:$0xff]  ;;  %v368_v61 = vld [vmem:[#allocation2 + $0x710] sm:$0xff] }
 0x16d   :  { %3178 = vmatprep.subr.bf16.mxu1 %v6599_v6  ;;  %v320_v6 = vld [vmem:[#allocation2 + $0x590] sm:$0xff] }
 0x16e   :  { %3279 = vmatpush1.bf16.msra.mxu0 %v6400_v5  ;;  %v515_v5 = vld [vmem:[#allocation2 + $0xba8] sm:$0xff]  ;;  %v6473_v16 = vcombine.high %v320_v6, %v324_v8 }
 0x16f   :  { %3280 = vmatprep.subr.bf16.mxu0 %v6409_v10  ;;  %v6464_v10 = vcombine.low %v312_v62, %v316_v0  ;;  %v6663_v11 = vcombine.high %v511_v4, %v515_v5  ;;  %v6662_v18 = vcombine.low %v511_v4, %v515_v5  ;;  %v372_v62 = vld [vmem:[#allocation2 + $0x730] sm:$0xff]  ;;  %v6512_v0 = vcombine.low %v360_v51, %v364_v52  ;;  %v571_v4 = vld [vmem:[#allocation2 + $0xd68] sm:$0xff] }
 0x170   :  { %3179 = vmatpush1.bf16.msra.mxu1 %v6598_v13  ;;  %v519_v13 = vld [vmem:[#allocation2 + $0xbc8] sm:$0xff]  ;;  %v376_v5 = vld [vmem:[#allocation2 + $0x750] sm:$0xff] }
 0x171   :  { %3180 = vmatprep.subr.bf16.mxu1 %v6607_v15  ;;  %v328_v15 = vld [vmem:[#allocation2 + $0x5d0] sm:$0xff] }
 0x172   :  { %3281 = vmatpush1.bf16.msra.mxu0 %v6408_v14  ;;  %v523_v14 = vld [vmem:[#allocation2 + $0xbe8] sm:$0xff] }
 0x173   :  { %3282 = vmatprep.subr.bf16.mxu0 %v6417_v19  ;;  %v6472_v19 = vcombine.low %v320_v6, %v324_v8  ;;  %v6671_v20 = vcombine.high %v519_v13, %v523_v14  ;;  %v6670_v26 = vcombine.low %v519_v13, %v523_v14  ;;  %v380_v6 = vld [vmem:[#allocation2 + $0x770] sm:$0xff]  ;;  %v6520_v8 = vcombine.low %v368_v61, %v372_v62  ;;  %v579_v13 = vld [vmem:[#allocation2 + $0xda8] sm:$0xff] }
 0x174   :  { %3181 = vmatpush1.bf16.msra.mxu1 %v6606_v21  ;;  %v6481_v21 = vcombine.high %v328_v15, %v332_v17  ;;  %v384_v14 = vld [vmem:[#allocation2 + $0x790] sm:$0xff] }
 0x175   :  { %3182 = vmatprep.subr.bf16.mxu1 %v6615_v23  ;;  %v531_v23 = vld [vmem:[#allocation2 + $0xc28] sm:$0xff] }
 0x176   :  { %3283 = vmatpush1.bf16.msra.mxu0 %v6416_v22  ;;  %v527_v22 = vld [vmem:[#allocation2 + $0xc08] sm:$0xff] }
 0x177   :  { %3295 = vmatprep.subr.bf16.mxu0 %v6425_v27  ;;  %v6480_v27 = vcombine.low %v328_v15, %v332_v17  ;;  %v6679_v28 = vcombine.high %v527_v22, %v531_v23  ;;  %v6678_v35 = vcombine.low %v527_v22, %v531_v23  ;;  %v388_v15 = vld [vmem:[#allocation2 + $0x7b0] sm:$0xff]  ;;  %v6528_v17 = vcombine.low %v376_v5, %v380_v6  ;;  %v587_v22 = vld [vmem:[#allocation2 + $0xde8] sm:$0xff] }
 0x178   :  { %3183 = vmatpush1.bf16.msra.mxu1 %v6614_v29  ;;  %v6489_v29 = vcombine.high %v336_v24, %v340_v25 }
 0x179   :  { %3285 = vmatmul.mubr.bf16.vlgmr.msra.gmra.mrb[4].mxu0 %v8166_v39  ;;  %3184 = vmatprep.subr.bf16.mxu1 %v6623_v31  ;;  %v539_v31 = vld [vmem:[#allocation2 + $0xc68] sm:$0xff] }
 0x17a   :  { %3296 = vmatpush1.bf16.msra.mxu0 %v6424_v30  ;;  %3327 = vmatprep.mubr.bf16.mxu0 %v8172_v47  ;;  %v535_v30 = vld [vmem:[#allocation2 + $0xc48] sm:$0xff] }
 0x17b   :  { %3297 = vmatprep.subr.bf16.mxu0 %v6433_v37  ;;  %v6488_v37 = vcombine.low %v336_v24, %v340_v25  ;;  %v6687_v12 = vcombine.high %v535_v30, %v539_v31  ;;  %v392_v24 = vld [vmem:[#allocation2 + $0x7d0] sm:$0xff] }
 0x17c   :  { %3185 = vmatpush1.bf16.msra.mxu1 %v6622_v40  ;;  %v6497_v40 = vcombine.high %v344_v32, %v348_v33  ;;  %v396_v25 = vld [vmem:[#allocation2 + $0x7f0] sm:$0xff]  ;;  %v145_v32 = vld [vmem:[#allocation2 + $0x18] sm:$0xff] }
 0x17d   :  { %3186 = vmatprep.subr.bf16.mxu1 %v6631_v42  ;;  %v547_v42 = vld [vmem:[#allocation2 + $0xca8] sm:$0xff]  ;;  %v149_v33 = vld [vmem:[#allocation2 + $0x38] sm:$0xff] }
 0x17e   :  { %3298 = vmatpush1.bf16.msra.mxu0 %v6432_v41  ;;  %v543_v41 = vld [vmem:[#allocation2 + $0xc88] sm:$0xff] }
 0x17f   :  { %3299 = vmatprep.subr.bf16.mxu0 %v6441_v45  ;;  %v6686_v45 = vcombine.low %v535_v30, %v539_v31  ;;  %v6545_v31 = vcombine.high %v392_v24, %v396_v25 }
 0x180   :  { %3187 = vmatpush1.bf16.msra.mxu1 %v6630_v48  ;;  %v6695_v48 = vcombine.high %v543_v41, %v547_v42 }
 0x181   :  { %3188 = vmatprep.subr.bf16.mxu1 %v6639_v49  ;;  %v551_v49 = vld [vmem:[#allocation2 + $0xcc8] sm:$0xff] }
 0x182   :  { %3300 = vmatpush1.bf16.msra.mxu0 %v6440_v59  ;;  %v6505_v59 = vcombine.high %v352_v44, %v356_v57  ;;  %v153_v44 = vld [vmem:[#allocation2 + $0x58] sm:$0xff] }
 0x183   :  { %3301 = vmatprep.subr.bf16.mxu0 %v6449_v53  ;;  %v6694_v53 = vcombine.low %v543_v41, %v547_v42  ;;  %v6299_v41 = vcombine.high %v145_v32, %v149_v33  ;;  %v157_v57 = vld [vmem:[#allocation2 + $0x78] sm:$0xff] }
 0x184   :  { %3189 = vmatpush1.bf16.msra.mxu1 %v6638_v55  ;;  %v6703_v55 = vcombine.high %v551_v49, %v555_v50 }
 0x185   :  { %3190 = vmatprep.subr.bf16.mxu1 %v6647_v58  ;;  %v559_v58 = vld [vmem:[#allocation2 + $0xd08] sm:$0xff] }
 0x186   :  { %3302 = vmatpush1.bf16.msra.mxu0 %v6448_v56  ;;  %v6513_v56 = vcombine.high %v360_v51, %v364_v52  ;;  %v161_v51 = vld [vmem:[#allocation2 + $0x98] sm:$0xff] }
 0x187   :  { %3303 = vmatprep.subr.bf16.mxu0 %v6457_v63  ;;  %v6702_v63 = vcombine.low %v551_v49, %v555_v50  ;;  %v6307_v49 = vcombine.high %v153_v44, %v157_v57  ;;  %v165_v52 = vld [vmem:[#allocation2 + $0xb8] sm:$0xff] }
 0x188   :  { %3191 = vmatpush1.bf16.msra.mxu1 %v6646_v1  ;;  %v6711_v1 = vcombine.high %v559_v58, %v563_v60 }
 0x189   :  { %3192 = vmatprep.subr.bf16.mxu1 %v6655_v3  ;;  %v567_v3 = vld [vmem:[#allocation2 + $0xd48] sm:$0xff] }
 0x18a   :  { %3304 = vmatpush1.bf16.msra.mxu0 %v6456_v2  ;;  %v6521_v2 = vcombine.high %v368_v61, %v372_v62  ;;  %v169_v62 = vld [vmem:[#allocation2 + $0xd8] sm:$0xff] }
 0x18b   :  { %3305 = vmatprep.subr.bf16.mxu0 %v6465_v7  ;;  %v6710_v7 = vcombine.low %v559_v58, %v563_v60  ;;  %v6315_v60 = vcombine.high %v161_v51, %v165_v52 }
 0x18c   :  { %3193 = vmatpush1.bf16.msra.mxu1 %v6654_v9  ;;  %v6719_v9 = vcombine.high %v567_v3, %v571_v4 }
 0x18d   :  { %3194 = vmatprep.subr.bf16.mxu1 %v6663_v11  ;;  %v575_v11 = vld [vmem:[#allocation2 + $0xd88] sm:$0xff] }
 0x18e   :  { %3306 = vmatpush1.bf16.msra.mxu0 %v6464_v10  ;;  %v6529_v10 = vcombine.high %v376_v5, %v380_v6  ;;  %v177_v6 = vld [vmem:[#allocation2 + $0x118] sm:$0xff] }
 0x18f   :  { %3307 = vmatprep.subr.bf16.mxu0 %v6473_v16  ;;  %v6718_v16 = vcombine.low %v567_v3, %v571_v4 }
 0x190   :  { %3195 = vmatpush1.bf16.msra.mxu1 %v6662_v18  ;;  %v6727_v18 = vcombine.high %v575_v11, %v579_v13 }
 0x191   :  { %3196 = vmatprep.subr.bf16.mxu1 %v6671_v20  ;;  %v6537_v20 = vcombine.high %v384_v14, %v388_v15 }
 0x192   :  { %3308 = vmatpush1.bf16.msra.mxu0 %v6472_v19 }
 0x193   :  { %3309 = vmatprep.subr.bf16.mxu0 %v6481_v21  ;;  %v583_v21 = vld [vmem:[#allocation2 + $0xdc8] sm:$0xff] }
 0x194   :  { %3197 = vmatpush1.bf16.msra.mxu1 %v6670_v26  ;;  %v6735_v30 = vcombine.high %v583_v21, %v587_v22 }
 0x195   :  { %3209 = vmatprep.subr.bf16.mxu1 %v6679_v28 }
 0x196   :  { %3310 = vmatpush1.bf16.msra.mxu0 %v6480_v27  ;;  %v6726_v27 = vcombine.low %v575_v11, %v579_v13 }
 0x197   :  { %3311 = vmatprep.subr.bf16.mxu0 %v6489_v29  ;;  %3199 = vmatmul.mubr.bf16.vlgmr.msra.gmra.mrb[4].mxu1 %v8178_v43  ;;  %v6536_v29 = vcombine.low %v384_v14, %v388_v15  ;;  %v185_v14 = vld [vmem:[#allocation2 + $0x158] sm:$0xff] }
 0x198   :  { %3210 = vmatpush1.bf16.msra.mxu1 %v6678_v35  ;;  %3241 = vmatprep.mubr.bf16.mxu1 %v7960_v38  ;;  %v400_v35 = vld [vmem:[#allocation2 + $0x810] sm:$0xff]  ;;  %v189_v15 = vld [vmem:[#allocation2 + $0x178] sm:$0xff] }
 0x199   :  { %3211 = vmatprep.subr.bf16.mxu1 %v6687_v12  ;;  %v6734_v12 = vcombine.low %v583_v21, %v587_v22  ;;  %v6339_v21 = vcombine.high %v185_v14, %v189_v15 }
 0x19a   :  { %3312 = vmatpush1.bf16.msra.mxu0 %v6488_v37  ;;  %v404_v37 = vld [vmem:[#allocation2 + $0x830] sm:$0xff] }
 0x19b   :  { %3313 = vmatprep.subr.bf16.mxu0 %v6497_v40  ;;  %v6544_v40 = vcombine.low %v392_v24, %v396_v25  ;;  %v6553_v42 = vcombine.high %v400_v35, %v404_v37  ;;  %v193_v24 = vld [vmem:[#allocation2 + $0x198] sm:$0xff] }
 0x19c   :  { %3212 = vmatpush1.bf16.msra.mxu1 %v6686_v45  ;;  %v408_v45 = vld [vmem:[#allocation2 + $0x850] sm:$0xff]  ;;  %v197_v25 = vld [vmem:[#allocation2 + $0x1b8] sm:$0xff] }
 0x19d   :  { %3213 = vmatprep.subr.bf16.mxu1 %v6695_v48  ;;  %v6298_v48 = vcombine.low %v145_v32, %v149_v33  ;;  %v6347_v32 = vcombine.high %v193_v24, %v197_v25 }
 0x19e   :  { %3314 = vmatpush1.bf16.msra.mxu0 %v6496_v46  ;;  %v412_v46 = vld [vmem:[#allocation2 + $0x870] sm:$0xff] }
 0x19f   :  { %3315 = vmatprep.subr.bf16.mxu0 %v6505_v59  ;;  %v6552_v59 = vcombine.low %v400_v35, %v404_v37  ;;  %v6561_v50 = vcombine.high %v408_v45, %v412_v46  ;;  %v6560_v58 = vcombine.low %v408_v45, %v412_v46  ;;  %v201_v35 = vld [vmem:[#allocation2 + $0x1d8] sm:$0xff] }
 0x1a0   :  { %3214 = vmatpush1.bf16.msra.mxu1 %v6694_v53  ;;  %v8193_v53 = vld [vmem:[%s8295_s0 + $0x18] ss:$28 sps:$4 sm:$0xff]  }
 0x1a1   :  { %3215 = vmatprep.subr.bf16.mxu1 %v6703_v55  ;;  %v420_v55 = vld [vmem:[#allocation2 + $0x8b0] sm:$0xff]  ;;  %v205_v37 = vld [vmem:[#allocation2 + $0x1f8] sm:$0xff] }
 0x1a2   :  { %3316 = vmatpush1.bf16.msra.mxu0 %v6504_v54  ;;  %v416_v54 = vld [vmem:[#allocation2 + $0x890] sm:$0xff]  ;;  %v209_v45 = vld [vmem:[#allocation2 + $0x218] sm:$0xff] }
 0x1a3   :  { %3317 = vmatprep.subr.bf16.mxu0 %v6513_v56  ;;  %v6306_v56 = vcombine.low %v153_v44, %v157_v57  ;;  %v6569_v61 = vcombine.high %v416_v54, %v420_v55  ;;  %v6568_v3 = vcombine.low %v416_v54, %v420_v55  ;;  %v6355_v44 = vcombine.high %v201_v35, %v205_v37  ;;  %v213_v46 = vld [vmem:[#allocation2 + $0x238] sm:$0xff] }
 0x1a4   :  { %3216 = vmatpush1.bf16.msra.mxu1 %v6702_v63  ;;  %v173_v63 = vld [vmem:[#allocation2 + $0xf8] sm:$0xff] }
 0x1a5   :  { %3217 = vmatprep.subr.bf16.mxu1 %v6711_v1  ;;  %v428_v1 = vld [vmem:[#allocation2 + $0x8f0] sm:$0xff]  ;;  %v6323_v4 = vcombine.high %v169_v62, %v173_v63  ;;  %v217_v54 = vld [vmem:[#allocation2 + $0x258] sm:$0xff] }
 0x1a6   :  { %3318 = vmatpush1.bf16.msra.mxu0 %v6512_v0  ;;  %v424_v0 = vld [vmem:[#allocation2 + $0x8d0] sm:$0xff]  ;;  %v221_v55 = vld [vmem:[#allocation2 + $0x278] sm:$0xff] }
 0x1a7   :  { %3319 = vmatprep.subr.bf16.mxu0 %v6521_v2  ;;  %v7752_v2 = vld [vmem:[%s8295_s0 + $0x4] ss:$28 sps:$4 sm:$0xff]   ;;  %v6577_v5 = vcombine.high %v424_v0, %v428_v1 }
 0x1a8   :  { %3218 = vmatpush1.bf16.msra.mxu1 %v6710_v7  ;;  %v181_v7 = vld [vmem:[#allocation2 + $0x138] sm:$0xff] }
 0x1a9   :  { %3219 = vmatprep.subr.bf16.mxu1 %v6719_v9  ;;  %v436_v9 = vld [vmem:[#allocation2 + $0x930] sm:$0xff]  ;;  %v6331_v11 = vcombine.high %v177_v6, %v181_v7 }
 0x1aa   :  { %3320 = vmatpush1.bf16.msra.mxu0 %v6520_v8  ;;  %v8182_v19 = vpop.f32.mrb[0].mxu1  ;;  %v432_v8 = vld [vmem:[#allocation2 + $0x910] sm:$0xff] }
 0x1ab   :  { %3321 = vmatprep.subr.bf16.mxu0 %v6529_v10  ;;  %v8184_v23 = vpop.f32.mrb[1].mxu1  ;;  %v6576_v10 = vcombine.low %v424_v0, %v428_v1  ;;  %v6585_v13 = vcombine.high %v432_v8, %v436_v9  ;;  %v225_v0 = vld [vmem:[#allocation2 + $0x298] sm:$0xff] }
 0x1ac   :  { %v8186_v26 = vpop.f32.mrb[2].mxu1  ;;  %3220 = vmatpush1.bf16.msra.mxu1 %v6718_v16  ;;  %v440_v16 = vld [vmem:[#allocation2 + $0x950] sm:$0xff]  ;;  %v229_v1 = vld [vmem:[#allocation2 + $0x2b8] sm:$0xff] }
 0x1ad   :  { %v8188_v28 = vpop.f32.mrb[3].mxu1  ;;  %3221 = vmatprep.subr.bf16.mxu1 %v6727_v18  ;;  %v6330_v18 = vcombine.low %v177_v6, %v181_v7  ;;  %v233_v7 = vld [vmem:[#allocation2 + $0x2d8] sm:$0xff] }
 0x1ae   :  { %3322 = vmatpush1.bf16.msra.mxu0 %v6528_v17  ;;  %v444_v17 = vld [vmem:[#allocation2 + $0x970] sm:$0xff] }
 0x1af   :  { %3323 = vmatprep.subr.bf16.mxu0 %v6537_v20  ;;  %v6584_v20 = vcombine.low %v432_v8, %v436_v9  ;;  %v6593_v22 = vcombine.high %v440_v16, %v444_v17  ;;  %v237_v8 = vld [vmem:[#allocation2 + $0x2f8] sm:$0xff]  ;;  %v488_v9 = vld [vmem:[#allocation2 + $0xad0] sm:$0xff] }
 0x1b0   :  { %3222 = vmatpush1.bf16.msra.mxu1 %v6726_v27  ;;  %v448_v27 = vld [vmem:[#allocation2 + $0x990] sm:$0xff] }
 0x1b1   :  { %3223 = vmatprep.subr.bf16.mxu1 %v6735_v30  ;;  %v6338_v30 = vcombine.low %v185_v14, %v189_v15  ;;  %v241_v15 = vld [vmem:[#allocation2 + $0x318] sm:$0xff] }
 0x1b2   :  { %3324 = vmatpush1.bf16.msra.mxu0 %v6536_v29  ;;  %v452_v29 = vld [vmem:[#allocation2 + $0x9b0] sm:$0xff] }
 0x1b3   :  { %3325 = vmatprep.subr.bf16.mxu0 %v6545_v31  ;;  %v6592_v31 = vcombine.low %v440_v16, %v444_v17  ;;  %v6601_v33 = vcombine.high %v448_v27, %v452_v29  ;;  %v245_v16 = vld [vmem:[#allocation2 + $0x338] sm:$0xff]  ;;  %v496_v17 = vld [vmem:[#allocation2 + $0xb10] sm:$0xff] }
 0x1b4   :  { %3224 = vmatpush1.bf16.msra.mxu1 %v6734_v12  ;;  %v456_v12 = vld [vmem:[#allocation2 + $0x9d0] sm:$0xff] }
 0x1b5   :  { %3424 = vmatprep.subr.bf16.mxu1 %v6299_v41  ;;  %v6346_v41 = vcombine.low %v193_v24, %v197_v25  ;;  %v249_v25 = vld [vmem:[#allocation2 + $0x358] sm:$0xff] }
 0x1b6   :  { %3326 = vmatpush1.bf16.msra.mxu0 %v6544_v40  ;;  %v460_v40 = vld [vmem:[#allocation2 + $0x9f0] sm:$0xff] }
 0x1b7   :  { %3338 = vmatprep.subr.bf16.mxu0 %v6553_v42  ;;  %3242 = vmatmul.mubr.bf16.vlgmr.msra.gmra.mrb[4].mxu1 %v8193_v53  ;;  %v6600_v42 = vcombine.low %v448_v27, %v452_v29  ;;  %v6609_v57 = vcombine.high %v456_v12, %v460_v40  ;;  %v253_v27 = vld [vmem:[#allocation2 + $0x378] sm:$0xff]  ;;  %v504_v29 = vld [vmem:[#allocation2 + $0xb50] sm:$0xff] }
 0x1b8   :  { %3425 = vmatpush1.bf16.msra.mxu1 %v6298_v48  ;;  %3456 = vmatprep.mubr.bf16.mxu1 %v7752_v2  ;;  %v464_v48 = vld [vmem:[#allocation2 + $0xa10] sm:$0xff] }
 0x1b9   :  { %3328 = vmatmul.mubr.bf16.vlgmr.msra.gmra.mrb[4].mxu0 %v8154_v34  ;;  %3426 = vmatprep.subr.bf16.mxu1 %v6307_v49  ;;  %v6314_v34 = vcombine.low %v161_v51, %v165_v52  ;;  %v6354_v49 = vcombine.low %v201_v35, %v205_v37  ;;  %v6363_v51 = vcombine.high %v209_v45, %v213_v46  ;;  %v480_v2 = vld [vmem:[#allocation2 + $0xa90] sm:$0xff]  ;;  %v257_v37 = vld [vmem:[#allocation2 + $0x398] sm:$0xff] }
 0x1ba   :  { %3339 = vmatpush1.bf16.msra.mxu0 %v6552_v59  ;;  %3370 = vmatprep.mubr.bf16.mxu0 %v8160_v36  ;;  %v6322_v36 = vcombine.low %v169_v62, %v173_v63  ;;  %v468_v59 = vld [vmem:[#allocation2 + $0xa30] sm:$0xff]  ;;  %v6371_v62 = vcombine.high %v217_v54, %v221_v55 }
 0x1bb   :  { %3340 = vmatprep.subr.bf16.mxu0 %v6561_v50  ;;  %v6608_v50 = vcombine.low %v456_v12, %v460_v40  ;;  %v6617_v52 = vcombine.high %v464_v48, %v468_v59  ;;  %v261_v12 = vld [vmem:[#allocation2 + $0x3b8] sm:$0xff]  ;;  %v512_v40 = vld [vmem:[#allocation2 + $0xb90] sm:$0xff] }
 0x1bc   :  { %3427 = vmatpush1.bf16.msra.mxu1 %v6306_v56  ;;  %v472_v56 = vld [vmem:[#allocation2 + $0xa50] sm:$0xff] }
 0x1bd   :  { %3428 = vmatprep.subr.bf16.mxu1 %v6315_v60  ;;  %v6362_v60 = vcombine.low %v209_v45, %v213_v46  ;;  %v265_v46 = vld [vmem:[#allocation2 + $0x3d8] sm:$0xff] }
 0x1be   :  { %3341 = vmatpush1.bf16.msra.mxu0 %v6560_v58  ;;  %v476_v58 = vld [vmem:[#allocation2 + $0xa70] sm:$0xff] }
 0x1bf   :  { %3342 = vmatprep.subr.bf16.mxu0 %v6569_v61  ;;  %v6616_v61 = vcombine.low %v464_v48, %v468_v59  ;;  %v6625_v63 = vcombine.high %v472_v56, %v476_v58  ;;  %v269_v48 = vld [vmem:[#allocation2 + $0x3f8] sm:$0xff]  ;;  %v520_v59 = vld [vmem:[#allocation2 + $0xbd0] sm:$0xff] }
 0x1c0   :  { %3429 = vmatpush1.bf16.msra.mxu1 %v6314_v34  ;;  %v484_v34 = vld [vmem:[#allocation2 + $0xab0] sm:$0xff] }
 0x1c1   :  { %3430 = vmatprep.subr.bf16.mxu1 %v6323_v4  ;;  %v6624_v4 = vcombine.low %v472_v56, %v476_v58  ;;  %v6633_v6 = vcombine.high %v480_v2, %v484_v34  ;;  %v277_v56 = vld [vmem:[#allocation2 + $0x438] sm:$0xff]  ;;  %v528_v58 = vld [vmem:[#allocation2 + $0xc10] sm:$0xff] }
 0x1c2   :  { %3343 = vmatpush1.bf16.msra.mxu0 %v6568_v3  ;;  %v6370_v3 = vcombine.low %v217_v54, %v221_v55  ;;  %v273_v55 = vld [vmem:[#allocation2 + $0x418] sm:$0xff] }
 0x1c3   :  { %3344 = vmatprep.subr.bf16.mxu0 %v6577_v5  ;;  %v6379_v5 = vcombine.high %v225_v0, %v229_v1 }
 0x1c4   :  { %3431 = vmatpush1.bf16.msra.mxu1 %v6322_v36  ;;  %v492_v36 = vld [vmem:[#allocation2 + $0xaf0] sm:$0xff] }
 0x1c5   :  { %3432 = vmatprep.subr.bf16.mxu1 %v6331_v11  ;;  %v6632_v11 = vcombine.low %v480_v2, %v484_v34  ;;  %v6641_v14 = vcombine.high %v488_v9, %v492_v36  ;;  %v285_v2 = vld [vmem:[#allocation2 + $0x478] sm:$0xff]  ;;  %v536_v34 = vld [vmem:[#allocation2 + $0xc50] sm:$0xff] }
 0x1c6   :  { %3345 = vmatpush1.bf16.msra.mxu0 %v6576_v10  ;;  %v6378_v10 = vcombine.low %v225_v0, %v229_v1  ;;  %v281_v1 = vld [vmem:[#allocation2 + $0x458] sm:$0xff] }
 0x1c7   :  { %3346 = vmatprep.subr.bf16.mxu0 %v6585_v13  ;;  %v6387_v13 = vcombine.high %v233_v7, %v237_v8 }
 0x1c8   :  { %3433 = vmatpush1.bf16.msra.mxu1 %v6330_v18  ;;  %v500_v18 = vld [vmem:[#allocation2 + $0xb30] sm:$0xff] }
 0x1c9   :  { %3434 = vmatprep.subr.bf16.mxu1 %v6339_v21  ;;  %v6640_v21 = vcombine.low %v488_v9, %v492_v36  ;;  %v6649_v24 = vcombine.high %v496_v17, %v500_v18  ;;  %v293_v9 = vld [vmem:[#allocation2 + $0x4b8] sm:$0xff]  ;;  %v544_v36 = vld [vmem:[#allocation2 + $0xc90] sm:$0xff] }
 0x1ca   :  { %3347 = vmatpush1.bf16.msra.mxu0 %v6584_v20  ;;  %v6386_v20 = vcombine.low %v233_v7, %v237_v8  ;;  %v289_v8 = vld [vmem:[#allocation2 + $0x498] sm:$0xff] }
 0x1cb   :  { %3348 = vmatprep.subr.bf16.mxu0 %v6593_v22  ;;  %v6395_v22 = vcombine.high %v241_v15, %v245_v16 }
 0x1cc   :  { %3435 = vmatpush1.bf16.msra.mxu1 %v6338_v30  ;;  %v508_v30 = vld [vmem:[#allocation2 + $0xb70] sm:$0xff] }
 0x1cd   :  { %3436 = vmatprep.subr.bf16.mxu1 %v6347_v32  ;;  %v6648_v32 = vcombine.low %v496_v17, %v500_v18  ;;  %v6657_v35 = vcombine.high %v504_v29, %v508_v30  ;;  %v297_v17 = vld [vmem:[#allocation2 + $0x4d8] sm:$0xff] }
 0x1ce   :  { %3349 = vmatpush1.bf16.msra.mxu0 %v6592_v31  ;;  %v6394_v31 = vcombine.low %v241_v15, %v245_v16  ;;  %v592_v15 = vlaneseq  ;;  %v301_v18 = vld [vmem:[#allocation2 + $0x4f8] sm:$0xff] }
 0x1cf   :  { %3350 = vmatprep.subr.bf16.mxu0 %v6601_v33  ;;  %v6403_v33 = vcombine.high %v249_v25, %v253_v27 }
 0x1d0   :  { %3437 = vmatpush1.bf16.msra.mxu1 %v6346_v41  ;;  %v516_v41 = vld [vmem:[#allocation2 + $0xbb0] sm:$0xff] }
 0x1d1   :  { %3438 = vmatprep.subr.bf16.mxu1 %v6355_v44  ;;  %v6656_v44 = vcombine.low %v504_v29, %v508_v30  ;;  %v6665_v45 = vcombine.high %v512_v40, %v516_v41  ;;  %v309_v29 = vld [vmem:[#allocation2 + $0x538] sm:$0xff]  ;;  %v560_v30 = vld [vmem:[#allocation2 + $0xd10] sm:$0xff] }
 0x1d2   :  { %3351 = vmatpush1.bf16.msra.mxu0 %v6600_v42  ;;  %v6402_v42 = vcombine.low %v249_v25, %v253_v27  ;;  %v305_v27 = vld [vmem:[#allocation2 + $0x518] sm:$0xff] }
 0x1d3   :  { %3352 = vmatprep.subr.bf16.mxu0 %v6609_v57  ;;  %v6411_v57 = vcombine.high %v257_v37, %v261_v12 }
 0x1d4   :  { %3439 = vmatpush1.bf16.msra.mxu1 %v6354_v49  ;;  %v524_v49 = vld [vmem:[#allocation2 + $0xbf0] sm:$0xff] }
 0x1d5   :  { %3440 = vmatprep.subr.bf16.mxu1 %v6363_v51  ;;  %v6664_v51 = vcombine.low %v512_v40, %v516_v41  ;;  %v6673_v54 = vcombine.high %v520_v59, %v524_v49  ;;  %v317_v40 = vld [vmem:[#allocation2 + $0x578] sm:$0xff]  ;;  %v8210_v41 = vld [vmem:[#allocation4] sm:$0xff] }
 0x1d6   :  { %3353 = vmatpush1.bf16.msra.mxu0 %v6608_v50  ;;  %v6410_v50 = vcombine.low %v257_v37, %v261_v12  ;;  %v313_v12 = vld [vmem:[#allocation2 + $0x558] sm:$0xff] }
 0x1d7   :  { %3354 = vmatprep.subr.bf16.mxu0 %v6617_v52  ;;  %v6419_v52 = vcombine.high %v265_v46, %v269_v48 }
 0x1d8   :  { %3441 = vmatpush1.bf16.msra.mxu1 %v6362_v60  ;;  %v532_v60 = vld [vmem:[#allocation2 + $0xc30] sm:$0xff] }
 0x1d9   :  { %3442 = vmatprep.subr.bf16.mxu1 %v6371_v62  ;;  %v6672_v62 = vcombine.low %v520_v59, %v524_v49  ;;  %v6681_v0 = vcombine.high %v528_v58, %v532_v60 }
 0x1da   :  { %3355 = vmatpush1.bf16.msra.mxu0 %v6616_v61  ;;  %v6418_v61 = vcombine.low %v265_v46, %v269_v48  ;;  %v6467_v48 = vcombine.high %v313_v12, %v317_v40 }
 0x1db   :  { %3356 = vmatprep.subr.bf16.mxu0 %v6625_v63  ;;  %v6427_v63 = vcombine.high %v273_v55, %v277_v56 }
 0x1dc   :  { %3443 = vmatpush1.bf16.msra.mxu1 %v6370_v3  ;;  %v540_v3 = vld [vmem:[#allocation2 + $0xc70] sm:$0xff] }
 0x1dd   :  { %3444 = vmatprep.subr.bf16.mxu1 %v6379_v5  ;;  %v6680_v5 = vcombine.low %v528_v58, %v532_v60  ;;  %v6689_v7 = vcombine.high %v536_v34, %v540_v3 }
 0x1de   :  { %3357 = vmatpush1.bf16.msra.mxu0 %v6624_v4  ;;  %v6426_v4 = vcombine.low %v273_v55, %v277_v56  ;;  %v580_v55 = vld [vmem:[#allocation2 + $0xdb0] sm:$0xff]  ;;  %v6466_v56 = vcombine.low %v313_v12, %v317_v40  ;;  %v7246_v40 = vld [vmem:[#allocation6 + $0x24] ss:$16 sps:$4 sm:$0xff]  }
 0x1df   :  { %3358 = vmatprep.subr.bf16.mxu0 %v6633_v6  ;;  %v6435_v6 = vcombine.high %v281_v1, %v285_v2 }
 0x1e0   :  { %3445 = vmatpush1.bf16.msra.mxu1 %v6378_v10  ;;  %v548_v10 = vld [vmem:[#allocation2 + $0xcb0] sm:$0xff] }
 0x1e1   :  { %3446 = vmatprep.subr.bf16.mxu1 %v6387_v13  ;;  %v6688_v13 = vcombine.low %v536_v34, %v540_v3  ;;  %v6697_v16 = vcombine.high %v544_v36, %v548_v10  ;;  %v584_v34 = vld [vmem:[#allocation2 + $0xdd0] sm:$0xff] }
 0x1e2   :  { %3359 = vmatpush1.bf16.msra.mxu0 %v6632_v11  ;;  %v6434_v11 = vcombine.low %v281_v1, %v285_v2  ;;  %v588_v3 = vld [vmem:[#allocation2 + $0xdf0] sm:$0xff] }
 0x1e3   :  { %3360 = vmatprep.subr.bf16.mxu0 %v6641_v14  ;;  %v6443_v14 = vcombine.high %v289_v8, %v293_v9 }
 0x1e4   :  { %3447 = vmatpush1.bf16.msra.mxu1 %v6386_v20  ;;  %v552_v20 = vld [vmem:[#allocation2 + $0xcd0] sm:$0xff] }
 0x1e5   :  { %3448 = vmatprep.subr.bf16.mxu1 %v6395_v22  ;;  %v6451_v22 = vcombine.high %v297_v17, %v301_v18 }
 0x1e6   :  { %3361 = vmatpush1.bf16.msra.mxu0 %v6640_v21  ;;  %v556_v21 = vld [vmem:[#allocation2 + $0xcf0] sm:$0xff] }
 0x1e7   :  { %3362 = vmatprep.subr.bf16.mxu0 %v6649_v24  ;;  %v8205_v24 = vshrl.u32 %v592_v15, 7  ;;  %v6705_v25 = vcombine.high %v552_v20, %v556_v21  ;;  %v337_v15 = vld [vmem:[#allocation2 + $0x618] sm:$0xff] }
 0x1e8   :  { %3449 = vmatpush1.bf16.msra.mxu1 %v6394_v31  ;;  %v564_v31 = vld [vmem:[#allocation2 + $0xd30] sm:$0xff] }
 0x1e9   :  { %3450 = vmatprep.subr.bf16.mxu1 %v6403_v33  ;;  %v6704_v33 = vcombine.low %v552_v20, %v556_v21  ;;  %v6713_v37 = vcombine.high %v560_v30, %v564_v31  ;;  %v6712_v46 = vcombine.low %v560_v30, %v564_v31  ;;  %v6736_v21 = vcombine.low %v584_v34, %v588_v3  ;;  %v345_v31 = vld [vmem:[#allocation2 + $0x658] sm:$0xff] }
 0x1ea   :  { %3363 = vmatpush1.bf16.msra.mxu0 %v6648_v32  ;;  %v6450_v32 = vcombine.low %v297_v17, %v301_v18 }
 0x1eb   :  { %3364 = vmatprep.subr.bf16.mxu0 %v6657_v35  ;;  %v8208_v35 = vsub.s32 0, %v8205_v24 }
 0x1ec   :  { %3451 = vmatpush1.bf16.msra.mxu1 %v6402_v42  ;;  %v8213_v42 = vsub.s32 1, %v8205_v24 }
 0x1ed   :  { %3452 = vmatprep.subr.bf16.mxu1 %v6411_v57  ;;  %v572_v57 = vld [vmem:[#allocation2 + $0xd70] sm:$0xff]  ;;  %v595_v59 = vrot.slane %v8210_v41, %v8208_v35 }
 0x1ee   :  { %3365 = vmatpush1.bf16.msra.mxu0 %v6656_v44  ;;  %v568_v44 = vld [vmem:[#allocation2 + $0xd50] sm:$0xff] }
 0x1ef   :  { %3366 = vmatprep.subr.bf16.mxu0 %v6665_v45  ;;  %v6458_v45 = vcombine.low %v305_v27, %v309_v29  ;;  %v6721_v49 = vcombine.high %v568_v44, %v572_v57  ;;  %v6720_v58 = vcombine.low %v568_v44, %v572_v57  ;;  %v353_v44 = vld [vmem:[#allocation2 + $0x698] sm:$0xff] }
 0x1f0   :  { %3453 = vmatpush1.bf16.msra.mxu1 %v6410_v50  ;;  %v321_v50 = vld [vmem:[#allocation2 + $0x598] sm:$0xff] }
 0x1f1   :  { %3454 = vmatprep.subr.bf16.mxu1 %v6419_v52  ;;  %v599_v52 = vrot.slane %v8210_v41, %v8213_v42  ;;  %v357_v57 = vld [vmem:[#allocation2 + $0x6b8] sm:$0xff] }
 0x1f2   :  { %3367 = vmatpush1.bf16.msra.mxu0 %v6664_v51  ;;  %v325_v51 = vld [vmem:[#allocation2 + $0x5b8] sm:$0xff] }
 0x1f3   :  { %3368 = vmatprep.subr.bf16.mxu0 %v6673_v54  ;;  %v576_v54 = vld [vmem:[#allocation2 + $0xd90] sm:$0xff]  ;;  %v6475_v60 = vcombine.high %v321_v50, %v325_v51  ;;  %v2945_v1 = vadd.f32 %v8184_v23, %v599_v52 }
 0x1f4   :  { %3455 = vmatpush1.bf16.msra.mxu1 %v6418_v61  ;;  %v2943_v61 = vadd.f32 %v8182_v19, %v595_v59 }
 0x1f5   :  { %3467 = vmatprep.subr.bf16.mxu1 %v6427_v63  ;;  %v329_v63 = vld [vmem:[#allocation2 + $0x5d8] sm:$0xff] }
 0x1f6   :  { %3369 = vmatpush1.bf16.msra.mxu0 %v6672_v62  ;;  %v6729_v62 = vcombine.high %v576_v54, %v580_v55 }
 0x1f7   :  { %3381 = vmatprep.subr.bf16.mxu0 %v6681_v0  ;;  %3457 = vmatmul.mubr.bf16.vlgmr.msra.gmra.mrb[8].mxu1 %v8166_v39  ;;  %v6442_v39 = vcombine.low %v289_v8, %v293_v9  ;;  %v333_v0 = vld [vmem:[#allocation2 + $0x5f8] sm:$0xff]  ;;  %v6474_v8 = vcombine.low %v321_v50, %v325_v51  ;;  %v2949_v9 = vadd.f32 %v8188_v28, %v599_v52 }
 0x1f8   :  { %3468 = vmatpush1.bf16.msra.mxu1 %v6426_v4  ;;  %3499 = vmatprep.mubr.bf16.mxu1 %v8172_v47  ;;  %v6459_v47 = vcombine.high %v305_v27, %v309_v29  ;;  %v2947_v4 = vadd.f32 %v8186_v26, %v595_v59  ;;  %v6482_v28 = vcombine.low %v329_v63, %v333_v0  ;;  %v7249_v59 = vld [vmem:[#allocation6 + $0x44] ss:$16 sps:$4 sm:$0xff]   ;;  %v7247_v52 = vld [vmem:[#allocation6 + $0x40] ss:$16 sps:$4 sm:$0xff]  }
 0x1f9   :  { %3371 = vmatmul.mubr.bf16.vlgmr.msra.gmra.mrb[4].mxu0 %v8178_v43  ;;  %3469 = vmatprep.subr.bf16.mxu1 %v6435_v6  ;;  %v6696_v43 = vcombine.low %v544_v36, %v548_v10  ;;  %v6483_v10 = vcombine.high %v329_v63, %v333_v0  ;;  %v365_v50 = vld [vmem:[#allocation2 + $0x6f8] sm:$0xff]  ;;  %v6506_v51 = vcombine.low %v353_v44, %v357_v57 }
 0x1fa   :  { %3382 = vmatpush1.bf16.msra.mxu0 %v6680_v5  ;;  %3413 = vmatprep.mubr.bf16.mxu0 %v7960_v38  ;;  %v377_v63 = vld [vmem:[#allocation2 + $0x758] sm:$0xff] }
 0x1fb   :  { %3383 = vmatprep.subr.bf16.mxu0 %v6689_v7  ;;  %v6728_v7 = vcombine.low %v576_v54, %v580_v55  ;;  %v369_v55 = vld [vmem:[#allocation2 + $0x718] sm:$0xff] }
 0x1fc   :  { %3470 = vmatpush1.bf16.msra.mxu1 %v6434_v11  ;;  %v381_v0 = vld [vmem:[#allocation2 + $0x778] sm:$0xff] }
 0x1fd   :  { %3471 = vmatprep.subr.bf16.mxu1 %v6443_v14  ;;  %v6737_v14 = vcombine.high %v584_v34, %v588_v3  ;;  %v6531_v34 = vcombine.high %v377_v63, %v381_v0  ;;  %v7258_v3 = vld [vmem:[#allocation6 + $0xa4] ss:$16 sps:$4 sm:$0xff]  }
 0x1fe   :  { %3384 = vmatpush1.bf16.msra.mxu0 %v6688_v13 }
 0x1ff   :  { %3385 = vmatprep.subr.bf16.mxu0 %v6697_v16  ;;  %v341_v16 = vld [vmem:[#allocation2 + $0x638] sm:$0xff] }
 0x200   :  { %3472 = vmatpush1.bf16.msra.mxu1 %v6442_v39  ;;  %v6491_v39 = vcombine.high %v337_v15, %v341_v16 }
 0x201   :  { %3473 = vmatprep.subr.bf16.mxu1 %v6451_v22 }
 0x202   :  { %3386 = vmatpush1.bf16.msra.mxu0 %v6696_v43 }
 0x203   :  { %3387 = vmatprep.subr.bf16.mxu0 %v6705_v25  ;;  %v7243_v25 = vld [vmem:[#allocation6 + $0x4] ss:$16 sps:$4 sm:$0xff]  }
 0x204   :  { %3474 = vmatpush1.bf16.msra.mxu1 %v6450_v32  ;;  %v349_v32 = vld [vmem:[#allocation2 + $0x678] sm:$0xff] }
 0x205   :  { %3475 = vmatprep.subr.bf16.mxu1 %v6459_v47  ;;  %v6499_v12 = vcombine.high %v345_v31, %v349_v32 }
 0x206   :  { %3388 = vmatpush1.bf16.msra.mxu0 %v6704_v33  ;;  %v6490_v33 = vcombine.low %v337_v15, %v341_v16  ;;  %v405_v15 = vld [vmem:[#allocation2 + $0x838] sm:$0xff] }
 0x207   :  { %3389 = vmatprep.subr.bf16.mxu0 %v6713_v37  ;;  %v7241_v37 = vld [vmem:[#allocation6] ss:$16 sps:$4 sm:$0xff]  }
 0x208   :  { %3476 = vmatpush1.bf16.msra.mxu1 %v6458_v45  ;;  %v6498_v45 = vcombine.low %v345_v31, %v349_v32  ;;  %v7754_v32 = vld [vmem:[%s8295_s0 + $0x14] ss:$28 sps:$4 sm:$0xff]  }
 0x209   :  { %3477 = vmatprep.subr.bf16.mxu1 %v6467_v48  ;;  %v6507_v48 = vcombine.high %v353_v44, %v357_v57  ;;  %v429_v44 = vld [vmem:[#allocation2 + $0x8f8] sm:$0xff] }
 0x20a   :  { %3390 = vmatpush1.bf16.msra.mxu0 %v6712_v46  ;;  %v7244_v46 = vld [vmem:[#allocation6 + $0x20] ss:$16 sps:$4 sm:$0xff]  }
 0x20b   :  { %3391 = vmatprep.subr.bf16.mxu0 %v6721_v49  ;;  %v361_v49 = vld [vmem:[#allocation2 + $0x6d8] sm:$0xff] }
 0x20c   :  { %v3071_v2 = vpop.f32.mrb[0].mxu0  ;;  %3478 = vmatpush1.bf16.msra.mxu1 %v6466_v56  ;;  %v6515_v54 = vcombine.high %v361_v49, %v365_v50  ;;  %v373_v56 = vld [vmem:[#allocation2 + $0x738] sm:$0xff] }
 0x20d   :  { %v7111_v5 = vadd.f32 %v3071_v2, %v2943_v61  ;;  %v3073_v6 = vpop.f32.mrb[1].mxu0  ;;  %3479 = vmatprep.subr.bf16.mxu1 %v6475_v60  ;;  %v7250_v60 = vld [vmem:[#allocation6 + $0x60] ss:$16 sps:$4 sm:$0xff]   ;;  %v6523_v61 = vcombine.high %v369_v55, %v373_v56 }
 0x20e   :  { %v7113_v36 = vadd.f32 %v3073_v6, %v2945_v1  ;;  %v3075_v19 = vpop.f32.mrb[2].mxu0  ;;  %3392 = vmatpush1.bf16.msra.mxu0 %v6720_v58  ;;  %v6514_v58 = vcombine.low %v361_v49, %v365_v50  ;;  %v6522_v1 = vcombine.low %v369_v55, %v373_v56  ;;  %v7253_v2 = vld [vmem:[#allocation6 + $0x80] ss:$16 sps:$4 sm:$0xff]   ;;  %v6530_v6 = vcombine.low %v377_v63, %v381_v0 }
 0x20f   :  { %v3612_v11 = vmul.f32 0.2, %v7111_v5  ;;  %v7115_v13 = vadd.f32 %v3075_v19, %v2947_v4  ;;  %v3077_v23 = vpop.f32.mrb[3].mxu0  ;;  %3393 = vmatprep.subr.bf16.mxu0 %v6729_v62  ;;  %vm3596_vm0 = vcmp.ge.f32.partialorder %v7111_v5, 0.0  ;;  %v7255_v62 = vld [vmem:[#allocation6 + $0x84] ss:$16 sps:$4 sm:$0xff]  }
 0x210   :  { %v3613_v26 = vmul.f32 0.2, %v7113_v36  ;;  %v7117_v17 = vadd.f32 %v3077_v23, %v2949_v9  ;;  %vm3597_vm1 = vcmp.ge.f32.partialorder %v7113_v36, 0.0  ;;  %3480 = vmatpush1.bf16.msra.mxu1 %v6474_v8  ;;  %v385_v4 = vld [vmem:[#allocation2 + $0x798] sm:$0xff] }
 0x211   :  { %vm3604_vm2 = vcmp.ge.f32.partialorder %v7115_v13, 0.0  ;;  %v3620_v18 = vmul.f32 0.2, %v7115_v13  ;;  %3481 = vmatprep.subr.bf16.mxu1 %v6483_v10  ;;  %v3628_v43 = vsel %vm3596_vm0, %v7111_v5, %v3612_v11  ;;  %v389_v5 = vld [vmem:[#allocation2 + $0x7b8] sm:$0xff] }
 0x212   :  { %vm3605_vm3 = vcmp.ge.f32.partialorder %v7117_v17, 0.0  ;;  %v3621_v20 = vmul.f32 0.2, %v7117_v17  ;;  %3394 = vmatpush1.bf16.msra.mxu0 %v6728_v7  ;;  %v3629_v29 = vsel %vm3597_vm1, %v7113_v36, %v3613_v26  ;;  %v7256_v7 = vld [vmem:[#allocation6 + $0xa0] ss:$16 sps:$4 sm:$0xff]   ;;  %v6539_v8 = vcombine.high %v385_v4, %v389_v5 }
 0x213   :  { %v3636_v22 = vsel %vm3604_vm2, %v7115_v13, %v3620_v18  ;;  %3395 = vmatprep.subr.bf16.mxu0 %v6737_v14  ;;  %v7261_v9 = vld [vmem:[#allocation6 + $0xc4] ss:$16 sps:$4 sm:$0xff]   ;;  %v6538_v10 = vcombine.low %v385_v4, %v389_v5  ;;  %v7259_v11 = vld [vmem:[#allocation6 + $0xc0] ss:$16 sps:$4 sm:$0xff]  }
 0x214   :  { %v8223_v27 = vpack.c.bf16 %v3636_v22, %v3628_v43  ;;  %v3637_v30 = vsel %vm3605_vm3, %v7117_v17, %v3621_v20  ;;  %3482 = vmatpush1.bf16.msra.mxu1 %v6482_v28  ;;  %v393_v36 = vld [vmem:[#allocation2 + $0x7d8] sm:$0xff] }
 0x215   :  { %v8226_v47 = vpack.c.bf16 %v3637_v30, %v3629_v29  ;;  %3483 = vmatprep.subr.bf16.mxu1 %v6491_v39  ;;  %v397_v19 = vld [vmem:[#allocation2 + $0x7f8] sm:$0xff]  ;;  %v7753_v30 = vld [vmem:[%s8295_s0 + $0x8] ss:$28 sps:$4 sm:$0xff]  }
 0x216   :  { %3396 = vmatpush1.bf16.msra.mxu0 %v6736_v21  ;;  %v6547_v13 = vcombine.high %v393_v36, %v397_v19  ;;  %v7264_v23 = vld [vmem:[#allocation6 + $0xe4] ss:$16 sps:$4 sm:$0xff]   ;;  %v6546_v16 = vcombine.low %v393_v36, %v397_v19  ;;  %v7262_v26 = vld [vmem:[#allocation6 + $0xe0] ss:$16 sps:$4 sm:$0xff]  }
 0x217   :  { %5210 = vmatprep.subr.bf16.mxu0 %v7243_v25  ;;  %v401_v14 = vld [vmem:[#allocation2 + $0x818] sm:$0xff] }
 0x218   :  { %3484 = vmatpush1.bf16.msra.mxu1 %v6490_v33  ;;  %v6555_v17 = vcombine.high %v401_v14, %v405_v15  ;;  %v7267_v18 = vld [vmem:[#allocation6 + $0x104] ss:$16 sps:$4 sm:$0xff]   ;;  %v6554_v21 = vcombine.low %v401_v14, %v405_v15  ;;  %v7265_v39 = vld [vmem:[#allocation6 + $0x100] ss:$16 sps:$4 sm:$0xff]  }
 0x219   :  { %3414 = vmatmul.mubr.bf16.vlgmr.msra.gmra.mrb[4].mxu0 %v8193_v53  ;;  %3485 = vmatprep.subr.bf16.mxu1 %v6499_v12  ;;  %v7252_v53 = vld [vmem:[#allocation6 + $0x64] ss:$16 sps:$4 sm:$0xff]   ;;  %v7268_v33 = vld [vmem:[#allocation6 + $0x120] ss:$16 sps:$4 sm:$0xff]  }
 0x21a   :  { %5211 = vmatpush1.bf16.msra.mxu0 %v7241_v37  ;;  %5242 = vmatprep.mubr.bf16.mxu0 %v8226_v47  ;;  %v409_v28 = vld [vmem:[#allocation2 + $0x858] sm:$0xff] }
 0x21b   :  { %5212 = vmatprep.subr.bf16.mxu0 %v7246_v40  ;;  %v413_v20 = vld [vmem:[#allocation2 + $0x878] sm:$0xff] }
 0x21c   :  { %3486 = vmatpush1.bf16.msra.mxu1 %v6498_v45  ;;  %v6563_v43 = vcombine.high %v409_v28, %v413_v20  ;;  %v7270_v22 = vld [vmem:[#allocation6 + $0x124] ss:$16 sps:$4 sm:$0xff]   ;;  %v6562_v31 = vcombine.low %v409_v28, %v413_v20  ;;  %v7271_v45 = vld [vmem:[#allocation6 + $0x140] ss:$16 sps:$4 sm:$0xff]  }
 0x21d   :  { %3487 = vmatprep.subr.bf16.mxu1 %v6507_v48  ;;  %v417_v25 = vld [vmem:[#allocation2 + $0x898] sm:$0xff] }
 0x21e   :  { %5213 = vmatpush1.bf16.msra.mxu0 %v7244_v46  ;;  %v421_v29 = vld [vmem:[#allocation2 + $0x8b8] sm:$0xff] }
 0x21f   :  { %5214 = vmatprep.subr.bf16.mxu0 %v7249_v59  ;;  %v6571_v37 = vcombine.high %v417_v25, %v421_v29  ;;  %v7273_v12 = vld [vmem:[#allocation6 + $0x144] ss:$16 sps:$4 sm:$0xff]   ;;  %v6570_v57 = vcombine.low %v417_v25, %v421_v29 }
 0x220   :  { %3488 = vmatpush1.bf16.msra.mxu1 %v6506_v51  ;;  %v425_v40 = vld [vmem:[#allocation2 + $0x8d8] sm:$0xff] }
 0x221   :  { %3489 = vmatprep.subr.bf16.mxu1 %v6515_v54  ;;  %v6579_v46 = vcombine.high %v425_v40, %v429_v44  ;;  %v7276_v48 = vld [vmem:[#allocation6 + $0x164] ss:$16 sps:$4 sm:$0xff]   ;;  %v6578_v50 = vcombine.low %v425_v40, %v429_v44  ;;  %v7274_v51 = vld [vmem:[#allocation6 + $0x160] ss:$16 sps:$4 sm:$0xff]  }
 0x222   :  { %5215 = vmatpush1.bf16.msra.mxu0 %v7247_v52  ;;  %v433_v59 = vld [vmem:[#allocation2 + $0x918] sm:$0xff] }
 0x223   :  { %5216 = vmatprep.subr.bf16.mxu0 %v7252_v53  ;;  %v437_v49 = vld [vmem:[#allocation2 + $0x938] sm:$0xff] }
 0x224   :  { %3490 = vmatpush1.bf16.msra.mxu1 %v6514_v58  ;;  %v6587_v52 = vcombine.high %v433_v59, %v437_v49  ;;  %v7279_v54 = vld [vmem:[#allocation6 + $0x184] ss:$16 sps:$4 sm:$0xff]   ;;  %v6586_v56 = vcombine.low %v433_v59, %v437_v49  ;;  %v7277_v58 = vld [vmem:[#allocation6 + $0x180] ss:$16 sps:$4 sm:$0xff]  }
 0x225   :  { %3491 = vmatprep.subr.bf16.mxu1 %v6523_v61  ;;  %v441_v53 = vld [vmem:[#allocation2 + $0x958] sm:$0xff] }
 0x226   :  { %5217 = vmatpush1.bf16.msra.mxu0 %v7250_v60  ;;  %v445_v55 = vld [vmem:[#allocation2 + $0x978] sm:$0xff] }
 0x227   :  { %5218 = vmatprep.subr.bf16.mxu0 %v7255_v62  ;;  %v6595_v60 = vcombine.high %v441_v53, %v445_v55  ;;  %v7282_v61 = vld [vmem:[#allocation6 + $0x1a4] ss:$16 sps:$4 sm:$0xff]   ;;  %v6594_v0 = vcombine.low %v441_v53, %v445_v55  ;;  %v7298_v40 = vld [vmem:[#allocation6 + $0x260] ss:$16 sps:$4 sm:$0xff]  }
 0x228   :  { %3492 = vmatpush1.bf16.msra.mxu1 %v6522_v1  ;;  %v449_v62 = vld [vmem:[#allocation2 + $0x998] sm:$0xff] }
 0x229   :  { %3493 = vmatprep.subr.bf16.mxu1 %v6531_v34  ;;  %v453_v63 = vld [vmem:[#allocation2 + $0x9b8] sm:$0xff] }
 0x22a   :  { %5219 = vmatpush1.bf16.msra.mxu0 %v7253_v2  ;;  %v7280_v1 = vld [vmem:[#allocation6 + $0x1a0] ss:$16 sps:$4 sm:$0xff]   ;;  %v6603_v2 = vcombine.high %v449_v62, %v453_v63  ;;  %v7285_v34 = vld [vmem:[#allocation6 + $0x1c4] ss:$16 sps:$4 sm:$0xff]   ;;  %v6602_v5 = vcombine.low %v449_v62, %v453_v63 }
 0x22b   :  { %5220 = vmatprep.subr.bf16.mxu0 %v7258_v3  ;;  %v457_v3 = vld [vmem:[#allocation2 + $0x9d8] sm:$0xff] }
 0x22c   :  { %3494 = vmatpush1.bf16.msra.mxu1 %v6530_v6  ;;  %v461_v4 = vld [vmem:[#allocation2 + $0x9f8] sm:$0xff] }
 0x22d   :  { %3495 = vmatprep.subr.bf16.mxu1 %v6539_v8  ;;  %v7283_v6 = vld [vmem:[#allocation6 + $0x1c0] ss:$16 sps:$4 sm:$0xff]   ;;  %v7288_v8 = vld [vmem:[#allocation6 + $0x1e4] ss:$16 sps:$4 sm:$0xff]   ;;  %v6610_v19 = vcombine.low %v457_v3, %v461_v4 }
 0x22e   :  { %5221 = vmatpush1.bf16.msra.mxu0 %v7256_v7  ;;  %v6611_v7 = vcombine.high %v457_v3, %v461_v4  ;;  %v469_v36 = vld [vmem:[#allocation2 + $0xa38] sm:$0xff] }
 0x22f   :  { %5222 = vmatprep.subr.bf16.mxu0 %v7261_v9  ;;  %v465_v9 = vld [vmem:[#allocation2 + $0xa18] sm:$0xff] }
 0x230   :  { %3496 = vmatpush1.bf16.msra.mxu1 %v6538_v10  ;;  %v7286_v10 = vld [vmem:[#allocation6 + $0x1e0] ss:$16 sps:$4 sm:$0xff]   ;;  %v6618_v15 = vcombine.low %v465_v9, %v469_v36 }
 0x231   :  { %3497 = vmatprep.subr.bf16.mxu1 %v6547_v13  ;;  %v7291_v13 = vld [vmem:[#allocation6 + $0x204] ss:$16 sps:$4 sm:$0xff]   ;;  %v7301_v59 = vld [vmem:[#allocation6 + $0x280] ss:$16 sps:$4 sm:$0xff]  }
 0x232   :  { %5223 = vmatpush1.bf16.msra.mxu0 %v7259_v11  ;;  %v6619_v11 = vcombine.high %v465_v9, %v469_v36  ;;  %v477_v14 = vld [vmem:[#allocation2 + $0xa78] sm:$0xff] }
 0x233   :  { %5224 = vmatprep.subr.bf16.mxu0 %v7264_v23  ;;  %v473_v23 = vld [vmem:[#allocation2 + $0xa58] sm:$0xff] }
 0x234   :  { %3498 = vmatpush1.bf16.msra.mxu1 %v6546_v16  ;;  %v7289_v16 = vld [vmem:[#allocation6 + $0x200] ss:$16 sps:$4 sm:$0xff]   ;;  %v6626_v20 = vcombine.low %v473_v23, %v477_v14 }
 0x235   :  { %3510 = vmatprep.subr.bf16.mxu1 %v6555_v17  ;;  %v7294_v17 = vld [vmem:[#allocation6 + $0x224] ss:$16 sps:$4 sm:$0xff]   ;;  %v7304_v53 = vld [vmem:[#allocation6 + $0x2a0] ss:$16 sps:$4 sm:$0xff]  }
 0x236   :  { %5225 = vmatpush1.bf16.msra.mxu0 %v7262_v26  ;;  %v6627_v26 = vcombine.high %v473_v23, %v477_v14  ;;  %v485_v28 = vld [vmem:[#allocation2 + $0xab8] sm:$0xff] }
 0x237   :  { %5226 = vmatprep.subr.bf16.mxu0 %v7267_v18  ;;  %3500 = vmatmul.mubr.bf16.vlgmr.msra.gmra.mrb[8].mxu1 %v7753_v30  ;;  %v481_v18 = vld [vmem:[#allocation2 + $0xa98] sm:$0xff] }
 0x238   :  { %3511 = vmatpush1.bf16.msra.mxu1 %v6554_v21  ;;  %3542 = vmatprep.mubr.bf16.mxu1 %v7754_v32  ;;  %v7292_v21 = vld [vmem:[#allocation6 + $0x220] ss:$16 sps:$4 sm:$0xff]   ;;  %v6634_v29 = vcombine.low %v481_v18, %v485_v28  ;;  %v7300_v32 = vld [vmem:[#allocation6 + $0x264] ss:$16 sps:$4 sm:$0xff]  }
 0x239   :  { %3512 = vmatprep.subr.bf16.mxu1 %v6563_v43  ;;  %v7297_v43 = vld [vmem:[#allocation6 + $0x244] ss:$16 sps:$4 sm:$0xff]   ;;  %v7295_v30 = vld [vmem:[#allocation6 + $0x240] ss:$16 sps:$4 sm:$0xff]  }
 0x23a   :  { %5227 = vmatpush1.bf16.msra.mxu0 %v7265_v39  ;;  %v6635_v39 = vcombine.high %v481_v18, %v485_v28  ;;  %v493_v25 = vld [vmem:[#allocation2 + $0xaf8] sm:$0xff] }
 0x23b   :  { %5228 = vmatprep.subr.bf16.mxu0 %v7270_v22  ;;  %v489_v22 = vld [vmem:[#allocation2 + $0xad8] sm:$0xff] }
 0x23c   :  { %3513 = vmatpush1.bf16.msra.mxu1 %v6562_v31  ;;  %v6643_v31 = vcombine.high %v489_v22, %v493_v25  ;;  %v7307_v62 = vld [vmem:[#allocation6 + $0x2c0] ss:$16 sps:$4 sm:$0xff]  }
 0x23d   :  { %3514 = vmatprep.subr.bf16.mxu1 %v6571_v37  ;;  %v501_v37 = vld [vmem:[#allocation2 + $0xb38] sm:$0xff] }
 0x23e   :  { %5229 = vmatpush1.bf16.msra.mxu0 %v7268_v33  ;;  %v497_v33 = vld [vmem:[#allocation2 + $0xb18] sm:$0xff] }
 0x23f   :  { %5230 = vmatprep.subr.bf16.mxu0 %v7273_v12  ;;  %v6642_v12 = vcombine.low %v489_v22, %v493_v25  ;;  %v6651_v44 = vcombine.high %v497_v33, %v501_v37  ;;  %v7310_v3 = vld [vmem:[#allocation6 + $0x2e0] ss:$16 sps:$4 sm:$0xff]  }
 0x240   :  { %3515 = vmatpush1.bf16.msra.mxu1 %v6570_v57  ;;  %v7303_v57 = vld [vmem:[#allocation6 + $0x284] ss:$16 sps:$4 sm:$0xff]   ;;  %v7313_v9 = vld [vmem:[#allocation6 + $0x300] ss:$16 sps:$4 sm:$0xff]  }
 0x241   :  { %3516 = vmatprep.subr.bf16.mxu1 %v6579_v46  ;;  %v509_v46 = vld [vmem:[#allocation2 + $0xb78] sm:$0xff] }
 0x242   :  { %5231 = vmatpush1.bf16.msra.mxu0 %v7271_v45  ;;  %v505_v45 = vld [vmem:[#allocation2 + $0xb58] sm:$0xff] }
 0x243   :  { %5232 = vmatprep.subr.bf16.mxu0 %v7276_v48  ;;  %v6650_v48 = vcombine.low %v497_v33, %v501_v37  ;;  %v6659_v49 = vcombine.high %v505_v45, %v509_v46  ;;  %v7316_v14 = vld [vmem:[#allocation6 + $0x320] ss:$16 sps:$4 sm:$0xff]   ;;  %v606_v37 = vsub.s32 3, %v8205_v24 }
 0x244   :  { %3517 = vmatpush1.bf16.msra.mxu1 %v6578_v50  ;;  %v7306_v50 = vld [vmem:[#allocation6 + $0x2a4] ss:$16 sps:$4 sm:$0xff]   ;;  %v7319_v28 = vld [vmem:[#allocation6 + $0x340] ss:$16 sps:$4 sm:$0xff]  }
 0x245   :  { %3518 = vmatprep.subr.bf16.mxu1 %v6587_v52  ;;  %v517_v52 = vld [vmem:[#allocation2 + $0xbb8] sm:$0xff] }
 0x246   :  { %5233 = vmatpush1.bf16.msra.mxu0 %v7274_v51  ;;  %v513_v51 = vld [vmem:[#allocation2 + $0xb98] sm:$0xff] }
 0x247   :  { %5234 = vmatprep.subr.bf16.mxu0 %v7279_v54  ;;  %v6658_v54 = vcombine.low %v505_v45, %v509_v46  ;;  %v6667_v55 = vcombine.high %v513_v51, %v517_v52  ;;  %v7322_v22 = vld [vmem:[#allocation6 + $0x360] ss:$16 sps:$4 sm:$0xff]  }
 0x248   :  { %3519 = vmatpush1.bf16.msra.mxu1 %v6586_v56  ;;  %v7309_v56 = vld [vmem:[#allocation6 + $0x2c4] ss:$16 sps:$4 sm:$0xff]  }
 0x249   :  { %3520 = vmatprep.subr.bf16.mxu1 %v6595_v60  ;;  %v525_v60 = vld [vmem:[#allocation2 + $0xbf8] sm:$0xff] }
 0x24a   :  { %5235 = vmatpush1.bf16.msra.mxu0 %v7277_v58  ;;  %v521_v58 = vld [vmem:[#allocation2 + $0xbd8] sm:$0xff] }
 0x24b   :  { %5236 = vmatprep.subr.bf16.mxu0 %v7282_v61  ;;  %v6666_v61 = vcombine.low %v513_v51, %v517_v52  ;;  %v6675_v63 = vcombine.high %v521_v58, %v525_v60  ;;  %v581_v45 = vld [vmem:[#allocation2 + $0xdb8] sm:$0xff] }
 0x24c   :  { %3521 = vmatpush1.bf16.msra.mxu1 %v6594_v0  ;;  %v7312_v0 = vld [vmem:[#allocation6 + $0x2e4] ss:$16 sps:$4 sm:$0xff]  }
 0x24d   :  { %3522 = vmatprep.subr.bf16.mxu1 %v6603_v2  ;;  %v533_v2 = vld [vmem:[#allocation2 + $0xc38] sm:$0xff] }
 0x24e   :  { %5237 = vmatpush1.bf16.msra.mxu0 %v7280_v1  ;;  %v529_v1 = vld [vmem:[#allocation2 + $0xc18] sm:$0xff] }
 0x24f   :  { %5238 = vmatprep.subr.bf16.mxu0 %v7285_v34  ;;  %v6674_v34 = vcombine.low %v521_v58, %v525_v60  ;;  %v6683_v4 = vcombine.high %v529_v1, %v533_v2  ;;  %v7333_v52 = vld [vmem:[#allocation6 + $0x3c4] ss:$16 sps:$4 sm:$0xff]  }
 0x250   :  { %3523 = vmatpush1.bf16.msra.mxu1 %v6602_v5  ;;  %v7315_v5 = vld [vmem:[#allocation6 + $0x304] ss:$16 sps:$4 sm:$0xff]  }
 0x251   :  { %3524 = vmatprep.subr.bf16.mxu1 %v6611_v7  ;;  %v541_v7 = vld [vmem:[#allocation2 + $0xc78] sm:$0xff] }
 0x252   :  { %5239 = vmatpush1.bf16.msra.mxu0 %v7283_v6  ;;  %v537_v6 = vld [vmem:[#allocation2 + $0xc58] sm:$0xff] }
 0x253   :  { %5240 = vmatprep.subr.bf16.mxu0 %v7288_v8  ;;  %v6682_v8 = vcombine.low %v529_v1, %v533_v2  ;;  %v6691_v36 = vcombine.high %v537_v6, %v541_v7  ;;  %v6690_v23 = vcombine.low %v537_v6, %v541_v7 }
 0x254   :  { %3525 = vmatpush1.bf16.msra.mxu1 %v6610_v19  ;;  %v7318_v19 = vld [vmem:[#allocation6 + $0x324] ss:$16 sps:$4 sm:$0xff]  }
 0x255   :  { %3526 = vmatprep.subr.bf16.mxu1 %v6619_v11  ;;  %v549_v11 = vld [vmem:[#allocation2 + $0xcb8] sm:$0xff] }
 0x256   :  { %5241 = vmatpush1.bf16.msra.mxu0 %v7286_v10  ;;  %v545_v10 = vld [vmem:[#allocation2 + $0xc98] sm:$0xff] }
 0x257   :  { %5253 = vmatprep.subr.bf16.mxu0 %v7291_v13  ;;  %v7755_v13 = vld [vmem:[%s8295_s0 + $0x10] ss:$28 sps:$4 sm:$0xff]   ;;  %v6698_v18 = vcombine.low %v545_v10, %v549_v11 }
 0x258   :  { %3527 = vmatpush1.bf16.msra.mxu1 %v6618_v15  ;;  %v6699_v15 = vcombine.high %v545_v10, %v549_v11  ;;  %v7339_v11 = vld [vmem:[#allocation6 + $0xc] ss:$16 sps:$4 sm:$0xff]  }
 0x259   :  { %5243 = vmatmul.mubr.bf16.vlgmr.msra.gmra.mrb[8].mxu0 %v8223_v27  ;;  %3528 = vmatprep.subr.bf16.mxu1 %v6627_v26  ;;  %v553_v26 = vld [vmem:[#allocation2 + $0xcd8] sm:$0xff] }
 0x25a   :  { %5254 = vmatpush1.bf16.msra.mxu0 %v7289_v16  ;;  %v7321_v16 = vld [vmem:[#allocation6 + $0x344] ss:$16 sps:$4 sm:$0xff]  }
 0x25b   :  { %5255 = vmatprep.subr.bf16.mxu0 %v7294_v17  ;;  %v557_v17 = vld [vmem:[#allocation2 + $0xcf8] sm:$0xff] }
 0x25c   :  { %3529 = vmatpush1.bf16.msra.mxu1 %v6626_v20  ;;  %v6707_v20 = vcombine.high %v553_v26, %v557_v17 }
 0x25d   :  { %3530 = vmatprep.subr.bf16.mxu1 %v6635_v39  ;;  %v561_v39 = vld [vmem:[#allocation2 + $0xd18] sm:$0xff] }
 0x25e   :  { %5256 = vmatpush1.bf16.msra.mxu0 %v7292_v21  ;;  %v7324_v21 = vld [vmem:[#allocation6 + $0x364] ss:$16 sps:$4 sm:$0xff]  }
 0x25f   :  { %5257 = vmatprep.subr.bf16.mxu0 %v7297_v43  ;;  %v565_v43 = vld [vmem:[#allocation2 + $0xd38] sm:$0xff] }
 0x260   :  { %3531 = vmatpush1.bf16.msra.mxu1 %v6634_v29  ;;  %v6715_v25 = vcombine.high %v561_v39, %v565_v43  ;;  %v7327_v29 = vld [vmem:[#allocation6 + $0x384] ss:$16 sps:$4 sm:$0xff]   ;;  %v6714_v33 = vcombine.low %v561_v39, %v565_v43  ;;  %v7343_v39 = vld [vmem:[#allocation6 + $0x48] ss:$16 sps:$4 sm:$0xff]   ;;  %v7348_v43 = vld [vmem:[#allocation6 + $0x6c] ss:$16 sps:$4 sm:$0xff]  }
 0x261   :  { %3532 = vmatprep.subr.bf16.mxu1 %v6643_v31  ;;  %v573_v31 = vld [vmem:[#allocation2 + $0xd78] sm:$0xff] }
 0x262   :  { %5258 = vmatpush1.bf16.msra.mxu0 %v7295_v30  ;;  %v569_v30 = vld [vmem:[#allocation2 + $0xd58] sm:$0xff] }
 0x263   :  { %5259 = vmatprep.subr.bf16.mxu0 %v7300_v32  ;;  %v602_v32 = vsub.s32 2, %v8205_v24 }
 0x264   :  { %3533 = vmatpush1.bf16.msra.mxu1 %v6642_v12  ;;  %v7325_v12 = vld [vmem:[#allocation6 + $0x380] ss:$16 sps:$4 sm:$0xff]  }
 0x265   :  { %3534 = vmatprep.subr.bf16.mxu1 %v6651_v44  ;;  %v7330_v44 = vld [vmem:[#allocation6 + $0x3a4] ss:$16 sps:$4 sm:$0xff]   ;;  %v603_v46 = vrot.slane %v8210_v41, %v602_v32 }
 0x266   :  { %5260 = vmatpush1.bf16.msra.mxu0 %v7298_v40  ;;  %v6723_v40 = vcombine.high %v569_v30, %v573_v31 }
 0x267   :  { %5261 = vmatprep.subr.bf16.mxu0 %v7303_v57  ;;  %v577_v57 = vld [vmem:[#allocation2 + $0xd98] sm:$0xff] }
 0x268   :  { %3535 = vmatpush1.bf16.msra.mxu1 %v6650_v48  ;;  %v607_v48 = vrot.slane %v8210_v41, %v606_v37 }
 0x269   :  { %3536 = vmatprep.subr.bf16.mxu1 %v6659_v49  ;;  %v7328_v49 = vld [vmem:[#allocation6 + $0x3a0] ss:$16 sps:$4 sm:$0xff]  }
 0x26a   :  { %5262 = vmatpush1.bf16.msra.mxu0 %v7301_v59  ;;  %v6722_v59 = vcombine.low %v569_v30, %v573_v31  ;;  %v7387_v30 = vld [vmem:[#allocation6 + $0x484] ss:$16 sps:$4 sm:$0xff]   ;;  %v7349_v31 = vld [vmem:[#allocation6 + $0x88] ss:$16 sps:$4 sm:$0xff]  }
 0x26b   :  { %5263 = vmatprep.subr.bf16.mxu0 %v7306_v50  ;;  %v6731_v50 = vcombine.high %v577_v57, %v581_v45 }
 0x26c   :  { %3537 = vmatpush1.bf16.msra.mxu1 %v6658_v54  ;;  %v585_v54 = vld [vmem:[#allocation2 + $0xdd8] sm:$0xff] }
 0x26d   :  { %3538 = vmatprep.subr.bf16.mxu1 %v6667_v55 }
 0x26e   :  { %5264 = vmatpush1.bf16.msra.mxu0 %v7304_v53  ;;  %v589_v53 = vld [vmem:[#allocation2 + $0xdf8] sm:$0xff] }
 0x26f   :  { %5265 = vmatprep.subr.bf16.mxu0 %v7309_v56  ;;  %v6739_v1 = vcombine.high %v585_v54, %v589_v53  ;;  %v6738_v6 = vcombine.low %v585_v54, %v589_v53  ;;  %v7403_v54 = vld [vmem:[#allocation6 + $0x4e0] ss:$16 sps:$4 sm:$0xff]   ;;  %v7411_v53 = vld [vmem:[#allocation6 + $0x504] ss:$16 sps:$4 sm:$0xff]  }
 0x270   :  { %3539 = vmatpush1.bf16.msra.mxu1 %v6666_v61  ;;  %v6730_v61 = vcombine.low %v577_v57, %v581_v45  ;;  %v7357_v57 = vld [vmem:[#allocation6 + $0xcc] ss:$16 sps:$4 sm:$0xff]   ;;  %v7391_v45 = vld [vmem:[#allocation6 + $0x4a0] ss:$16 sps:$4 sm:$0xff]  }
 0x271   :  { %3540 = vmatprep.subr.bf16.mxu1 %v6675_v63 }
 0x272   :  { %5266 = vmatpush1.bf16.msra.mxu0 %v7307_v62 }
 0x273   :  { %5267 = vmatprep.subr.bf16.mxu0 %v7312_v0  ;;  %v7331_v0 = vld [vmem:[#allocation6 + $0x3c0] ss:$16 sps:$4 sm:$0xff]  }
 0x274   :  { %3541 = vmatpush1.bf16.msra.mxu1 %v6674_v34 }
 0x275   :  { %3553 = vmatprep.subr.bf16.mxu1 %v6683_v4 }
 0x276   :  { %5268 = vmatpush1.bf16.msra.mxu0 %v7310_v3  ;;  %v7336_v3 = vld [vmem:[#allocation6 + $0x3e4] ss:$16 sps:$4 sm:$0xff]  }
 0x277   :  { %5269 = vmatprep.subr.bf16.mxu0 %v7315_v5  ;;  %3543 = vmatmul.mubr.bf16.vlgmr.msra.gmra.mrb[8].mxu1 %v7755_v13  ;;  %v7363_v13 = vld [vmem:[#allocation6 + $0x404] ss:$16 sps:$4 sm:$0xff]  }
 0x278   :  { %3554 = vmatpush1.bf16.msra.mxu1 %v6682_v8  ;;  %3585 = vmatprep.mubr.bf16.mxu1 %v7960_v38  ;;  %v6706_v38 = vcombine.low %v553_v26, %v557_v17  ;;  %v7756_v26 = vld [vmem:[%s8295_s0 + $0x18] ss:$28 sps:$4 sm:$0xff]   ;;  %v7369_v17 = vld [vmem:[#allocation6 + $0x424] ss:$16 sps:$4 sm:$0xff]  }
 0x279   :  { %3555 = vmatprep.subr.bf16.mxu1 %v6691_v36 }
 0x27a   :  { %5270 = vmatpush1.bf16.msra.mxu0 %v7313_v9  ;;  %v7334_v9 = vld [vmem:[#allocation6 + $0x3e0] ss:$16 sps:$4 sm:$0xff]  }
 0x27b   :  { %5271 = vmatprep.subr.bf16.mxu0 %v7318_v19 }
 0x27c   :  { %3556 = vmatpush1.bf16.msra.mxu1 %v6690_v23 }
 0x27d   :  { %3557 = vmatprep.subr.bf16.mxu1 %v6699_v15  ;;  %v7342_v15 = vld [vmem:[#allocation6 + $0x2c] ss:$16 sps:$4 sm:$0xff]  }
 0x27e   :  { %5272 = vmatpush1.bf16.msra.mxu0 %v7316_v14  ;;  %v7337_v14 = vld [vmem:[#allocation6 + $0x8] ss:$16 sps:$4 sm:$0xff]  }
 0x27f   :  { %5273 = vmatprep.subr.bf16.mxu0 %v7321_v16  ;;  %v7361_v16 = vld [vmem:[#allocation6 + $0x400] ss:$16 sps:$4 sm:$0xff]  }
 0x280   :  { %3558 = vmatpush1.bf16.msra.mxu1 %v6698_v18  ;;  %v7340_v18 = vld [vmem:[#allocation6 + $0x28] ss:$16 sps:$4 sm:$0xff]  }
 0x281   :  { %3559 = vmatprep.subr.bf16.mxu1 %v6707_v20  ;;  %v7367_v20 = vld [vmem:[#allocation6 + $0x420] ss:$16 sps:$4 sm:$0xff]  }
 0x282   :  { %5274 = vmatpush1.bf16.msra.mxu0 %v7319_v28  ;;  %v7345_v28 = vld [vmem:[#allocation6 + $0x4c] ss:$16 sps:$4 sm:$0xff]  }
 0x283   :  { %5275 = vmatprep.subr.bf16.mxu0 %v7324_v21  ;;  %v7375_v21 = vld [vmem:[#allocation6 + $0x444] ss:$16 sps:$4 sm:$0xff]  }
 0x284   :  { %3560 = vmatpush1.bf16.msra.mxu1 %v6706_v38  ;;  %v7373_v38 = vld [vmem:[#allocation6 + $0x440] ss:$16 sps:$4 sm:$0xff]  }
 0x285   :  { %3561 = vmatprep.subr.bf16.mxu1 %v6715_v25  ;;  %v7346_v25 = vld [vmem:[#allocation6 + $0x68] ss:$16 sps:$4 sm:$0xff]  }
 0x286   :  { %5276 = vmatpush1.bf16.msra.mxu0 %v7322_v22  ;;  %v7381_v22 = vld [vmem:[#allocation6 + $0x464] ss:$16 sps:$4 sm:$0xff]  }
 0x287   :  { %5277 = vmatprep.subr.bf16.mxu0 %v7327_v29  ;;  %v7351_v29 = vld [vmem:[#allocation6 + $0x8c] ss:$16 sps:$4 sm:$0xff]  }
 0x288   :  { %3562 = vmatpush1.bf16.msra.mxu1 %v6714_v33  ;;  %v7354_v33 = vld [vmem:[#allocation6 + $0xac] ss:$16 sps:$4 sm:$0xff]  }
 0x289   :  { %3563 = vmatprep.subr.bf16.mxu1 %v6723_v40  ;;  %v7393_v40 = vld [vmem:[#allocation6 + $0x4a4] ss:$16 sps:$4 sm:$0xff]  }
 0x28a   :  { %5278 = vmatpush1.bf16.msra.mxu0 %v7325_v12  ;;  %v3243_v51 = vpop.f32.mrb[4].mxu1  ;;  %v7385_v12 = vld [vmem:[#allocation6 + $0x480] ss:$16 sps:$4 sm:$0xff]  }
 0x28b   :  { %5279 = vmatprep.subr.bf16.mxu0 %v7330_v44  ;;  %v7118_v55 = vadd.f32 %v3243_v51, %v603_v46  ;;  %v3245_v56 = vpop.f32.mrb[5].mxu1  ;;  %v7352_v44 = vld [vmem:[#allocation6 + $0xa8] ss:$16 sps:$4 sm:$0xff]  }
 0x28c   :  { %v7119_v58 = vadd.f32 %v3245_v56, %v607_v48  ;;  %v3247_v60 = vpop.f32.mrb[6].mxu1  ;;  %3564 = vmatpush1.bf16.msra.mxu1 %v6722_v59  ;;  %v7360_v59 = vld [vmem:[#allocation6 + $0xec] ss:$16 sps:$4 sm:$0xff]   ;;  %v7358_v51 = vld [vmem:[#allocation6 + $0xe8] ss:$16 sps:$4 sm:$0xff]  }
 0x28d   :  { %v3614_v62 = vmul.f32 0.2, %v7118_v55  ;;  %v7120_v63 = vadd.f32 %v3247_v60, %v603_v46  ;;  %v3249_v41 = vpop.f32.mrb[7].mxu1  ;;  %3565 = vmatprep.subr.bf16.mxu1 %v6731_v50  ;;  %vm3598_vm4 = vcmp.ge.f32.partialorder %v7118_v55, 0.0  ;;  %v7399_v46 = vld [vmem:[#allocation6 + $0x4c4] ss:$16 sps:$4 sm:$0xff]  }
 0x28e   :  { %5280 = vmatpush1.bf16.msra.mxu0 %v7328_v49  ;;  %v3615_v2 = vmul.f32 0.2, %v7119_v58  ;;  %v7121_v34 = vadd.f32 %v3249_v41, %v607_v48  ;;  %vm3599_vm5 = vcmp.ge.f32.partialorder %v7119_v58, 0.0  ;;  %v7355_v48 = vld [vmem:[#allocation6 + $0xc8] ss:$16 sps:$4 sm:$0xff]  }
 0x28f   :  { %5281 = vmatprep.subr.bf16.mxu0 %v7333_v52  ;;  %vm3606_vm6 = vcmp.ge.f32.partialorder %v7120_v63, 0.0  ;;  %v3622_v4 = vmul.f32 0.2, %v7120_v63  ;;  %v3630_v7 = vsel %vm3598_vm4, %v7118_v55, %v3614_v62  ;;  %v7397_v49 = vld [vmem:[#allocation6 + $0x4c0] ss:$16 sps:$4 sm:$0xff]  }
 0x290   :  { %vm3607_vm7 = vcmp.ge.f32.partialorder %v7121_v34, 0.0  ;;  %v3623_v5 = vmul.f32 0.2, %v7121_v34  ;;  %3566 = vmatpush1.bf16.msra.mxu1 %v6730_v61  ;;  %v3631_v19 = vsel %vm3599_vm5, %v7119_v58, %v3615_v2  ;;  %v7405_v50 = vld [vmem:[#allocation6 + $0x4e4] ss:$16 sps:$4 sm:$0xff]  }
 0x291   :  { %v3638_v8 = vsel %vm3606_vm6, %v7120_v63, %v3622_v4  ;;  %3567 = vmatprep.subr.bf16.mxu1 %v6739_v1  ;;  %v7366_v52 = vld [vmem:[#allocation6 + $0x10c] ss:$16 sps:$4 sm:$0xff]   ;;  %v7364_v55 = vld [vmem:[#allocation6 + $0x108] ss:$16 sps:$4 sm:$0xff]   ;;  %v7409_v58 = vld [vmem:[#allocation6 + $0x500] ss:$16 sps:$4 sm:$0xff]  }
 0x292   :  { %5282 = vmatpush1.bf16.msra.mxu0 %v7331_v0  ;;  %v8249_v36 = vpack.c.bf16 %v3638_v8, %v3630_v7  ;;  %v3639_v10 = vsel %vm3607_vm7, %v7121_v34, %v3623_v5  ;;  %v7372_v56 = vld [vmem:[#allocation6 + $0x12c] ss:$16 sps:$4 sm:$0xff]   ;;  %v7417_v60 = vld [vmem:[#allocation6 + $0x524] ss:$16 sps:$4 sm:$0xff]   ;;  %v7370_v61 = vld [vmem:[#allocation6 + $0x128] ss:$16 sps:$4 sm:$0xff]  }
 0x293   :  { %5283 = vmatprep.subr.bf16.mxu0 %v7336_v3  ;;  %v8251_v23 = vpack.c.bf16 %v3639_v10, %v3631_v19  ;;  %v7378_v62 = vld [vmem:[#allocation6 + $0x14c] ss:$16 sps:$4 sm:$0xff]   ;;  %v7415_v63 = vld [vmem:[#allocation6 + $0x520] ss:$16 sps:$4 sm:$0xff]   ;;  %v7423_v41 = vld [vmem:[#allocation6 + $0x544] ss:$16 sps:$4 sm:$0xff]  }
 0x294   :  { %3568 = vmatpush1.bf16.msra.mxu1 %v6738_v6  ;;  %v7376_v0 = vld [vmem:[#allocation6 + $0x148] ss:$16 sps:$4 sm:$0xff]   ;;  %v7384_v1 = vld [vmem:[#allocation6 + $0x16c] ss:$16 sps:$4 sm:$0xff]   ;;  %v7421_v2 = vld [vmem:[#allocation6 + $0x540] ss:$16 sps:$4 sm:$0xff]  }
 0x295   :  { %5285 = vmatprep.mubr.bf16.mxu0 %v8251_v23  ;;  %5382 = vmatprep.subr.bf16.mxu1 %v7339_v11  ;;  %v7429_v34 = vld [vmem:[#allocation6 + $0x564] ss:$16 sps:$4 sm:$0xff]   ;;  %v7382_v3 = vld [vmem:[#allocation6 + $0x168] ss:$16 sps:$4 sm:$0xff]   ;;  %v7390_v4 = vld [vmem:[#allocation6 + $0x18c] ss:$16 sps:$4 sm:$0xff]  }
 0x296   :  { %5284 = vmatpush1.bf16.msra.mxu0 %v7334_v9  ;;  %v7427_v5 = vld [vmem:[#allocation6 + $0x560] ss:$16 sps:$4 sm:$0xff]   ;;  %v7435_v6 = vld [vmem:[#allocation6 + $0x584] ss:$16 sps:$4 sm:$0xff]   ;;  %v7388_v7 = vld [vmem:[#allocation6 + $0x188] ss:$16 sps:$4 sm:$0xff]  }
 0x297   :  { %5296 = vmatprep.subr.bf16.mxu0 %v7363_v13  ;;  %3586 = vmatmul.mubr.bf16.vlgmr.msra.gmra.mrb[8].mxu1 %v7756_v26  ;;  %v7396_v8 = vld [vmem:[#allocation6 + $0x1ac] ss:$16 sps:$4 sm:$0xff]   ;;  %v7433_v9 = vld [vmem:[#allocation6 + $0x580] ss:$16 sps:$4 sm:$0xff]   ;;  %v7441_v19 = vld [vmem:[#allocation6 + $0x5a4] ss:$16 sps:$4 sm:$0xff]  }
 0x298   :  { %5383 = vmatpush1.bf16.msra.mxu1 %v7337_v14  ;;  %5414 = vmatprep.mubr.bf16.mxu1 %v8226_v47  ;;  %v7379_v47 = vld [vmem:[#allocation6 + $0x460] ss:$16 sps:$4 sm:$0xff]   ;;  %v7394_v10 = vld [vmem:[#allocation6 + $0x1a8] ss:$16 sps:$4 sm:$0xff]   ;;  %v7402_v11 = vld [vmem:[#allocation6 + $0x1cc] ss:$16 sps:$4 sm:$0xff]  }
 0x299   :  { %5286 = vmatmul.mubr.bf16.vlgmr.msra.gmra.mrb[8].mxu0 %v8249_v36  ;;  %5384 = vmatprep.subr.bf16.mxu1 %v7342_v15  ;;  %v7439_v13 = vld [vmem:[#allocation6 + $0x5a0] ss:$16 sps:$4 sm:$0xff]   ;;  %v7447_v14 = vld [vmem:[#allocation6 + $0x5c4] ss:$16 sps:$4 sm:$0xff]   ;;  %v7400_v15 = vld [vmem:[#allocation6 + $0x1c8] ss:$16 sps:$4 sm:$0xff]  }
 0x29a   :  { %5297 = vmatpush1.bf16.msra.mxu0 %v7361_v16  ;;  %v7408_v16 = vld [vmem:[#allocation6 + $0x1ec] ss:$16 sps:$4 sm:$0xff]   ;;  %v7445_v26 = vld [vmem:[#allocation6 + $0x5c0] ss:$16 sps:$4 sm:$0xff]  }
 0x29b   :  { %5298 = vmatprep.subr.bf16.mxu0 %v7369_v17  ;;  %v7453_v17 = vld [vmem:[#allocation6 + $0x5e4] ss:$16 sps:$4 sm:$0xff]  }
 0x29c   :  { %5385 = vmatpush1.bf16.msra.mxu1 %v7340_v18  ;;  %v7406_v18 = vld [vmem:[#allocation6 + $0x1e8] ss:$16 sps:$4 sm:$0xff]  }
 0x29d   :  { %5386 = vmatprep.subr.bf16.mxu1 %v7345_v28  ;;  %v7414_v28 = vld [vmem:[#allocation6 + $0x20c] ss:$16 sps:$4 sm:$0xff]  }
 0x29e   :  { %5299 = vmatpush1.bf16.msra.mxu0 %v7367_v20  ;;  %v7451_v20 = vld [vmem:[#allocation6 + $0x5e0] ss:$16 sps:$4 sm:$0xff]  }
 0x29f   :  { %5300 = vmatprep.subr.bf16.mxu0 %v7375_v21  ;;  %v7507_v21 = vld [vmem:[#allocation6 + $0x604] ss:$16 sps:$4 sm:$0xff]  }
 0x2a0   :  { %5387 = vmatpush1.bf16.msra.mxu1 %v7343_v39  ;;  %v7412_v39 = vld [vmem:[#allocation6 + $0x208] ss:$16 sps:$4 sm:$0xff]  }
 0x2a1   :  { %5388 = vmatprep.subr.bf16.mxu1 %v7348_v43  ;;  %v7420_v43 = vld [vmem:[#allocation6 + $0x22c] ss:$16 sps:$4 sm:$0xff]  }
 0x2a2   :  { %5301 = vmatpush1.bf16.msra.mxu0 %v7373_v38  ;;  %v7418_v38 = vld [vmem:[#allocation6 + $0x228] ss:$16 sps:$4 sm:$0xff]  }
 0x2a3   :  { %5302 = vmatprep.subr.bf16.mxu0 %v7381_v22  ;;  %v7426_v22 = vld [vmem:[#allocation6 + $0x24c] ss:$16 sps:$4 sm:$0xff]  }
 0x2a4   :  { %5389 = vmatpush1.bf16.msra.mxu1 %v7346_v25  ;;  %v7424_v25 = vld [vmem:[#allocation6 + $0x248] ss:$16 sps:$4 sm:$0xff]  }
 0x2a5   :  { %5390 = vmatprep.subr.bf16.mxu1 %v7351_v29  ;;  %v7432_v29 = vld [vmem:[#allocation6 + $0x26c] ss:$16 sps:$4 sm:$0xff]  }
 0x2a6   :  { %5303 = vmatpush1.bf16.msra.mxu0 %v7379_v47  ;;  %v7430_v47 = vld [vmem:[#allocation6 + $0x268] ss:$16 sps:$4 sm:$0xff]  }
 0x2a7   :  { %5304 = vmatprep.subr.bf16.mxu0 %v7387_v30  ;;  %v7438_v30 = vld [vmem:[#allocation6 + $0x28c] ss:$16 sps:$4 sm:$0xff]  }
 0x2a8   :  { %5391 = vmatpush1.bf16.msra.mxu1 %v7349_v31  ;;  %v7436_v31 = vld [vmem:[#allocation6 + $0x288] ss:$16 sps:$4 sm:$0xff]  }
 0x2a9   :  { %5392 = vmatprep.subr.bf16.mxu1 %v7354_v33  ;;  %v610_v33 = vsub.s32 4, %v8205_v24 }
 0x2aa   :  { %5305 = vmatpush1.bf16.msra.mxu0 %v7385_v12  ;;  %v7444_v12 = vld [vmem:[#allocation6 + $0x2ac] ss:$16 sps:$4 sm:$0xff]  }
 0x2ab   :  { %5306 = vmatprep.subr.bf16.mxu0 %v7393_v40 }
 0x2ac   :  { %5393 = vmatpush1.bf16.msra.mxu1 %v7352_v44  ;;  %v7442_v44 = vld [vmem:[#allocation6 + $0x2a8] ss:$16 sps:$4 sm:$0xff]  }
 0x2ad   :  { %5394 = vmatprep.subr.bf16.mxu1 %v7357_v57 }
 0x2ae   :  { %5307 = vmatpush1.bf16.msra.mxu0 %v7391_v45  ;;  %v7450_v45 = vld [vmem:[#allocation6 + $0x2cc] ss:$16 sps:$4 sm:$0xff]  }
 0x2af   :  { %5308 = vmatprep.subr.bf16.mxu0 %v7399_v46 }
 0x2b0   :  { %5395 = vmatpush1.bf16.msra.mxu1 %v7355_v48 }
 0x2b1   :  { %5396 = vmatprep.subr.bf16.mxu1 %v7360_v59 }
 0x2b2   :  { %5309 = vmatpush1.bf16.msra.mxu0 %v7397_v49  ;;  %v7448_v49 = vld [vmem:[#allocation6 + $0x2c8] ss:$16 sps:$4 sm:$0xff]  }
 0x2b3   :  { %5310 = vmatprep.subr.bf16.mxu0 %v7405_v50 }
 0x2b4   :  { %5397 = vmatpush1.bf16.msra.mxu1 %v7358_v51 }
 0x2b5   :  { %5398 = vmatprep.subr.bf16.mxu1 %v7366_v52  ;;  %v7456_v52 = vld [vmem:[#allocation6 + $0x2ec] ss:$16 sps:$4 sm:$0xff]  }
 0x2b6   :  { %5311 = vmatpush1.bf16.msra.mxu0 %v7403_v54 }
 0x2b7   :  { %5312 = vmatprep.subr.bf16.mxu0 %v7411_v53 }
 0x2b8   :  { %5399 = vmatpush1.bf16.msra.mxu1 %v7364_v55 }
 0x2b9   :  { %5400 = vmatprep.subr.bf16.mxu1 %v7372_v56 }
 0x2ba   :  { %5313 = vmatpush1.bf16.msra.mxu0 %v7409_v58 }
 0x2bb   :  { %5314 = vmatprep.subr.bf16.mxu0 %v7417_v60 }
 0x2bc   :  { %5401 = vmatpush1.bf16.msra.mxu1 %v7370_v61  ;;  %v7454_v61 = vld [vmem:[#allocation6 + $0x2e8] ss:$16 sps:$4 sm:$0xff]  }
 0x2bd   :  { %5402 = vmatprep.subr.bf16.mxu1 %v7378_v62 }
 0x2be   :  { %5315 = vmatpush1.bf16.msra.mxu0 %v7415_v63  ;;  %v7459_v63 = vld [vmem:[#allocation6 + $0x30c] ss:$16 sps:$4 sm:$0xff]  }
 0x2bf   :  { %5316 = vmatprep.subr.bf16.mxu0 %v7423_v41 }
 0x2c0   :  { %5403 = vmatpush1.bf16.msra.mxu1 %v7376_v0 }
 0x2c1   :  { %5404 = vmatprep.subr.bf16.mxu1 %v7384_v1 }
 0x2c2   :  { %5317 = vmatpush1.bf16.msra.mxu0 %v7421_v2 }
 0x2c3   :  { %5318 = vmatprep.subr.bf16.mxu0 %v7429_v34 }
 0x2c4   :  { %5405 = vmatpush1.bf16.msra.mxu1 %v7382_v3 }
 0x2c5   :  { %5406 = vmatprep.subr.bf16.mxu1 %v7390_v4  ;;  %v7457_v4 = vld [vmem:[#allocation6 + $0x308] ss:$16 sps:$4 sm:$0xff]  }
 0x2c6   :  { %5319 = vmatpush1.bf16.msra.mxu0 %v7427_v5  ;;  %v7505_v5 = vld [vmem:[#allocation6 + $0x600] ss:$16 sps:$4 sm:$0xff]  }
 0x2c7   :  { %5320 = vmatprep.subr.bf16.mxu0 %v7435_v6  ;;  %v7462_v6 = vld [vmem:[#allocation6 + $0x32c] ss:$16 sps:$4 sm:$0xff]  }
 0x2c8   :  { %5407 = vmatpush1.bf16.msra.mxu1 %v7388_v7  ;;  %v7513_v7 = vld [vmem:[#allocation6 + $0x624] ss:$16 sps:$4 sm:$0xff]  }
 0x2c9   :  { %5408 = vmatprep.subr.bf16.mxu1 %v7396_v8  ;;  %v7460_v8 = vld [vmem:[#allocation6 + $0x328] ss:$16 sps:$4 sm:$0xff]  }
 0x2ca   :  { %5321 = vmatpush1.bf16.msra.mxu0 %v7433_v9  ;;  %v7511_v9 = vld [vmem:[#allocation6 + $0x620] ss:$16 sps:$4 sm:$0xff]  }
 0x2cb   :  { %5322 = vmatprep.subr.bf16.mxu0 %v7441_v19  ;;  %v7465_v19 = vld [vmem:[#allocation6 + $0x34c] ss:$16 sps:$4 sm:$0xff]  }
 0x2cc   :  { %5409 = vmatpush1.bf16.msra.mxu1 %v7394_v10  ;;  %v7519_v10 = vld [vmem:[#allocation6 + $0x644] ss:$16 sps:$4 sm:$0xff]  }
 0x2cd   :  { %5410 = vmatprep.subr.bf16.mxu1 %v7402_v11  ;;  %v7463_v11 = vld [vmem:[#allocation6 + $0x348] ss:$16 sps:$4 sm:$0xff]  }
 0x2ce   :  { %5323 = vmatpush1.bf16.msra.mxu0 %v7439_v13  ;;  %v7517_v13 = vld [vmem:[#allocation6 + $0x640] ss:$16 sps:$4 sm:$0xff]  }
 0x2cf   :  { %5324 = vmatprep.subr.bf16.mxu0 %v7447_v14  ;;  %v7468_v14 = vld [vmem:[#allocation6 + $0x36c] ss:$16 sps:$4 sm:$0xff]  }
 0x2d0   :  { %5411 = vmatpush1.bf16.msra.mxu1 %v7400_v15  ;;  %v7525_v15 = vld [vmem:[#allocation6 + $0x664] ss:$16 sps:$4 sm:$0xff]  }
 0x2d1   :  { %5412 = vmatprep.subr.bf16.mxu1 %v7408_v16  ;;  %v7466_v16 = vld [vmem:[#allocation6 + $0x368] ss:$16 sps:$4 sm:$0xff]  }
 0x2d2   :  { %5325 = vmatpush1.bf16.msra.mxu0 %v7445_v26  ;;  %v7523_v26 = vld [vmem:[#allocation6 + $0x660] ss:$16 sps:$4 sm:$0xff]  }
 0x2d3   :  { %5326 = vmatprep.subr.bf16.mxu0 %v7453_v17  ;;  %v7471_v17 = vld [vmem:[#allocation6 + $0x38c] ss:$16 sps:$4 sm:$0xff]  }
 0x2d4   :  { %5413 = vmatpush1.bf16.msra.mxu1 %v7406_v18  ;;  %v7531_v18 = vld [vmem:[#allocation6 + $0x684] ss:$16 sps:$4 sm:$0xff]  }
 0x2d5   :  { %5425 = vmatprep.subr.bf16.mxu1 %v7414_v28  ;;  %v7469_v28 = vld [vmem:[#allocation6 + $0x388] ss:$16 sps:$4 sm:$0xff]  }
 0x2d6   :  { %5327 = vmatpush1.bf16.msra.mxu0 %v7451_v20  ;;  %v7529_v20 = vld [vmem:[#allocation6 + $0x680] ss:$16 sps:$4 sm:$0xff]  }
 0x2d7   :  { %5415 = vmatmul.mubr.bf16.vlgmr.msra.gmra.mrb[12].mxu1 %v8223_v27  ;;  %5339 = vmatprep.subr.bf16.mxu0 %v7507_v21  ;;  %v614_v27 = vsub.s32 5, %v8205_v24  ;;  %v7474_v21 = vld [vmem:[#allocation6 + $0x3ac] ss:$16 sps:$4 sm:$0xff]  }
 0x2d8   :  { %5426 = vmatpush1.bf16.msra.mxu1 %v7412_v39  ;;  %5457 = vmatprep.mubr.bf16.mxu1 %v8251_v23  ;;  %v8263_v23 = vld [vmem:[#allocation4] sm:$0xff]  ;;  %v7537_v39 = vld [vmem:[#allocation6 + $0x6a4] ss:$16 sps:$4 sm:$0xff]  }
 0x2d9   :  { %5427 = vmatprep.subr.bf16.mxu1 %v7420_v43  ;;  %v611_v40 = vrot.slane %v8263_v23, %v610_v33  ;;  %v615_v57 = vrot.slane %v8263_v23, %v614_v27  ;;  %v7472_v43 = vld [vmem:[#allocation6 + $0x3a8] ss:$16 sps:$4 sm:$0xff]   ;;  %v7547_v27 = vld [vmem:[#allocation6 + $0x6e0] ss:$16 sps:$4 sm:$0xff]  }
 0x2da   :  { %v7478_v33 = vld [vmem:[#allocation6 + $0x3e8] ss:$16 sps:$4 sm:$0xff]  }
 0x2dc   :  { %5428 = vmatpush1.bf16.msra.mxu1 %v7418_v38  ;;  %v7535_v38 = vld [vmem:[#allocation6 + $0x6a0] ss:$16 sps:$4 sm:$0xff]  }
 0x2dd   :  { %5429 = vmatprep.subr.bf16.mxu1 %v7426_v22  ;;  %v7477_v22 = vld [vmem:[#allocation6 + $0x3cc] ss:$16 sps:$4 sm:$0xff]  }
 0x2e0   :  { %5430 = vmatpush1.bf16.msra.mxu1 %v7424_v25  ;;  %v7543_v25 = vld [vmem:[#allocation6 + $0x6c4] ss:$16 sps:$4 sm:$0xff]  }
 0x2e1   :  { %5431 = vmatprep.subr.bf16.mxu1 %v7432_v29  ;;  %v7475_v29 = vld [vmem:[#allocation6 + $0x3c8] ss:$16 sps:$4 sm:$0xff]  }
 0x2e4   :  { %5432 = vmatpush1.bf16.msra.mxu1 %v7430_v47  ;;  %v7541_v47 = vld [vmem:[#allocation6 + $0x6c0] ss:$16 sps:$4 sm:$0xff]  }
 0x2e5   :  { %5433 = vmatprep.subr.bf16.mxu1 %v7438_v30  ;;  %v7480_v30 = vld [vmem:[#allocation6 + $0x3ec] ss:$16 sps:$4 sm:$0xff]  }
 0x2e8   :  { %5434 = vmatpush1.bf16.msra.mxu1 %v7436_v31  ;;  %v7549_v31 = vld [vmem:[#allocation6 + $0x6e4] ss:$16 sps:$4 sm:$0xff]  }
 0x2e9   :  { %5435 = vmatprep.subr.bf16.mxu1 %v7444_v12  ;;  %v7483_v12 = vld [vmem:[#allocation6 + $0x40c] ss:$16 sps:$4 sm:$0xff]  }
 0x2ec   :  { %v3415_v46 = vpop.f32.mrb[4].mxu0  ;;  %5436 = vmatpush1.bf16.msra.mxu1 %v7442_v44  ;;  %v7481_v44 = vld [vmem:[#allocation6 + $0x408] ss:$16 sps:$4 sm:$0xff]  }
 0x2ed   :  { %v7122_v48 = vadd.f32 %v3415_v46, %v611_v40  ;;  %v3417_v59 = vpop.f32.mrb[5].mxu0  ;;  %5437 = vmatprep.subr.bf16.mxu1 %v7450_v45  ;;  %v7553_v45 = vld [vmem:[#allocation6 + $0x700] ss:$16 sps:$4 sm:$0xff]   ;;  %v7561_v46 = vld [vmem:[#allocation6 + $0x724] ss:$16 sps:$4 sm:$0xff]  }
 0x2ee   :  { %v7123_v50 = vadd.f32 %v3417_v59, %v615_v57  ;;  %v3419_v51 = vpop.f32.mrb[6].mxu0  ;;  %v7489_v59 = vld [vmem:[#allocation6 + $0x44c] ss:$16 sps:$4 sm:$0xff]  }
 0x2ef   :  { %v3616_v54 = vmul.f32 0.2, %v7122_v48  ;;  %v7124_v53 = vadd.f32 %v3419_v51, %v611_v40  ;;  %v3421_v55 = vpop.f32.mrb[7].mxu0  ;;  %vm3600_vm8 = vcmp.ge.f32.partialorder %v7122_v48, 0.0  ;;  %v7555_v40 = vld [vmem:[#allocation6 + $0x704] ss:$16 sps:$4 sm:$0xff]  }
 0x2f0   :  { %v3617_v56 = vmul.f32 0.2, %v7123_v50  ;;  %v7125_v58 = vadd.f32 %v3421_v55, %v615_v57  ;;  %vm3601_vm9 = vcmp.ge.f32.partialorder %v7123_v50, 0.0  ;;  %5438 = vmatpush1.bf16.msra.mxu1 %v7448_v49  ;;  %v7486_v57 = vld [vmem:[#allocation6 + $0x42c] ss:$16 sps:$4 sm:$0xff]  }
 0x2f1   :  { %vm3608_vm10 = vcmp.ge.f32.partialorder %v7124_v53, 0.0  ;;  %v3624_v60 = vmul.f32 0.2, %v7124_v53  ;;  %5439 = vmatprep.subr.bf16.mxu1 %v7456_v52  ;;  %v3632_v41 = vsel %vm3600_vm8, %v7122_v48, %v3616_v54  ;;  %v7484_v48 = vld [vmem:[#allocation6 + $0x428] ss:$16 sps:$4 sm:$0xff]  }
 0x2f2   :  { %vm3609_vm11 = vcmp.ge.f32.partialorder %v7125_v58, 0.0  ;;  %v3625_v62 = vmul.f32 0.2, %v7125_v58  ;;  %v3633_v2 = vsel %vm3601_vm9, %v7123_v50, %v3617_v56  ;;  %v7559_v49 = vld [vmem:[#allocation6 + $0x720] ss:$16 sps:$4 sm:$0xff]  }
 0x2f3   :  { %v3640_v0 = vsel %vm3608_vm10, %v7124_v53, %v3624_v60  ;;  %v7567_v50 = vld [vmem:[#allocation6 + $0x744] ss:$16 sps:$4 sm:$0xff]   ;;  %v7487_v51 = vld [vmem:[#allocation6 + $0x448] ss:$16 sps:$4 sm:$0xff]   ;;  %v7492_v52 = vld [vmem:[#allocation6 + $0x46c] ss:$16 sps:$4 sm:$0xff]  }
 0x2f4   :  { %v8267_v1 = vpack.c.bf16 %v3640_v0, %v3632_v41  ;;  %v3641_v34 = vsel %vm3609_vm11, %v7125_v58, %v3625_v62  ;;  %5440 = vmatpush1.bf16.msra.mxu1 %v7454_v61  ;;  %v7565_v54 = vld [vmem:[#allocation6 + $0x740] ss:$16 sps:$4 sm:$0xff]   ;;  %v7573_v53 = vld [vmem:[#allocation6 + $0x764] ss:$16 sps:$4 sm:$0xff]   ;;  %v7495_v55 = vld [vmem:[#allocation6 + $0x48c] ss:$16 sps:$4 sm:$0xff]  }
 0x2f5   :  { %v8269_v3 = vpack.c.bf16 %v3641_v34, %v3633_v2  ;;  %5441 = vmatprep.subr.bf16.mxu1 %v7459_v63  ;;  %v7571_v56 = vld [vmem:[#allocation6 + $0x760] ss:$16 sps:$4 sm:$0xff]   ;;  %v7579_v58 = vld [vmem:[#allocation6 + $0x784] ss:$16 sps:$4 sm:$0xff]   ;;  %v7493_v60 = vld [vmem:[#allocation6 + $0x488] ss:$16 sps:$4 sm:$0xff]  }
 0x2f6   :  { %v7498_v61 = vld [vmem:[#allocation6 + $0x4ac] ss:$16 sps:$4 sm:$0xff]   ;;  %v7577_v62 = vld [vmem:[#allocation6 + $0x780] ss:$16 sps:$4 sm:$0xff]   ;;  %v7585_v63 = vld [vmem:[#allocation6 + $0x7a4] ss:$16 sps:$4 sm:$0xff]  }
 0x2f7   :  { %5328 = vmatprep.mubr.bf16.mxu0 %v8269_v3  ;;  %v7496_v41 = vld [vmem:[#allocation6 + $0x4a8] ss:$16 sps:$4 sm:$0xff]   ;;  %v7501_v0 = vld [vmem:[#allocation6 + $0x4cc] ss:$16 sps:$4 sm:$0xff]   ;;  %v7583_v2 = vld [vmem:[#allocation6 + $0x7a0] ss:$16 sps:$4 sm:$0xff]  }
 0x2f8   :  { %5329 = vmatmul.mubr.bf16.vlgmr.msra.gmra.mrb[8].mxu0 %v8267_v1  ;;  %5442 = vmatpush1.bf16.msra.mxu1 %v7457_v4  ;;  %v7591_v34 = vld [vmem:[#allocation6 + $0x7c4] ss:$16 sps:$4 sm:$0xff]   ;;  %v7504_v4 = vld [vmem:[#allocation6 + $0x4ec] ss:$16 sps:$4 sm:$0xff]  }
 0x2f9   :  { %5340 = vmatpush1.bf16.msra.mxu0 %v7505_v5  ;;  %5443 = vmatprep.subr.bf16.mxu1 %v7462_v6  ;;  %v7589_v5 = vld [vmem:[#allocation6 + $0x7c0] ss:$16 sps:$4 sm:$0xff]   ;;  %v7597_v6 = vld [vmem:[#allocation6 + $0x7e4] ss:$16 sps:$4 sm:$0xff]  }
 0x2fa   :  { %5341 = vmatprep.subr.bf16.mxu0 %v7513_v7  ;;  %v7502_v7 = vld [vmem:[#allocation6 + $0x4e8] ss:$16 sps:$4 sm:$0xff]  }
 0x2fc   :  { %5444 = vmatpush1.bf16.msra.mxu1 %v7460_v8  ;;  %v7510_v8 = vld [vmem:[#allocation6 + $0x50c] ss:$16 sps:$4 sm:$0xff]  }
 0x2fd   :  { %5342 = vmatpush1.bf16.msra.mxu0 %v7511_v9  ;;  %5445 = vmatprep.subr.bf16.mxu1 %v7465_v19  ;;  %v7595_v9 = vld [vmem:[#allocation6 + $0x7e0] ss:$16 sps:$4 sm:$0xff]  }
 0x2fe   :  { %5343 = vmatprep.subr.bf16.mxu0 %v7519_v10  ;;  %v7627_v19 = vld [vmem:[#allocation9 + $0x4] ss:$8 sps:$4 sm:$0xff]  }
 0x2ff   :  { %v7508_v10 = vld [vmem:[#allocation6 + $0x508] ss:$16 sps:$4 sm:$0xff]  }
 0x300   :  { %5446 = vmatpush1.bf16.msra.mxu1 %v7463_v11  ;;  %v7516_v11 = vld [vmem:[#allocation6 + $0x52c] ss:$16 sps:$4 sm:$0xff]  }
 0x301   :  { %5344 = vmatpush1.bf16.msra.mxu0 %v7517_v13  ;;  %5447 = vmatprep.subr.bf16.mxu1 %v7468_v14  ;;  %v7514_v13 = vld [vmem:[#allocation6 + $0x528] ss:$16 sps:$4 sm:$0xff]   ;;  %v7522_v14 = vld [vmem:[#allocation6 + $0x54c] ss:$16 sps:$4 sm:$0xff]  }
 0x302   :  { %5345 = vmatprep.subr.bf16.mxu0 %v7525_v15  ;;  %v7520_v15 = vld [vmem:[#allocation6 + $0x548] ss:$16 sps:$4 sm:$0xff]  }
 0x304   :  { %5448 = vmatpush1.bf16.msra.mxu1 %v7466_v16  ;;  %v7528_v16 = vld [vmem:[#allocation6 + $0x56c] ss:$16 sps:$4 sm:$0xff]  }
 0x305   :  { %5346 = vmatpush1.bf16.msra.mxu0 %v7523_v26  ;;  %5449 = vmatprep.subr.bf16.mxu1 %v7471_v17  ;;  %v7526_v26 = vld [vmem:[#allocation6 + $0x568] ss:$16 sps:$4 sm:$0xff]   ;;  %v7534_v17 = vld [vmem:[#allocation6 + $0x58c] ss:$16 sps:$4 sm:$0xff]  }
 0x306   :  { %5347 = vmatprep.subr.bf16.mxu0 %v7531_v18  ;;  %v7532_v18 = vld [vmem:[#allocation6 + $0x588] ss:$16 sps:$4 sm:$0xff]  }
 0x308   :  { %5450 = vmatpush1.bf16.msra.mxu1 %v7469_v28  ;;  %v7540_v28 = vld [vmem:[#allocation6 + $0x5ac] ss:$16 sps:$4 sm:$0xff]  }
 0x309   :  { %5348 = vmatpush1.bf16.msra.mxu0 %v7529_v20  ;;  %5451 = vmatprep.subr.bf16.mxu1 %v7474_v21  ;;  %v7538_v20 = vld [vmem:[#allocation6 + $0x5a8] ss:$16 sps:$4 sm:$0xff]   ;;  %v7546_v21 = vld [vmem:[#allocation6 + $0x5cc] ss:$16 sps:$4 sm:$0xff]  }
 0x30a   :  { %5349 = vmatprep.subr.bf16.mxu0 %v7537_v39  ;;  %v7544_v39 = vld [vmem:[#allocation6 + $0x5c8] ss:$16 sps:$4 sm:$0xff]  }
 0x30c   :  { %5452 = vmatpush1.bf16.msra.mxu1 %v7472_v43  ;;  %v7552_v43 = vld [vmem:[#allocation6 + $0x5ec] ss:$16 sps:$4 sm:$0xff]  }
 0x30d   :  { %5350 = vmatpush1.bf16.msra.mxu0 %v7535_v38  ;;  %5453 = vmatprep.subr.bf16.mxu1 %v7477_v22  ;;  %v7550_v38 = vld [vmem:[#allocation6 + $0x5e8] ss:$16 sps:$4 sm:$0xff]   ;;  %v7558_v22 = vld [vmem:[#allocation6 + $0x60c] ss:$16 sps:$4 sm:$0xff]  }
 0x30e   :  { %5351 = vmatprep.subr.bf16.mxu0 %v7543_v25  ;;  %v7556_v25 = vld [vmem:[#allocation6 + $0x608] ss:$16 sps:$4 sm:$0xff]  }
 0x310   :  { %5454 = vmatpush1.bf16.msra.mxu1 %v7475_v29  ;;  %v7564_v29 = vld [vmem:[#allocation6 + $0x62c] ss:$16 sps:$4 sm:$0xff]  }
 0x311   :  { %5352 = vmatpush1.bf16.msra.mxu0 %v7541_v47  ;;  %5455 = vmatprep.subr.bf16.mxu1 %v7480_v30  ;;  %v7562_v47 = vld [vmem:[#allocation6 + $0x628] ss:$16 sps:$4 sm:$0xff]   ;;  %v7570_v30 = vld [vmem:[#allocation6 + $0x64c] ss:$16 sps:$4 sm:$0xff]  }
 0x312   :  { %5353 = vmatprep.subr.bf16.mxu0 %v7549_v31  ;;  %v7568_v31 = vld [vmem:[#allocation6 + $0x648] ss:$16 sps:$4 sm:$0xff]  }
 0x314   :  { %5456 = vmatpush1.bf16.msra.mxu1 %v7478_v33  ;;  %v7576_v33 = vld [vmem:[#allocation6 + $0x66c] ss:$16 sps:$4 sm:$0xff]  }
 0x315   :  { %5354 = vmatpush1.bf16.msra.mxu0 %v7547_v27  ;;  %5468 = vmatprep.subr.bf16.mxu1 %v7483_v12  ;;  %v7574_v27 = vld [vmem:[#allocation6 + $0x668] ss:$16 sps:$4 sm:$0xff]   ;;  %v7582_v12 = vld [vmem:[#allocation6 + $0x68c] ss:$16 sps:$4 sm:$0xff]  }
 0x316   :  { %5355 = vmatprep.subr.bf16.mxu0 %v7555_v40  ;;  %v618_v40 = vsub.s32 6, %v8205_v24 }
 0x317   :  { %5458 = vmatmul.mubr.bf16.vlgmr.msra.gmra.mrb[12].mxu1 %v8249_v36  ;;  %v7490_v36 = vld [vmem:[#allocation6 + $0x468] ss:$16 sps:$4 sm:$0xff]  }
 0x318   :  { %5469 = vmatpush1.bf16.msra.mxu1 %v7481_v44  ;;  %5500 = vmatprep.mubr.bf16.mxu1 %v8269_v3  ;;  %v7499_v3 = vld [vmem:[#allocation6 + $0x4c8] ss:$16 sps:$4 sm:$0xff]  }
 0x319   :  { %5470 = vmatprep.subr.bf16.mxu1 %v7486_v57  ;;  %5356 = vmatpush1.bf16.msra.mxu0 %v7553_v45  ;;  %v7580_v44 = vld [vmem:[#allocation6 + $0x688] ss:$16 sps:$4 sm:$0xff]   ;;  %v622_v57 = vsub.s32 7, %v8205_v24  ;;  %v619_v45 = vrot.slane %v8263_v23, %v618_v40 }
 0x31a   :  { %5357 = vmatprep.subr.bf16.mxu0 %v7561_v46  ;;  %v7622_v40 = vld [vmem:[#allocation6 + $0x7e8] ss:$16 sps:$4 sm:$0xff]  }
 0x31b   :  { %v623_v46 = vrot.slane %v8263_v23, %v622_v57  ;;  %v7649_v57 = vld [vmem:[#allocation9 + $0x80] ss:$8 sps:$4 sm:$0xff]  }
 0x31c   :  { %5471 = vmatpush1.bf16.msra.mxu1 %v7484_v48  ;;  %v7586_v48 = vld [vmem:[#allocation6 + $0x6a8] ss:$16 sps:$4 sm:$0xff]  }
 0x31d   :  { %5472 = vmatprep.subr.bf16.mxu1 %v7489_v59  ;;  %5358 = vmatpush1.bf16.msra.mxu0 %v7559_v49  ;;  %v7594_v59 = vld [vmem:[#allocation6 + $0x6cc] ss:$16 sps:$4 sm:$0xff]  }
 0x31e   :  { %5359 = vmatprep.subr.bf16.mxu0 %v7567_v50 }
 0x320   :  { %5473 = vmatpush1.bf16.msra.mxu1 %v7487_v51 }
 0x321   :  { %5474 = vmatprep.subr.bf16.mxu1 %v7492_v52  ;;  %5360 = vmatpush1.bf16.msra.mxu0 %v7565_v54 }
 0x322   :  { %5361 = vmatprep.subr.bf16.mxu0 %v7573_v53  ;;  %v7592_v53 = vld [vmem:[#allocation6 + $0x6c8] ss:$16 sps:$4 sm:$0xff]  }
 0x324   :  { %5475 = vmatpush1.bf16.msra.mxu1 %v7490_v36 }
 0x325   :  { %5476 = vmatprep.subr.bf16.mxu1 %v7495_v55  ;;  %5362 = vmatpush1.bf16.msra.mxu0 %v7571_v56 }
 0x326   :  { %5363 = vmatprep.subr.bf16.mxu0 %v7579_v58  ;;  %v7600_v58 = vld [vmem:[#allocation6 + $0x6ec] ss:$16 sps:$4 sm:$0xff]  }
 0x328   :  { %5477 = vmatpush1.bf16.msra.mxu1 %v7493_v60 }
 0x329   :  { %5478 = vmatprep.subr.bf16.mxu1 %v7498_v61  ;;  %5364 = vmatpush1.bf16.msra.mxu0 %v7577_v62 }
 0x32a   :  { %5365 = vmatprep.subr.bf16.mxu0 %v7585_v63  ;;  %v7598_v63 = vld [vmem:[#allocation6 + $0x6e8] ss:$16 sps:$4 sm:$0xff]  }
 0x32c   :  { %5479 = vmatpush1.bf16.msra.mxu1 %v7496_v41 }
 0x32d   :  { %5480 = vmatprep.subr.bf16.mxu1 %v7501_v0  ;;  %5366 = vmatpush1.bf16.msra.mxu0 %v7583_v2 }
 0x32e   :  { %5367 = vmatprep.subr.bf16.mxu0 %v7591_v34 }
 0x330   :  { %5481 = vmatpush1.bf16.msra.mxu1 %v7499_v3 }
 0x331   :  { %5482 = vmatprep.subr.bf16.mxu1 %v7504_v4  ;;  %5368 = vmatpush1.bf16.msra.mxu0 %v7589_v5  ;;  %v7603_v4 = vld [vmem:[#allocation6 + $0x70c] ss:$16 sps:$4 sm:$0xff]  }
 0x332   :  { %5369 = vmatprep.subr.bf16.mxu0 %v7597_v6  ;;  %v7625_v6 = vld [vmem:[#allocation9] ss:$8 sps:$4 sm:$0xff]  }
 0x334   :  { %5483 = vmatpush1.bf16.msra.mxu1 %v7502_v7  ;;  %v7601_v7 = vld [vmem:[#allocation6 + $0x708] ss:$16 sps:$4 sm:$0xff]  }
 0x335   :  { %5484 = vmatprep.subr.bf16.mxu1 %v7510_v8  ;;  %5370 = vmatpush1.bf16.msra.mxu0 %v7595_v9  ;;  %v7630_v8 = vld [vmem:[#allocation9 + $0x14] ss:$8 sps:$4 sm:$0xff]   ;;  %v7606_v9 = vld [vmem:[#allocation6 + $0x72c] ss:$16 sps:$4 sm:$0xff]  }
 0x336   :  { %5978 = vmatprep.subr.bf16.mxu0 %v7627_v19  ;;  %v7628_v19 = vld [vmem:[#allocation9 + $0x10] ss:$8 sps:$4 sm:$0xff]  }
 0x338   :  { %5485 = vmatpush1.bf16.msra.mxu1 %v7508_v10  ;;  %v7604_v10 = vld [vmem:[#allocation6 + $0x728] ss:$16 sps:$4 sm:$0xff]  }
 0x339   :  { %5486 = vmatprep.subr.bf16.mxu1 %v7516_v11  ;;  %v7633_v11 = vld [vmem:[#allocation9 + $0x24] ss:$8 sps:$4 sm:$0xff]  }
 0x33c   :  { %5487 = vmatpush1.bf16.msra.mxu1 %v7514_v13  ;;  %v7609_v13 = vld [vmem:[#allocation6 + $0x74c] ss:$16 sps:$4 sm:$0xff]  }
 0x33d   :  { %5488 = vmatprep.subr.bf16.mxu1 %v7522_v14  ;;  %v7631_v14 = vld [vmem:[#allocation9 + $0x20] ss:$8 sps:$4 sm:$0xff]  }
 0x340   :  { %5489 = vmatpush1.bf16.msra.mxu1 %v7520_v15  ;;  %v7607_v15 = vld [vmem:[#allocation6 + $0x748] ss:$16 sps:$4 sm:$0xff]  }
 0x341   :  { %5490 = vmatprep.subr.bf16.mxu1 %v7528_v16  ;;  %v7636_v16 = vld [vmem:[#allocation9 + $0x34] ss:$8 sps:$4 sm:$0xff]  }
 0x344   :  { %5491 = vmatpush1.bf16.msra.mxu1 %v7526_v26  ;;  %v7612_v26 = vld [vmem:[#allocation6 + $0x76c] ss:$16 sps:$4 sm:$0xff]  }
 0x345   :  { %5492 = vmatprep.subr.bf16.mxu1 %v7534_v17  ;;  %v7634_v17 = vld [vmem:[#allocation9 + $0x30] ss:$8 sps:$4 sm:$0xff]  }
 0x348   :  { %5493 = vmatpush1.bf16.msra.mxu1 %v7532_v18  ;;  %v7610_v18 = vld [vmem:[#allocation6 + $0x768] ss:$16 sps:$4 sm:$0xff]  }
 0x349   :  { %5494 = vmatprep.subr.bf16.mxu1 %v7540_v28  ;;  %v7639_v28 = vld [vmem:[#allocation9 + $0x44] ss:$8 sps:$4 sm:$0xff]  }
 0x34c   :  { %5495 = vmatpush1.bf16.msra.mxu1 %v7538_v20  ;;  %v7615_v20 = vld [vmem:[#allocation6 + $0x78c] ss:$16 sps:$4 sm:$0xff]  }
 0x34d   :  { %5496 = vmatprep.subr.bf16.mxu1 %v7546_v21  ;;  %v7637_v21 = vld [vmem:[#allocation9 + $0x40] ss:$8 sps:$4 sm:$0xff]  }
 0x350   :  { %5497 = vmatpush1.bf16.msra.mxu1 %v7544_v39  ;;  %v7613_v39 = vld [vmem:[#allocation6 + $0x788] ss:$16 sps:$4 sm:$0xff]  }
 0x351   :  { %5498 = vmatprep.subr.bf16.mxu1 %v7552_v43  ;;  %v7642_v43 = vld [vmem:[#allocation9 + $0x54] ss:$8 sps:$4 sm:$0xff]  }
 0x354   :  { %5499 = vmatpush1.bf16.msra.mxu1 %v7550_v38  ;;  %v7618_v38 = vld [vmem:[#allocation6 + $0x7ac] ss:$16 sps:$4 sm:$0xff]  }
 0x355   :  { %5511 = vmatprep.subr.bf16.mxu1 %v7558_v22  ;;  %v7640_v22 = vld [vmem:[#allocation9 + $0x50] ss:$8 sps:$4 sm:$0xff]  }
 0x357   :  { %5501 = vmatmul.mubr.bf16.vlgmr.msra.gmra.mrb[12].mxu1 %v8267_v1  ;;  %v7588_v1 = vld [vmem:[#allocation6 + $0x6ac] ss:$16 sps:$4 sm:$0xff]  }
 0x358   :  { %5512 = vmatpush1.bf16.msra.mxu1 %v7556_v25  ;;  %v7616_v25 = vld [vmem:[#allocation6 + $0x7a8] ss:$16 sps:$4 sm:$0xff]  }
 0x359   :  { %5513 = vmatprep.subr.bf16.mxu1 %v7564_v29  ;;  %v7645_v29 = vld [vmem:[#allocation9 + $0x64] ss:$8 sps:$4 sm:$0xff]  }
 0x35c   :  { %5514 = vmatpush1.bf16.msra.mxu1 %v7562_v47  ;;  %v7621_v47 = vld [vmem:[#allocation6 + $0x7cc] ss:$16 sps:$4 sm:$0xff]  }
 0x35d   :  { %5515 = vmatprep.subr.bf16.mxu1 %v7570_v30  ;;  %v7643_v30 = vld [vmem:[#allocation9 + $0x60] ss:$8 sps:$4 sm:$0xff]  }
 0x360   :  { %5516 = vmatpush1.bf16.msra.mxu1 %v7568_v31  ;;  %v7619_v31 = vld [vmem:[#allocation6 + $0x7c8] ss:$16 sps:$4 sm:$0xff]  }
 0x361   :  { %5517 = vmatprep.subr.bf16.mxu1 %v7576_v33  ;;  %v7648_v33 = vld [vmem:[#allocation9 + $0x74] ss:$8 sps:$4 sm:$0xff]  }
 0x364   :  { %5518 = vmatpush1.bf16.msra.mxu1 %v7574_v27  ;;  %v7624_v27 = vld [vmem:[#allocation6 + $0x7ec] ss:$16 sps:$4 sm:$0xff]  }
 0x365   :  { %5519 = vmatprep.subr.bf16.mxu1 %v7582_v12  ;;  %v7646_v12 = vld [vmem:[#allocation9 + $0x70] ss:$8 sps:$4 sm:$0xff]  }
 0x368   :  { %5520 = vmatpush1.bf16.msra.mxu1 %v7580_v44  ;;  %v7651_v44 = vld [vmem:[#allocation9 + $0x84] ss:$8 sps:$4 sm:$0xff]  }
 0x369   :  { %5521 = vmatprep.subr.bf16.mxu1 %v7588_v1  ;;  %v7654_v1 = vld [vmem:[#allocation9 + $0x94] ss:$8 sps:$4 sm:$0xff]  }
 0x36a   :  { %v3587_v49 = vpop.f32.mrb[8].mxu1 }
 0x36b   :  { %v7126_v50 = vadd.f32 %v3587_v49, %v619_v45  ;;  %v3589_v51 = vpop.f32.mrb[9].mxu1  ;;  %v7658_v49 = vld [vmem:[#allocation9 + $0xb0] ss:$8 sps:$4 sm:$0xff]  }
 0x36c   :  { %v7127_v52 = vadd.f32 %v3589_v51, %v623_v46  ;;  %v3591_v54 = vpop.f32.mrb[10].mxu1  ;;  %5522 = vmatpush1.bf16.msra.mxu1 %v7586_v48  ;;  %v7655_v48 = vld [vmem:[#allocation9 + $0xa0] ss:$8 sps:$4 sm:$0xff]  }
 0x36d   :  { %v3618_v36 = vmul.f32 0.2, %v7126_v50  ;;  %v7128_v55 = vadd.f32 %v3591_v54, %v619_v45  ;;  %v3593_v56 = vpop.f32.mrb[11].mxu1  ;;  %5523 = vmatprep.subr.bf16.mxu1 %v7594_v59  ;;  %vm3602_vm12 = vcmp.ge.f32.partialorder %v7126_v50, 0.0  ;;  %v7652_v45 = vld [vmem:[#allocation9 + $0x90] ss:$8 sps:$4 sm:$0xff]  }
 0x36e   :  { %v3619_v60 = vmul.f32 0.2, %v7127_v52  ;;  %v7129_v61 = vadd.f32 %v3593_v56, %v623_v46  ;;  %vm3603_vm13 = vcmp.ge.f32.partialorder %v7127_v52, 0.0  ;;  %v7657_v46 = vld [vmem:[#allocation9 + $0xa4] ss:$8 sps:$4 sm:$0xff]  }
 0x36f   :  { %vm3610_vm14 = vcmp.ge.f32.partialorder %v7128_v55, 0.0  ;;  %v3626_v23 = vmul.f32 0.2, %v7128_v55  ;;  %v3634_v41 = vsel %vm3602_vm12, %v7126_v50, %v3618_v36  ;;  %v7660_v59 = vld [vmem:[#allocation9 + $0xb4] ss:$8 sps:$4 sm:$0xff]  }
 0x370   :  { %vm3611_vm15 = vcmp.ge.f32.partialorder %v7129_v61, 0.0  ;;  %v3627_v62 = vmul.f32 0.2, %v7129_v61  ;;  %5524 = vmatpush1.bf16.msra.mxu1 %v7592_v53  ;;  %v3635_v34 = vsel %vm3603_vm13, %v7127_v52, %v3619_v60  ;;  %v7663_v50 = vld [vmem:[#allocation9 + $0xc4] ss:$8 sps:$4 sm:$0xff]  }
 0x371   :  { %v3642_v0 = vsel %vm3610_vm14, %v7128_v55, %v3626_v23  ;;  %5525 = vmatprep.subr.bf16.mxu1 %v7600_v58  ;;  %v7661_v51 = vld [vmem:[#allocation9 + $0xc0] ss:$8 sps:$4 sm:$0xff]   ;;  %v7666_v52 = vld [vmem:[#allocation9 + $0xd4] ss:$8 sps:$4 sm:$0xff]   ;;  %v7664_v54 = vld [vmem:[#allocation9 + $0xd0] ss:$8 sps:$4 sm:$0xff]  }
 0x372   :  { %v8280_v2 = vpack.c.bf16 %v3642_v0, %v3634_v41  ;;  %v3643_v3 = vsel %vm3611_vm15, %v7129_v61, %v3627_v62  ;;  %v7669_v53 = vld [vmem:[#allocation9 + $0xe4] ss:$8 sps:$4 sm:$0xff]   ;;  %v7667_v36 = vld [vmem:[#allocation9 + $0xe0] ss:$8 sps:$4 sm:$0xff]   ;;  %v7672_v55 = vld [vmem:[#allocation9 + $0xf4] ss:$8 sps:$4 sm:$0xff]  }
 0x373   :  { %v3651_v5 = vpack.c.bf16 %v3643_v3, %v3635_v34  ;;  %v7670_v56 = vld [vmem:[#allocation9 + $0xf0] ss:$8 sps:$4 sm:$0xff]   ;;  %v7675_v58 = vld [vmem:[#allocation9 + $0x104] ss:$8 sps:$4 sm:$0xff]  }
 0x374   :  { %5526 = vmatpush1.bf16.msra.mxu1 %v7598_v63  ;;  %v7721_v60 = vld [vmem:[#allocation12 + $0x40] sm:$0xff]   ;;  %v7723_v23 = vld [vmem:[#allocation12 + $0x48] sm:$0xff]   ;;  %v7725_v63 = vld [vmem:[#allocation12 + $0x50] sm:$0xff]  }
 0x375   :  { %5371 = vmatprep.mubr.bf16.mxu0 %v3651_v5  ;;  %5543 = vmatprep.mubr.bf16.mxu1 %v3651_v5  ;;  %v7722_v61 = vld [vmem:[#allocation12] sm:$0xff]   ;;  %v7724_v62 = vld [vmem:[#allocation12 + $0x8] sm:$0xff]   ;;  %v7726_v41 = vld [vmem:[#allocation12 + $0x10] sm:$0xff]  }
 0x376   :  { %5372 = vmatmul.mubr.bf16.vlgmr.msra.gmra.mrb[8].mxu0 %v8280_v2  ;;  %5527 = vmatprep.subr.bf16.mxu1 %v7603_v4  ;;  %v7727_v0 = vld [vmem:[#allocation12 + $0x58] sm:$0xff]   ;;  %v7729_v34 = vld [vmem:[#allocation12 + $0x60] sm:$0xff]  }
 0x377   :  { %5979 = vmatpush1.bf16.msra.mxu0 %v7625_v6  ;;  %v7730_v3 = vld [vmem:[#allocation12 + $0x20] sm:$0xff]   ;;  %v3908_v4 = vld [vmem:[#allocation7] sm:$0xf] }
 0x378   :  { %5528 = vmatpush1.bf16.msra.mxu1 %v7601_v7  ;;  %5980 = vmatprep.subr.bf16.mxu0 %v7630_v8  ;;  %v3913_v5 = vrot.slane %v3908_v4, %v8208_v35  ;;  %v3917_v6 = vrot.slane %v3908_v4, %v8213_v42 }
 0x379   :  { %5529 = vmatprep.subr.bf16.mxu1 %v7606_v9 }
 0x37b   :  { %5981 = vmatpush1.bf16.msra.mxu0 %v7628_v19 }
 0x37c   :  { %5530 = vmatpush1.bf16.msra.mxu1 %v7604_v10  ;;  %5982 = vmatprep.subr.bf16.mxu0 %v7633_v11 }
 0x37d   :  { %5531 = vmatprep.subr.bf16.mxu1 %v7609_v13 }
 0x37f   :  { %5983 = vmatpush1.bf16.msra.mxu0 %v7631_v14 }
 0x380   :  { %5532 = vmatpush1.bf16.msra.mxu1 %v7607_v15  ;;  %5984 = vmatprep.subr.bf16.mxu0 %v7636_v16 }
 0x381   :  { %5533 = vmatprep.subr.bf16.mxu1 %v7612_v26 }
 0x383   :  { %5985 = vmatpush1.bf16.msra.mxu0 %v7634_v17 }
 0x384   :  { %5534 = vmatpush1.bf16.msra.mxu1 %v7610_v18  ;;  %5986 = vmatprep.subr.bf16.mxu0 %v7639_v28 }
 0x385   :  { %5535 = vmatprep.subr.bf16.mxu1 %v7615_v20 }
 0x387   :  { %5987 = vmatpush1.bf16.msra.mxu0 %v7637_v21 }
 0x388   :  { %5536 = vmatpush1.bf16.msra.mxu1 %v7613_v39  ;;  %5988 = vmatprep.subr.bf16.mxu0 %v7642_v43 }
 0x389   :  { %5537 = vmatprep.subr.bf16.mxu1 %v7618_v38  ;;  %v7673_v38 = vld [vmem:[#allocation9 + $0x100] ss:$8 sps:$4 sm:$0xff]  }
 0x38b   :  { %5989 = vmatpush1.bf16.msra.mxu0 %v7640_v22  ;;  %v7678_v22 = vld [vmem:[#allocation9 + $0x114] ss:$8 sps:$4 sm:$0xff]  }
 0x38c   :  { %5538 = vmatpush1.bf16.msra.mxu1 %v7616_v25  ;;  %5990 = vmatprep.subr.bf16.mxu0 %v7645_v29  ;;  %v7676_v25 = vld [vmem:[#allocation9 + $0x110] ss:$8 sps:$4 sm:$0xff]   ;;  %v7681_v29 = vld [vmem:[#allocation9 + $0x124] ss:$8 sps:$4 sm:$0xff]  }
 0x38d   :  { %5539 = vmatprep.subr.bf16.mxu1 %v7621_v47  ;;  %v7679_v47 = vld [vmem:[#allocation9 + $0x120] ss:$8 sps:$4 sm:$0xff]  }
 0x38f   :  { %5991 = vmatpush1.bf16.msra.mxu0 %v7643_v30  ;;  %v7684_v30 = vld [vmem:[#allocation9 + $0x134] ss:$8 sps:$4 sm:$0xff]  }
 0x390   :  { %5540 = vmatpush1.bf16.msra.mxu1 %v7619_v31  ;;  %5992 = vmatprep.subr.bf16.mxu0 %v7648_v33  ;;  %v7682_v31 = vld [vmem:[#allocation9 + $0x130] ss:$8 sps:$4 sm:$0xff]   ;;  %v7687_v33 = vld [vmem:[#allocation9 + $0x144] ss:$8 sps:$4 sm:$0xff]  }
 0x391   :  { %5541 = vmatprep.subr.bf16.mxu1 %v7624_v27  ;;  %v7685_v27 = vld [vmem:[#allocation9 + $0x140] ss:$8 sps:$4 sm:$0xff]  }
 0x393   :  { %5993 = vmatpush1.bf16.msra.mxu0 %v7646_v12  ;;  %v7690_v12 = vld [vmem:[#allocation9 + $0x154] ss:$8 sps:$4 sm:$0xff]  }
 0x394   :  { %5542 = vmatpush1.bf16.msra.mxu1 %v7622_v40  ;;  %5994 = vmatprep.subr.bf16.mxu0 %v7651_v44  ;;  %v7688_v40 = vld [vmem:[#allocation9 + $0x150] ss:$8 sps:$4 sm:$0xff]   ;;  %v3921_v44 = vrot.slane %v3908_v4, %v602_v32 }
 0x395   :  { %7088 = vmatprep.subr.bf16.mxu1 %v7721_v60  ;;  %v7694_v32 = vld [vmem:[#allocation9 + $0x170] ss:$8 sps:$4 sm:$0xff]  }
 0x397   :  { %5544 = vmatmul.mubr.bf16.vlgmr.msra.gmra.mrb[12].mxu1 %v8280_v2  ;;  %5995 = vmatpush1.bf16.msra.mxu0 %v7649_v57  ;;  %v7728_v2 = vld [vmem:[#allocation12 + $0x18] sm:$0xff]   ;;  %v7693_v57 = vld [vmem:[#allocation9 + $0x164] ss:$8 sps:$4 sm:$0xff]  }
 0x398   :  { %5996 = vmatprep.subr.bf16.mxu0 %v7654_v1  ;;  %7089 = vmatpush3.bf16.msra.mxu1 %v7722_v61  ;;  %v3925_v1 = vrot.slane %v3908_v4, %v606_v37  ;;  %v7699_v37 = vld [vmem:[#allocation9 + $0x184] ss:$8 sps:$4 sm:$0xff]   ;;  %v7708_v4 = vld [vmem:[#allocation9 + $0x1b4] ss:$8 sps:$4 sm:$0xff]  }
 0x399   :  { %7090 = vmatprep.subr.bf16.mxu1 %v7723_v23  ;;  %v7697_v23 = vld [vmem:[#allocation9 + $0x180] ss:$8 sps:$4 sm:$0xff]  }
 0x39b   :  { %5997 = vmatpush1.bf16.msra.mxu0 %v7652_v45 }
 0x39c   :  { %5998 = vmatprep.subr.bf16.mxu0 %v7657_v46  ;;  %7091 = vmatpush3.bf16.msra.mxu1 %v7724_v62  ;;  %v7691_v46 = vld [vmem:[#allocation9 + $0x160] ss:$8 sps:$4 sm:$0xff]  }
 0x39d   :  { %7092 = vmatprep.subr.bf16.mxu1 %v7725_v63 }
 0x39f   :  { %5999 = vmatpush1.bf16.msra.mxu0 %v7655_v48 }
 0x3a0   :  { %6000 = vmatprep.subr.bf16.mxu0 %v7660_v59  ;;  %7093 = vmatpush3.bf16.msra.mxu1 %v7726_v41 }
 0x3a1   :  { %7094 = vmatprep.subr.bf16.mxu1 %v7727_v0  ;;  %v7702_v0 = vld [vmem:[#allocation9 + $0x194] ss:$8 sps:$4 sm:$0xff]  }
 0x3a3   :  { %6001 = vmatpush1.bf16.msra.mxu0 %v7658_v49  ;;  %v7696_v49 = vld [vmem:[#allocation9 + $0x174] ss:$8 sps:$4 sm:$0xff]  }
 0x3a4   :  { %6002 = vmatprep.subr.bf16.mxu0 %v7663_v50  ;;  %7095 = vmatpush3.bf16.msra.mxu1 %v7728_v2  ;;  %v7700_v2 = vld [vmem:[#allocation9 + $0x190] ss:$8 sps:$4 sm:$0xff]  }
 0x3a5   :  { %7096 = vmatprep.subr.bf16.mxu1 %v7729_v34  ;;  %v7705_v34 = vld [vmem:[#allocation9 + $0x1a4] ss:$8 sps:$4 sm:$0xff]  }
 0x3a7   :  { %6003 = vmatpush1.bf16.msra.mxu0 %v7661_v51 }
 0x3a8   :  { %6004 = vmatprep.subr.bf16.mxu0 %v7666_v52  ;;  %7097 = vmatpush3.bf16.msra.mxu1 %v7730_v3  ;;  %v7703_v3 = vld [vmem:[#allocation9 + $0x1a0] ss:$8 sps:$4 sm:$0xff]  }
 0x3ab   :  { %6005 = vmatpush1.bf16.msra.mxu0 %v7664_v54 }
 0x3ac   :  { %6006 = vmatprep.subr.bf16.mxu0 %v7669_v53 }
 0x3af   :  { %6007 = vmatpush1.bf16.msra.mxu0 %v7667_v36 }
 0x3b0   :  { %6008 = vmatprep.subr.bf16.mxu0 %v7672_v55 }
 0x3b3   :  { %6009 = vmatpush1.bf16.msra.mxu0 %v7670_v56 }
 0x3b4   :  { %6021 = vmatprep.subr.bf16.mxu0 %v7675_v58 }
 0x449   :  { %v5373_v7 = vpop.f32.mrb[8].mxu0 }
 0x44a   :  { %v7130_v8 = vadd.f32 %v5373_v7, %v3913_v5  ;;  %v5375_v9 = vpop.f32.mrb[9].mxu0  ;;  %v7709_v7 = vld [vmem:[#allocation9 + $0x1c0] ss:$8 sps:$4 sm:$0xff]  }
 0x44b   :  { %v7131_v19 = vadd.f32 %v5375_v9, %v3917_v6  ;;  %v5377_v10 = vpop.f32.mrb[10].mxu0  ;;  %v7712_v9 = vld [vmem:[#allocation9 + $0x1d0] ss:$8 sps:$4 sm:$0xff]  }
 0x44c   :  { %v5562_v11 = vmul.f32 0.2, %v7130_v8  ;;  %v7132_v13 = vadd.f32 %v5377_v10, %v3913_v5  ;;  %v5379_v14 = vpop.f32.mrb[11].mxu0  ;;  %vm5554_vm0 = vcmp.ge.f32.partialorder %v7130_v8, 0.0  ;;  %v7706_v5 = vld [vmem:[#allocation9 + $0x1b0] ss:$8 sps:$4 sm:$0xff]  }
 0x44d   :  { %v5563_v15 = vmul.f32 0.2, %v7131_v19  ;;  %v7133_v16 = vadd.f32 %v5379_v14, %v3917_v6  ;;  %vm5555_vm1 = vcmp.ge.f32.partialorder %v7131_v19, 0.0  ;;  %v7711_v6 = vld [vmem:[#allocation9 + $0x1c4] ss:$8 sps:$4 sm:$0xff]  }
 0x44e   :  { %vm5558_vm2 = vcmp.ge.f32.partialorder %v7132_v13, 0.0  ;;  %v5566_v26 = vmul.f32 0.2, %v7132_v13  ;;  %v5570_v18 = vsel %vm5554_vm0, %v7130_v8, %v5562_v11  ;;  %v7714_v8 = vld [vmem:[#allocation9 + $0x1d4] ss:$8 sps:$4 sm:$0xff]   ;;  %v7731_v14 = vld [vmem:[#allocation12 + $0x68] sm:$0xff]  }
 0x44f   :  { %vm5559_vm3 = vcmp.ge.f32.partialorder %v7133_v16, 0.0  ;;  %v5567_v17 = vmul.f32 0.2, %v7133_v16  ;;  %v5571_v21 = vsel %vm5555_vm1, %v7131_v19, %v5563_v15  ;;  %v7717_v19 = vld [vmem:[#allocation9 + $0x1e4] ss:$8 sps:$4 sm:$0xff]   ;;  %7098 = vmatprep.subr.bf16.mxu1 %v7731_v14 }
 0x450   :  { %v5574_v28 = vsel %vm5558_vm2, %v7132_v13, %v5566_v26  ;;  %v7715_v10 = vld [vmem:[#allocation9 + $0x1e0] ss:$8 sps:$4 sm:$0xff]   ;;  %v7720_v11 = vld [vmem:[#allocation9 + $0x1f4] ss:$8 sps:$4 sm:$0xff]   ;;  %v7718_v13 = vld [vmem:[#allocation9 + $0x1f0] ss:$8 sps:$4 sm:$0xff]  }
 0x451   :  { %v5578_v20 = vpack.c.bf16 %v5574_v28, %v5570_v18  ;;  %v5575_v39 = vsel %vm5559_vm3, %v7133_v16, %v5567_v17  ;;  %v7732_v15 = vld [vmem:[#allocation12 + $0x28] sm:$0xff]   ;;  %v7733_v16 = vld [vmem:[#allocation12 + $0x70] sm:$0xff]   ;;  %v7735_v17 = vld [vmem:[#allocation12 + $0x78] sm:$0xff]  }
 0x452   :  { %v5579_v43 = vpack.c.bf16 %v5575_v39, %v5571_v21  ;;  %7099 = vmatpush3.bf16.msra.mxu1 %v7732_v15  ;;  %v7734_v26 = vld [vmem:[#allocation12 + $0x30] sm:$0xff]   ;;  %v7736_v18 = vld [vmem:[#allocation12 + $0x38] sm:$0xff]  }
 0x453   :  { %7100 = vmatprep.subr.bf16.mxu1 %v7733_v16  ;;  %v5646_v28 = vld [vmem:[#allocation10] sm:$0x3] }
 0x454   :  { %6010 = vmatprep.mubr.bf16.mxu0 %v5579_v43  ;;  %v5655_v21 = vrot.slane %v5646_v28, %v8213_v42 }
 0x455   :  { %6011 = vmatmul.mubr.bf16.vlgmr.msra.gmra.mrb[12].mxu0 %v5578_v20  ;;  %v5651_v20 = vrot.slane %v5646_v28, %v8208_v35 }
 0x456   :  { %6022 = vmatpush1.bf16.msra.mxu0 %v7673_v38  ;;  %7101 = vmatpush3.bf16.msra.mxu1 %v7734_v26 }
 0x457   :  { %6023 = vmatprep.subr.bf16.mxu0 %v7678_v22  ;;  %7102 = vmatprep.subr.bf16.mxu1 %v7735_v17 }
 0x45a   :  { %6024 = vmatpush1.bf16.msra.mxu0 %v7676_v25  ;;  %7103 = vmatpush3.bf16.msra.mxu1 %v7736_v18 }
 0x45b   :  { %6025 = vmatprep.subr.bf16.mxu0 %v7681_v29 }
 0x45e   :  { %6026 = vmatpush1.bf16.msra.mxu0 %v7679_v47 }
 0x45f   :  { %6027 = vmatprep.subr.bf16.mxu0 %v7684_v30 }
 0x462   :  { %6028 = vmatpush1.bf16.msra.mxu0 %v7682_v31 }
 0x463   :  { %6029 = vmatprep.subr.bf16.mxu0 %v7687_v33 }
 0x466   :  { %6030 = vmatpush1.bf16.msra.mxu0 %v7685_v27 }
 0x467   :  { %6031 = vmatprep.subr.bf16.mxu0 %v7690_v12 }
 0x46a   :  { %6032 = vmatpush1.bf16.msra.mxu0 %v7688_v40  ;;  %v5545_v45 = vpop.f32.mrb[12].mxu1 }
 0x46b   :  { %v7134_v48 = vadd.f32 %v5545_v45, %v3921_v44  ;;  %v5547_v59 = vpop.f32.mrb[13].mxu1  ;;  %6033 = vmatprep.subr.bf16.mxu0 %v7693_v57 }
 0x46c   :  { %v7135_v50 = vadd.f32 %v5547_v59, %v3925_v1  ;;  %v5549_v51 = vpop.f32.mrb[14].mxu1 }
 0x46d   :  { %v5564_v52 = vmul.f32 0.2, %v7134_v48  ;;  %v7136_v54 = vadd.f32 %v5549_v51, %v3921_v44  ;;  %v5551_v53 = vpop.f32.mrb[15].mxu1  ;;  %vm5556_vm4 = vcmp.ge.f32.partialorder %v7134_v48, 0.0 }
 0x46e   :  { %v5565_v36 = vmul.f32 0.2, %v7135_v50  ;;  %v7137_v55 = vadd.f32 %v5551_v53, %v3925_v1  ;;  %6034 = vmatpush1.bf16.msra.mxu0 %v7691_v46  ;;  %vm5557_vm5 = vcmp.ge.f32.partialorder %v7135_v50, 0.0  ;;  %v7060_v46 = vld [vmem:[#allocation13] ss:$0 sm:$0xff] }
 0x46f   :  { %vm5560_vm6 = vcmp.ge.f32.partialorder %v7136_v54, 0.0  ;;  %v5568_v24 = vmul.f32 0.2, %v7136_v54  ;;  %6035 = vmatprep.subr.bf16.mxu0 %v7696_v49  ;;  %v5572_v58 = vsel %vm5556_vm4, %v7134_v48, %v5564_v52 }
 0x470   :  { %vm5561_vm7 = vcmp.ge.f32.partialorder %v7137_v55, 0.0  ;;  %v5569_v56 = vmul.f32 0.2, %v7137_v55  ;;  %v5573_v62 = vsel %vm5557_vm5, %v7135_v50, %v5565_v36 }
 0x471   :  { %v5576_v60 = vsel %vm5560_vm6, %v7136_v54, %v5568_v24 }
 0x472   :  { %v5580_v61 = vpack.c.bf16 %v5576_v60, %v5572_v58  ;;  %6036 = vmatpush1.bf16.msra.mxu0 %v7694_v32  ;;  %v5577_v63 = vsel %vm5561_vm7, %v7137_v55, %v5569_v56 }
 0x473   :  { %6037 = vmatprep.subr.bf16.mxu0 %v7699_v37  ;;  %v5581_v41 = vpack.c.bf16 %v5577_v63, %v5573_v62 }
 0x475   :  { %6053 = vmatprep.mubr.bf16.mxu0 %v5581_v41 }
 0x476   :  { %6038 = vmatpush1.bf16.msra.mxu0 %v7697_v23 }
 0x477   :  { %6039 = vmatprep.subr.bf16.mxu0 %v7702_v0 }
 0x47a   :  { %6040 = vmatpush1.bf16.msra.mxu0 %v7700_v2 }
 0x47b   :  { %6041 = vmatprep.subr.bf16.mxu0 %v7705_v34 }
 0x47e   :  { %6042 = vmatpush1.bf16.msra.mxu0 %v7703_v3 }
 0x47f   :  { %6043 = vmatprep.subr.bf16.mxu0 %v7708_v4 }
 0x482   :  { %6044 = vmatpush1.bf16.msra.mxu0 %v7706_v5 }
 0x483   :  { %6045 = vmatprep.subr.bf16.mxu0 %v7711_v6 }
 0x486   :  { %6046 = vmatpush1.bf16.msra.mxu0 %v7709_v7 }
 0x487   :  { %6047 = vmatprep.subr.bf16.mxu0 %v7714_v8 }
 0x48a   :  { %6048 = vmatpush1.bf16.msra.mxu0 %v7712_v9 }
 0x48b   :  { %6049 = vmatprep.subr.bf16.mxu0 %v7717_v19 }
 0x48e   :  { %6050 = vmatpush1.bf16.msra.mxu0 %v7715_v10 }
 0x48f   :  { %6051 = vmatprep.subr.bf16.mxu0 %v7720_v11 }
 0x492   :  { %6052 = vmatpush1.bf16.msra.mxu0 %v7718_v13 }
 0x495   :  { %6054 = vmatmul.mubr.bf16.vlgmr.msra.gmra.mrb[12].mxu0 %v5580_v61 }
 0x568   :  { %v6055_v39 = vpop.f32.mrb[12].mxu0 }
 0x569   :  { %v7138_v43 = vadd.f32 %v6055_v39, %v5651_v20  ;;  %v6057_v38 = vpop.f32.mrb[13].mxu0 }
 0x56a   :  { %v7139_v22 = vadd.f32 %v6057_v38, %v5655_v21  ;;  %v6059_v25 = vpop.f32.mrb[14].mxu0 }
 0x56b   :  { %v6068_v29 = vmul.f32 0.2, %v7138_v43  ;;  %v7140_v47 = vadd.f32 %v6059_v25, %v5651_v20  ;;  %v6061_v30 = vpop.f32.mrb[15].mxu0  ;;  %vm6064_vm8 = vcmp.ge.f32.partialorder %v7138_v43, 0.0 }
 0x56c   :  { %v6069_v31 = vmul.f32 0.2, %v7139_v22  ;;  %v7141_v33 = vadd.f32 %v6061_v30, %v5655_v21  ;;  %vm6065_vm9 = vcmp.ge.f32.partialorder %v7139_v22, 0.0 }
 0x56d   :  { %vm6066_vm10 = vcmp.ge.f32.partialorder %v7140_v47, 0.0  ;;  %v6070_v27 = vmul.f32 0.2, %v7140_v47  ;;  %v6072_v40 = vsel %vm6064_vm8, %v7138_v43, %v6068_v29 }
 0x56e   :  { %vm6067_vm11 = vcmp.ge.f32.partialorder %v7141_v33, 0.0  ;;  %v6071_v12 = vmul.f32 0.2, %v7141_v33  ;;  %v6073_v42 = vsel %vm6065_vm9, %v7139_v22, %v6069_v31 }
 0x56f   :  { %v6074_v35 = vsel %vm6066_vm10, %v7140_v47, %v6070_v27 }
 0x570   :  { %v6076_v44 = vpack.c.bf16 %v6074_v35, %v6072_v40  ;;  %v6075_v57 = vsel %vm6067_vm11, %v7141_v33, %v6071_v12 }
 0x571   :  { %v6077_v1 = vpack.c.bf16 %v6075_v57, %v6073_v42 }
 0x573   :  { %6245 = vmatprep.mubr.bf16.mxu1 %v6077_v1 }
 0x574   :  { %6246 = vmatmul.mubr.bf16.vlgmr.msra.gmra.mrb[16].mxu1 %v6076_v44 }
 0x647   :  { %v7104_v45 = vpop.f32.mrb[16].mxu1 }
 0x648   :  { %v7105_v48 = vpop.f32.mrb[17].mxu1 }
 0x649   :  { %v7106_v59 = vadd.f32 %v7105_v48, %v7104_v45  ;;  %v7107_v49 = vpop.f32.mrb[18].mxu1 }
 0x64a   :  { %v7108_v50 = vpop.f32.mrb[19].mxu1 }
 0x64b   :  { %v6248_v51 = vadd.f32 %v7106_v59, %v7060_v46  ;;  %v7109_v52 = vadd.f32 %v7108_v50, %v7107_v49 }
 0x64d   :  { %v7077_v54 = vmul.f32 -1.442695, %v6248_v51  ;;  %v6251_v53 = vadd.f32 %v7109_v52, %v7060_v46 }
 0x64f   :  { %7737 = vpow2.f32 %v7077_v54  ;;  %v7078_v36 = vmul.f32 -1.442695, %v6251_v53 }
 0x651   :  { %7739 = vpow2.f32 %v7078_v36 }
 0x659   :  { %v7738_v55 = vpop.eup %7737 }
 0x65a   :  { %v6260_v32 = vadd.f32 1.0, %v7738_v55 }
 0x65b   :  { %v7740_v24 = vpop.eup %7739 }
 0x65c   :  { %v6261_v37 = vadd.f32 1.0, %v7740_v24  ;;  %7741 = vrcp.f32 %v6260_v32 }
 0x65e   :  { %7743 = vrcp.f32 %v6261_v37 }
 0x666   :  { %v7742_v56 = vpop.eup %7741 }
 0x668   :  { %v7744_v58 = vpop.eup %7743 }
 0x669   :  { %v7086_v60 = vpack.c.bf16 %v7744_v58, %v7742_v56 }
 0x66b   :  { %7087 = vst [vmem:[%s8304_s9] sm:$0xff] %v7086_v60  }
 0x66c   :  { %6280 = vsyncpa [#allocation3], 1 }
 0x66d   :  { %6281 = vsyncpa [#allocation5], 1 }
 0x66e   :  { %6282 = vsyncpa [#allocation8], 1 }
 0x66f   :  { %6283 = vsyncpa [#allocation11], 1 }
 0x670   :  { %6284 = vsyncpa [#allocation14], 1 }

</bundles_post_ra>
